<compile_context>
chip_gen: v5e
topology: v5e:2x2
jax: 0.10.0
libtpu: 0.0.40
codegen_flags: <defaults>
</compile_context>

<pallas_src>
import math
import numpy as np

import jax
import jax.numpy as jnp
from jax.experimental import pallas as pl
from jax.experimental.pallas import tpu as pltpu

# ---- small deterministic config (stand-in for MockingjayConfig) ------------
INP_DIM    = 64            # per-frame acoustic feature dim
DR         = 2             # downsample_rate
HIDDEN     = 128           # hidden_size (real checkpoint: 768)
NUM_HEADS  = 4
HEAD_DIM   = HIDDEN // NUM_HEADS
INTER      = 256           # intermediate_size
NUM_LAYERS = 2
LN_EPS     = 1e-12
BATCH      = 2
SEQ_IN     = 17            # input frame count T (T % dr != 0 -> pad path)

D_STACKED = INP_DIM * DR   # input dim to spec_transform Linear


# --------------------------- in-kernel helpers -------------------------------
def _layernorm(x, gamma, beta):
    # one-pass variance (E[x^2] - mu^2), rsqrt on the EUP
    mu = jnp.mean(x, axis=-1, keepdims=True)
    ex2 = jnp.mean(x * x, axis=-1, keepdims=True)
    var = jnp.maximum(ex2 - mu * mu, 0.0)
    inv = jax.lax.rsqrt(var + LN_EPS)
    return (x - mu) * inv * gamma + beta


def _gelu(x):
    # Mockingjay's gelu: x * 0.5 * (1 + erf(x / sqrt(2)))
    return x * 0.5 * (1.0 + jax.lax.erf(x / np.float32(math.sqrt(2.0))))


# ------------------------------ fused Pallas kernel ---------------------------
def fused_mockingjay_kernel(spec_ref, pos_ref, bias_ref,
                            w_in_ref, b_in_ref, g_in_ref, be_in_ref,
                            wqkv_ref, bqkv_ref, wo_ref, bo_ref, g1_ref, be1_ref,
                            wi_ref, bi_ref, wo2_ref, bo2_ref, g2_ref, be2_ref,
                            out_ref):
    # spec_ref: (M, D_STACKED) f32 with M = B*S'; pos_ref: (M, H) f32
    # bias_ref: (M, M) f32 additive attention bias (block-diagonal + padding)
    # weights (w*_ref): bf16; biases / LayerNorm params: f32
    bf16 = jnp.bfloat16
    f32 = jnp.float32

    # ---- input representations: Linear + pos_enc + LayerNorm ----
    x = spec_ref[...]
    h = jnp.dot(x.astype(bf16), w_in_ref[...],
                preferred_element_type=f32) + b_in_ref[...]
    h = h + pos_ref[...]
    h = _layernorm(h, g_in_ref[...], be_in_ref[...])

    bias = bias_ref[...]                                  # (M, M), hoisted
    scale = np.float32(1.0 / math.sqrt(HEAD_DIM))
    dim_qk = (((1,), (1,)), ((), ()))                     # contract last dims

    # ---- statically unrolled encoder layers (weights VMEM-resident) ----
    for l in range(NUM_LAYERS):
        h_bf = h.astype(bf16)

        # fused QKV projection: one (M, H) x (H, 3H) matmul
        qkv = jnp.dot(h_bf, wqkv_ref[l],
                      preferred_element_type=f32) + bqkv_ref[l]     # (M, 3H) f32
        q = qkv[:, 0 * HIDDEN:1 * HIDDEN].astype(bf16)
        k = qkv[:, 1 * HIDDEN:2 * HIDDEN].astype(bf16)
        v = qkv[:, 2 * HIDDEN:3 * HIDDEN].astype(bf16)

        ctx_parts = []
        for hh in range(NUM_HEADS):                       # static unroll
            s0 = hh * HEAD_DIM
            qh = q[:, s0:s0 + HEAD_DIM]
            kh = k[:, s0:s0 + HEAD_DIM]
            vh = v[:, s0:s0 + HEAD_DIM]
            # scores = qh @ kh^T without an explicit transpose op
            sc = jax.lax.dot_general(qh, kh, dim_qk,
                                     preferred_element_type=f32)    # (M, M) f32
            sc = sc * scale + bias
            sc = sc - jnp.max(sc, axis=-1, keepdims=True)
            p = jnp.exp(sc)
            p = p * pl.reciprocal(jnp.sum(p, axis=-1, keepdims=True),
                                  approx=True)
            ctx_parts.append(jnp.dot(p.astype(bf16), vh,
                                     preferred_element_type=f32))
        ctx = jnp.concatenate(ctx_parts, axis=-1)                    # (M, H)

        # self-output: dense + residual + LayerNorm (dropout = identity)
        attn = jnp.dot(ctx.astype(bf16), wo_ref[l],
                       preferred_element_type=f32) + bo_ref[l]
        a = _layernorm(attn + h, g1_ref[l], be1_ref[l])

        # feed-forward: dense -> gelu -> dense + residual + LayerNorm
        inter = _gelu(jnp.dot(a.astype(bf16), wi_ref[l],
                              preferred_element_type=f32) + bi_ref[l])
        ff = jnp.dot(inter.astype(bf16), wo2_ref[l],
                     preferred_element_type=f32) + bo2_ref[l]
        h = _layernorm(ff + a, g2_ref[l], be2_ref[l])

    out_ref[...] = h


# ------------------------------ kernel wrapper --------------------------------
def mockingjay_encoder(spec_flat, pos_flat, attn_bias, in_p, layer_p):
    M = spec_flat.shape[0]
    args = (spec_flat, pos_flat, attn_bias,
            in_p["w"], in_p["b"], in_p["g"], in_p["be"],
            layer_p["wqkv"], layer_p["bqkv"],
            layer_p["wo"], layer_p["bo"], layer_p["g1"], layer_p["be1"],
            layer_p["wi"], layer_p["bi"], layer_p["wo2"], layer_p["bo2"],
            layer_p["g2"], layer_p["be2"])
    vspec = pl.BlockSpec(memory_space=pltpu.MemorySpace.VMEM)
    return pl.pallas_call(
        fused_mockingjay_kernel,
        out_shape=jax.ShapeDtypeStruct((M, HIDDEN), jnp.float32),
        in_specs=[vspec] * len(args),
        out_specs=vspec,
    )(*args)


# ------------------------------ glue (plain JAX) ------------------------------
def position_encoding(seq_len, hidden):
    pos = np.arange(seq_len, dtype=np.float64)[:, None]
    i = np.arange(hidden, dtype=np.float64)[None, :]
    angle = pos / np.power(10000.0, 2.0 * (np.floor(i / 2.0)) / hidden)
    table = np.empty((seq_len, hidden), dtype=np.float64)
    table[:, 0::2] = np.sin(angle[:, 0::2])
    table[:, 1::2] = np.cos(angle[:, 1::2])
    return jnp.asarray(table, dtype=jnp.float32)


def mockingjay_forward(x, in_params, layer_params):
    # x: (T, B, F) float32, time-major like the PyTorch module
    T, B, F = x.shape
    left_over = T % DR
    if left_over % 2 == 0:
        left_pad = left_over // 2
        right_pad = left_pad
    else:
        left_pad = left_over // 2
        right_pad = left_over // 2 + 1

    spec = jnp.transpose(x, (1, 0, 2))                       # (B, T, F)
    if left_over != 0:
        spec = spec[:, : T - left_over, :]
    Sp = (T - left_over) // DR
    spec_stacked = spec.reshape(B, Sp, F * DR).astype(jnp.float32)

    # spec_len: number of frames whose feature-sum is non-zero
    spec_len = jnp.sum(jnp.sum(spec_stacked, axis=-1) != 0, axis=-1)   # (B,)
    idx = jnp.arange(Sp)
    valid = (idx[None, :] < spec_len[:, None]).astype(jnp.float32)     # (B, Sp)

    # position encoding, zeroed beyond spec_len (matches reference)
    pos = position_encoding(Sp, HIDDEN)                                 # (Sp, H)
    pos = jnp.broadcast_to(pos[None], (B, Sp, HIDDEN)) * valid[..., None]

    # block-diagonal additive attention bias over folded (B*Sp) rows:
    #   0 for same-sequence valid keys, -10000 for padded or cross-sequence
    # keys (exp underflows to exactly 0 in f32, matching per-sequence softmax).
    eye_b = jnp.eye(B, dtype=jnp.float32)                               # (Bq, Bk)
    key_ok = eye_b[:, :, None] * valid[None, :, :]                      # (Bq, Bk, Sk)
    key_ok = jnp.broadcast_to(key_ok[:, None, :, :], (B, Sp, B, Sp))
    attn_bias = ((1.0 - key_ok) * -10000.0).reshape(B * Sp, B * Sp)

    spec_flat = spec_stacked.reshape(B * Sp, F * DR)
    pos_flat = pos.reshape(B * Sp, HIDDEN).astype(jnp.float32)

    # --- hot path: single fused Pallas kernel (input repr + all layers) ---
    h = mockingjay_encoder(spec_flat, pos_flat, attn_bias,
                           in_params, layer_params)
    h = h.reshape(B, Sp, HIDDEN)

    # --- tile + replication pad back to T frames ---
    if Sp != T:
        tiled = jnp.repeat(h, DR, axis=1)                               # (B, Sp*DR, H)
        pieces = []
        if left_pad > 0:
            pieces.append(jnp.repeat(tiled[:, :1, :], left_pad, axis=1))
        pieces.append(tiled)
        if right_pad > 0:
            pieces.append(jnp.repeat(tiled[:, -1:, :], right_pad, axis=1))
        out = jnp.concatenate(pieces, axis=1)                           # (B, T, H)
        return jnp.transpose(out, (1, 0, 2))                            # (T, B, H)
    else:
        return jnp.transpose(h, (1, 0, 2))


# ------------------------------ parameter init --------------------------------
def init_params(key):
    def lin(k, din, dout):
        k1, k2 = jax.random.split(k)
        w = jax.random.normal(k1, (din, dout), jnp.float32) * 0.02
        b = jax.random.normal(k2, (1, dout), jnp.float32) * 0.02
        return w, b

    keys = jax.random.split(key, 1 + NUM_LAYERS)
    w_in, b_in = lin(keys[0], D_STACKED, HIDDEN)
    in_params = dict(w=w_in.astype(jnp.bfloat16), b=b_in,
                     g=jnp.ones((1, HIDDEN), jnp.float32),
                     be=jnp.zeros((1, HIDDEN), jnp.float32))

    acc = {name: [] for name in
           ("wqkv", "bqkv", "wo", "bo", "g1", "be1",
            "wi", "bi", "wo2", "bo2", "g2", "be2")}
    for l in range(NUM_LAYERS):
        ks = jax.random.split(keys[1 + l], 6)
        wq, bq = lin(ks[0], HIDDEN, HIDDEN)
        wk, bk = lin(ks[1], HIDDEN, HIDDEN)
        wv, bv = lin(ks[2], HIDDEN, HIDDEN)
        wo, bo = lin(ks[3], HIDDEN, HIDDEN)
        wi, bi = lin(ks[4], HIDDEN, INTER)
        wo2, bo2 = lin(ks[5], INTER, HIDDEN)
        acc["wqkv"].append(jnp.concatenate([wq, wk, wv], axis=-1))   # QKV fused
        acc["bqkv"].append(jnp.concatenate([bq, bk, bv], axis=-1))
        acc["wo"].append(wo);   acc["bo"].append(bo)
        acc["g1"].append(jnp.ones((1, HIDDEN), jnp.float32))
        acc["be1"].append(jnp.zeros((1, HIDDEN), jnp.float32))
        acc["wi"].append(wi);   acc["bi"].append(bi)
        acc["wo2"].append(wo2); acc["bo2"].append(bo2)
        acc["g2"].append(jnp.ones((1, HIDDEN), jnp.float32))
        acc["be2"].append(jnp.zeros((1, HIDDEN), jnp.float32))

    def stk(name, dtype=jnp.float32):
        return jnp.stack(acc[name], axis=0).astype(dtype)

    layer_params = dict(
        wqkv=stk("wqkv", jnp.bfloat16), bqkv=stk("bqkv"),
        wo=stk("wo", jnp.bfloat16),     bo=stk("bo"),
        g1=stk("g1"), be1=stk("be1"),
        wi=stk("wi", jnp.bfloat16),     bi=stk("bi"),
        wo2=stk("wo2", jnp.bfloat16),   bo2=stk("bo2"),
        g2=stk("g2"), be2=stk("be2"),
    )
    return in_params, layer_params


# TODO(synk): checkpoint loading / gamma-beta state-dict key renaming has no
# Pallas equivalent; parameters are synthesized deterministically in-script.

if __name__ == "__main__":
    key = jax.random.PRNGKey(0)
    k_x, k_p = jax.random.split(key)
    x = jax.random.normal(k_x, (SEQ_IN, BATCH, INP_DIM), jnp.float32)  # (T, B, F)
    in_params, layer_params = init_params(k_p)

    fwd = jax.jit(lambda xx: mockingjay_forward(xx, in_params, layer_params))
    y = fwd(x)
    jax.block_until_ready(y)
    assert y.shape == (SEQ_IN, BATCH, HIDDEN)
    print("KERNEL_OK")
</pallas_src>

<mosaic_0001>
module attributes {stable_mosaic.version = 11 : i64} {
  func.func @fused_mockingjay_kernel(%arg0: memref<16x128xf32, #tpu.memory_space<vmem>>, %arg1: memref<16x128xf32, #tpu.memory_space<vmem>>, %arg2: memref<16x16xf32, #tpu.memory_space<vmem>>, %arg3: memref<128x128xbf16, #tpu.memory_space<vmem>>, %arg4: memref<1x128xf32, #tpu.memory_space<vmem>>, %arg5: memref<1x128xf32, #tpu.memory_space<vmem>>, %arg6: memref<1x128xf32, #tpu.memory_space<vmem>>, %arg7: memref<2x128x384xbf16, #tpu.memory_space<vmem>>, %arg8: memref<2x1x384xf32, #tpu.memory_space<vmem>>, %arg9: memref<2x128x128xbf16, #tpu.memory_space<vmem>>, %arg10: memref<2x1x128xf32, #tpu.memory_space<vmem>>, %arg11: memref<2x1x128xf32, #tpu.memory_space<vmem>>, %arg12: memref<2x1x128xf32, #tpu.memory_space<vmem>>, %arg13: memref<2x128x256xbf16, #tpu.memory_space<vmem>>, %arg14: memref<2x1x256xf32, #tpu.memory_space<vmem>>, %arg15: memref<2x256x128xbf16, #tpu.memory_space<vmem>>, %arg16: memref<2x1x128xf32, #tpu.memory_space<vmem>>, %arg17: memref<2x1x128xf32, #tpu.memory_space<vmem>>, %arg18: memref<2x1x128xf32, #tpu.memory_space<vmem>>, %arg19: memref<16x128xf32, #tpu.memory_space<vmem>>) attributes {dimension_semantics = [], scalar_prefetch = 0 : i64, scratch_operands = 0 : i64, tpu.core_type = #tpu.core_type<tc>} {
    %c0 = arith.constant 0 : index
    %c0_0 = arith.constant 0 : index
    %0 = vector.load %arg0[%c0, %c0_0] : memref<16x128xf32, #tpu.memory_space<vmem>>, vector<16x128xf32>
    %1 = arith.truncf %0 : vector<16x128xf32> to vector<16x128xbf16>
    %c0_1 = arith.constant 0 : index
    %c0_2 = arith.constant 0 : index
    %2 = vector.load %arg3[%c0_1, %c0_2] : memref<128x128xbf16, #tpu.memory_space<vmem>>, vector<128x128xbf16>
    %cst = arith.constant dense<0.000000e+00> : vector<16x128xf32>
    %3 = tpu.matmul %1, %2, %cst {dimension_numbers = #tpu.dot_dimension_numbers<[1], [0], [0], [1], [0, 0, 1, 1], [], []>} : vector<16x128xbf16>, vector<128x128xbf16>, vector<16x128xf32> -> vector<16x128xf32>
    %c0_3 = arith.constant 0 : index
    %c0_4 = arith.constant 0 : index
    %4 = vector.load %arg4[%c0_3, %c0_4] : memref<1x128xf32, #tpu.memory_space<vmem>>, vector<1x128xf32>
    %5 = vector.broadcast %4 : vector<1x128xf32> to vector<16x128xf32>
    %6 = arith.addf %3, %5 : vector<16x128xf32>
    %c0_5 = arith.constant 0 : index
    %c0_6 = arith.constant 0 : index
    %7 = vector.load %arg1[%c0_5, %c0_6] : memref<16x128xf32, #tpu.memory_space<vmem>>, vector<16x128xf32>
    %8 = arith.addf %6, %7 : vector<16x128xf32>
    %c0_7 = arith.constant 0 : index
    %c0_8 = arith.constant 0 : index
    %9 = vector.load %arg5[%c0_7, %c0_8] : memref<1x128xf32, #tpu.memory_space<vmem>>, vector<1x128xf32>
    %c0_9 = arith.constant 0 : index
    %c0_10 = arith.constant 0 : index
    %10 = vector.load %arg6[%c0_9, %c0_10] : memref<1x128xf32, #tpu.memory_space<vmem>>, vector<1x128xf32>
    %cst_11 = arith.constant dense<0.000000e+00> : vector<16xf32>
    %11 = vector.multi_reduction <add>, %8, %cst_11 [1] : vector<16x128xf32> to vector<16xf32>
    %12 = vector.shape_cast %11 : vector<16xf32> to vector<16x1xf32>
    %cst_12 = arith.constant 1.280000e+02 : f32
    %13 = vector.broadcast %cst_12 : f32 to vector<16x1xf32>
    %14 = arith.divf %12, %13 : vector<16x1xf32>
    %15 = arith.mulf %8, %8 : vector<16x128xf32>
    %cst_13 = arith.constant dense<0.000000e+00> : vector<16xf32>
    %16 = vector.multi_reduction <add>, %15, %cst_13 [1] : vector<16x128xf32> to vector<16xf32>
    %17 = vector.shape_cast %16 : vector<16xf32> to vector<16x1xf32>
    %cst_14 = arith.constant 1.280000e+02 : f32
    %18 = vector.broadcast %cst_14 : f32 to vector<16x1xf32>
    %19 = arith.divf %17, %18 : vector<16x1xf32>
    %20 = arith.mulf %14, %14 : vector<16x1xf32>
    %21 = arith.subf %19, %20 : vector<16x1xf32>
    %cst_15 = arith.constant 0.000000e+00 : f32
    %22 = vector.broadcast %cst_15 : f32 to vector<16x1xf32>
    %23 = arith.maximumf %21, %22 : vector<16x1xf32>
    %cst_16 = arith.constant 9.99999996E-13 : f32
    %24 = vector.broadcast %cst_16 : f32 to vector<16x1xf32>
    %25 = arith.addf %23, %24 : vector<16x1xf32>
    %26 = math.rsqrt %25 : vector<16x1xf32>
    %27 = vector.broadcast %14 : vector<16x1xf32> to vector<16x128xf32>
    %28 = arith.subf %8, %27 : vector<16x128xf32>
    %29 = vector.broadcast %26 : vector<16x1xf32> to vector<16x128xf32>
    %30 = arith.mulf %28, %29 : vector<16x128xf32>
    %31 = vector.broadcast %9 : vector<1x128xf32> to vector<16x128xf32>
    %32 = arith.mulf %30, %31 : vector<16x128xf32>
    %33 = vector.broadcast %10 : vector<1x128xf32> to vector<16x128xf32>
    %34 = arith.addf %32, %33 : vector<16x128xf32>
    %c0_17 = arith.constant 0 : index
    %c0_18 = arith.constant 0 : index
    %35 = vector.load %arg2[%c0_17, %c0_18] : memref<16x16xf32, #tpu.memory_space<vmem>>, vector<16x16xf32>
    %36 = arith.truncf %34 : vector<16x128xf32> to vector<16x128xbf16>
    %c0_19 = arith.constant 0 : index
    %c0_20 = arith.constant 0 : index
    %c0_21 = arith.constant 0 : index
    %37 = vector.load %arg7[%c0_19, %c0_20, %c0_21] : memref<2x128x384xbf16, #tpu.memory_space<vmem>>, vector<1x128x384xbf16>
    %38 = vector.shape_cast %37 : vector<1x128x384xbf16> to vector<128x384xbf16>
    %cst_22 = arith.constant dense<0.000000e+00> : vector<16x384xf32>
    %39 = tpu.matmul %36, %38, %cst_22 {dimension_numbers = #tpu.dot_dimension_numbers<[1], [0], [0], [1], [0, 0, 1, 1], [], []>} : vector<16x128xbf16>, vector<128x384xbf16>, vector<16x384xf32> -> vector<16x384xf32>
    %c0_23 = arith.constant 0 : index
    %c0_24 = arith.constant 0 : index
    %c0_25 = arith.constant 0 : index
    %40 = vector.load %arg8[%c0_23, %c0_24, %c0_25] : memref<2x1x384xf32, #tpu.memory_space<vmem>>, vector<1x1x384xf32>
    %41 = vector.shape_cast %40 : vector<1x1x384xf32> to vector<1x384xf32>
    %42 = vector.broadcast %41 : vector<1x384xf32> to vector<16x384xf32>
    %43 = arith.addf %39, %42 : vector<16x384xf32>
    %44 = vector.extract_strided_slice %43 {offsets = [0, 0], sizes = [16, 128], strides = [1, 1]} : vector<16x384xf32> to vector<16x128xf32>
    %45 = arith.truncf %44 : vector<16x128xf32> to vector<16x128xbf16>
    %46 = vector.extract_strided_slice %43 {offsets = [0, 128], sizes = [16, 128], strides = [1, 1]} : vector<16x384xf32> to vector<16x128xf32>
    %47 = arith.truncf %46 : vector<16x128xf32> to vector<16x128xbf16>
    %48 = vector.extract_strided_slice %43 {offsets = [0, 256], sizes = [16, 128], strides = [1, 1]} : vector<16x384xf32> to vector<16x128xf32>
    %49 = arith.truncf %48 : vector<16x128xf32> to vector<16x128xbf16>
    %50 = vector.extract_strided_slice %45 {offsets = [0, 0], sizes = [16, 32], strides = [1, 1]} : vector<16x128xbf16> to vector<16x32xbf16>
    %51 = vector.extract_strided_slice %47 {offsets = [0, 0], sizes = [16, 32], strides = [1, 1]} : vector<16x128xbf16> to vector<16x32xbf16>
    %52 = vector.extract_strided_slice %49 {offsets = [0, 0], sizes = [16, 32], strides = [1, 1]} : vector<16x128xbf16> to vector<16x32xbf16>
    %cst_26 = arith.constant dense<0.000000e+00> : vector<16x16xf32>
    %53 = tpu.matmul %50, %51, %cst_26 {dimension_numbers = #tpu.dot_dimension_numbers<[1], [1], [0], [0], [0, 0, 1, 0], [], []>} : vector<16x32xbf16>, vector<16x32xbf16>, vector<16x16xf32> -> vector<16x16xf32>
    %cst_27 = arith.constant 0.176776692 : f32
    %54 = vector.broadcast %cst_27 : f32 to vector<16x16xf32>
    %55 = arith.mulf %53, %54 : vector<16x16xf32>
    %56 = arith.addf %55, %35 : vector<16x16xf32>
    %cst_28 = arith.constant dense<0xFF800000> : vector<16xf32>
    %57 = vector.multi_reduction <maximumf>, %56, %cst_28 [1] : vector<16x16xf32> to vector<16xf32>
    %58 = vector.shape_cast %57 : vector<16xf32> to vector<16x1xf32>
    %59 = vector.broadcast %58 : vector<16x1xf32> to vector<16x16xf32>
    %60 = arith.subf %56, %59 : vector<16x16xf32>
    %61 = math.exp %60 : vector<16x16xf32>
    %cst_29 = arith.constant dense<0.000000e+00> : vector<16xf32>
    %62 = vector.multi_reduction <add>, %61, %cst_29 [1] : vector<16x16xf32> to vector<16xf32>
    %63 = vector.shape_cast %62 : vector<16xf32> to vector<16x1xf32>
    %64 = tpu.reciprocal %63 {approx = true} : vector<16x1xf32> -> vector<16x1xf32>
    %65 = vector.broadcast %64 : vector<16x1xf32> to vector<16x16xf32>
    %66 = arith.mulf %61, %65 : vector<16x16xf32>
    %67 = arith.truncf %66 : vector<16x16xf32> to vector<16x16xbf16>
    %cst_30 = arith.constant dense<0.000000e+00> : vector<16x32xf32>
    %68 = tpu.matmul %67, %52, %cst_30 {dimension_numbers = #tpu.dot_dimension_numbers<[1], [0], [0], [1], [0, 0, 1, 1], [], []>} : vector<16x16xbf16>, vector<16x32xbf16>, vector<16x32xf32> -> vector<16x32xf32>
    %69 = vector.extract_strided_slice %45 {offsets = [0, 32], sizes = [16, 32], strides = [1, 1]} : vector<16x128xbf16> to vector<16x32xbf16>
    %70 = vector.extract_strided_slice %47 {offsets = [0, 32], sizes = [16, 32], strides = [1, 1]} : vector<16x128xbf16> to vector<16x32xbf16>
    %71 = vector.extract_strided_slice %49 {offsets = [0, 32], sizes = [16, 32], strides = [1, 1]} : vector<16x128xbf16> to vector<16x32xbf16>
    %cst_31 = arith.constant dense<0.000000e+00> : vector<16x16xf32>
    %72 = tpu.matmul %69, %70, %cst_31 {dimension_numbers = #tpu.dot_dimension_numbers<[1], [1], [0], [0], [0, 0, 1, 0], [], []>} : vector<16x32xbf16>, vector<16x32xbf16>, vector<16x16xf32> -> vector<16x16xf32>
    %cst_32 = arith.constant 0.176776692 : f32
    %73 = vector.broadcast %cst_32 : f32 to vector<16x16xf32>
    %74 = arith.mulf %72, %73 : vector<16x16xf32>
    %75 = arith.addf %74, %35 : vector<16x16xf32>
    %cst_33 = arith.constant dense<0xFF800000> : vector<16xf32>
    %76 = vector.multi_reduction <maximumf>, %75, %cst_33 [1] : vector<16x16xf32> to vector<16xf32>
    %77 = vector.shape_cast %76 : vector<16xf32> to vector<16x1xf32>
    %78 = vector.broadcast %77 : vector<16x1xf32> to vector<16x16xf32>
    %79 = arith.subf %75, %78 : vector<16x16xf32>
    %80 = math.exp %79 : vector<16x16xf32>
    %cst_34 = arith.constant dense<0.000000e+00> : vector<16xf32>
    %81 = vector.multi_reduction <add>, %80, %cst_34 [1] : vector<16x16xf32> to vector<16xf32>
    %82 = vector.shape_cast %81 : vector<16xf32> to vector<16x1xf32>
    %83 = tpu.reciprocal %82 {approx = true} : vector<16x1xf32> -> vector<16x1xf32>
    %84 = vector.broadcast %83 : vector<16x1xf32> to vector<16x16xf32>
    %85 = arith.mulf %80, %84 : vector<16x16xf32>
    %86 = arith.truncf %85 : vector<16x16xf32> to vector<16x16xbf16>
    %cst_35 = arith.constant dense<0.000000e+00> : vector<16x32xf32>
    %87 = tpu.matmul %86, %71, %cst_35 {dimension_numbers = #tpu.dot_dimension_numbers<[1], [0], [0], [1], [0, 0, 1, 1], [], []>} : vector<16x16xbf16>, vector<16x32xbf16>, vector<16x32xf32> -> vector<16x32xf32>
    %88 = vector.extract_strided_slice %45 {offsets = [0, 64], sizes = [16, 32], strides = [1, 1]} : vector<16x128xbf16> to vector<16x32xbf16>
    %89 = vector.extract_strided_slice %47 {offsets = [0, 64], sizes = [16, 32], strides = [1, 1]} : vector<16x128xbf16> to vector<16x32xbf16>
    %90 = vector.extract_strided_slice %49 {offsets = [0, 64], sizes = [16, 32], strides = [1, 1]} : vector<16x128xbf16> to vector<16x32xbf16>
    %cst_36 = arith.constant dense<0.000000e+00> : vector<16x16xf32>
    %91 = tpu.matmul %88, %89, %cst_36 {dimension_numbers = #tpu.dot_dimension_numbers<[1], [1], [0], [0], [0, 0, 1, 0], [], []>} : vector<16x32xbf16>, vector<16x32xbf16>, vector<16x16xf32> -> vector<16x16xf32>
    %cst_37 = arith.constant 0.176776692 : f32
    %92 = vector.broadcast %cst_37 : f32 to vector<16x16xf32>
    %93 = arith.mulf %91, %92 : vector<16x16xf32>
    %94 = arith.addf %93, %35 : vector<16x16xf32>
    %cst_38 = arith.constant dense<0xFF800000> : vector<16xf32>
    %95 = vector.multi_reduction <maximumf>, %94, %cst_38 [1] : vector<16x16xf32> to vector<16xf32>
    %96 = vector.shape_cast %95 : vector<16xf32> to vector<16x1xf32>
    %97 = vector.broadcast %96 : vector<16x1xf32> to vector<16x16xf32>
    %98 = arith.subf %94, %97 : vector<16x16xf32>
    %99 = math.exp %98 : vector<16x16xf32>
    %cst_39 = arith.constant dense<0.000000e+00> : vector<16xf32>
    %100 = vector.multi_reduction <add>, %99, %cst_39 [1] : vector<16x16xf32> to vector<16xf32>
    %101 = vector.shape_cast %100 : vector<16xf32> to vector<16x1xf32>
    %102 = tpu.reciprocal %101 {approx = true} : vector<16x1xf32> -> vector<16x1xf32>
    %103 = vector.broadcast %102 : vector<16x1xf32> to vector<16x16xf32>
    %104 = arith.mulf %99, %103 : vector<16x16xf32>
    %105 = arith.truncf %104 : vector<16x16xf32> to vector<16x16xbf16>
    %cst_40 = arith.constant dense<0.000000e+00> : vector<16x32xf32>
    %106 = tpu.matmul %105, %90, %cst_40 {dimension_numbers = #tpu.dot_dimension_numbers<[1], [0], [0], [1], [0, 0, 1, 1], [], []>} : vector<16x16xbf16>, vector<16x32xbf16>, vector<16x32xf32> -> vector<16x32xf32>
    %107 = vector.extract_strided_slice %45 {offsets = [0, 96], sizes = [16, 32], strides = [1, 1]} : vector<16x128xbf16> to vector<16x32xbf16>
    %108 = vector.extract_strided_slice %47 {offsets = [0, 96], sizes = [16, 32], strides = [1, 1]} : vector<16x128xbf16> to vector<16x32xbf16>
    %109 = vector.extract_strided_slice %49 {offsets = [0, 96], sizes = [16, 32], strides = [1, 1]} : vector<16x128xbf16> to vector<16x32xbf16>
    %cst_41 = arith.constant dense<0.000000e+00> : vector<16x16xf32>
    %110 = tpu.matmul %107, %108, %cst_41 {dimension_numbers = #tpu.dot_dimension_numbers<[1], [1], [0], [0], [0, 0, 1, 0], [], []>} : vector<16x32xbf16>, vector<16x32xbf16>, vector<16x16xf32> -> vector<16x16xf32>
    %cst_42 = arith.constant 0.176776692 : f32
    %111 = vector.broadcast %cst_42 : f32 to vector<16x16xf32>
    %112 = arith.mulf %110, %111 : vector<16x16xf32>
    %113 = arith.addf %112, %35 : vector<16x16xf32>
    %cst_43 = arith.constant dense<0xFF800000> : vector<16xf32>
    %114 = vector.multi_reduction <maximumf>, %113, %cst_43 [1] : vector<16x16xf32> to vector<16xf32>
    %115 = vector.shape_cast %114 : vector<16xf32> to vector<16x1xf32>
    %116 = vector.broadcast %115 : vector<16x1xf32> to vector<16x16xf32>
    %117 = arith.subf %113, %116 : vector<16x16xf32>
    %118 = math.exp %117 : vector<16x16xf32>
    %cst_44 = arith.constant dense<0.000000e+00> : vector<16xf32>
    %119 = vector.multi_reduction <add>, %118, %cst_44 [1] : vector<16x16xf32> to vector<16xf32>
    %120 = vector.shape_cast %119 : vector<16xf32> to vector<16x1xf32>
    %121 = tpu.reciprocal %120 {approx = true} : vector<16x1xf32> -> vector<16x1xf32>
    %122 = vector.broadcast %121 : vector<16x1xf32> to vector<16x16xf32>
    %123 = arith.mulf %118, %122 : vector<16x16xf32>
    %124 = arith.truncf %123 : vector<16x16xf32> to vector<16x16xbf16>
    %cst_45 = arith.constant dense<0.000000e+00> : vector<16x32xf32>
    %125 = tpu.matmul %124, %109, %cst_45 {dimension_numbers = #tpu.dot_dimension_numbers<[1], [0], [0], [1], [0, 0, 1, 1], [], []>} : vector<16x16xbf16>, vector<16x32xbf16>, vector<16x32xf32> -> vector<16x32xf32>
    %126 = tpu.concatenate %68, %87, %106, %125 in 1 : vector<16x32xf32>, vector<16x32xf32>, vector<16x32xf32>, vector<16x32xf32> -> vector<16x128xf32>
    %127 = arith.truncf %126 : vector<16x128xf32> to vector<16x128xbf16>
    %c0_46 = arith.constant 0 : index
    %c0_47 = arith.constant 0 : index
    %c0_48 = arith.constant 0 : index
    %128 = vector.load %arg9[%c0_46, %c0_47, %c0_48] : memref<2x128x128xbf16, #tpu.memory_space<vmem>>, vector<1x128x128xbf16>
    %129 = vector.shape_cast %128 : vector<1x128x128xbf16> to vector<128x128xbf16>
    %cst_49 = arith.constant dense<0.000000e+00> : vector<16x128xf32>
    %130 = tpu.matmul %127, %129, %cst_49 {dimension_numbers = #tpu.dot_dimension_numbers<[1], [0], [0], [1], [0, 0, 1, 1], [], []>} : vector<16x128xbf16>, vector<128x128xbf16>, vector<16x128xf32> -> vector<16x128xf32>
    %c0_50 = arith.constant 0 : index
    %c0_51 = arith.constant 0 : index
    %c0_52 = arith.constant 0 : index
    %131 = vector.load %arg10[%c0_50, %c0_51, %c0_52] : memref<2x1x128xf32, #tpu.memory_space<vmem>>, vector<1x1x128xf32>
    %132 = vector.shape_cast %131 : vector<1x1x128xf32> to vector<1x128xf32>
    %133 = vector.broadcast %132 : vector<1x128xf32> to vector<16x128xf32>
    %134 = arith.addf %130, %133 : vector<16x128xf32>
    %135 = arith.addf %134, %34 : vector<16x128xf32>
    %c0_53 = arith.constant 0 : index
    %c0_54 = arith.constant 0 : index
    %c0_55 = arith.constant 0 : index
    %136 = vector.load %arg11[%c0_53, %c0_54, %c0_55] : memref<2x1x128xf32, #tpu.memory_space<vmem>>, vector<1x1x128xf32>
    %137 = vector.shape_cast %136 : vector<1x1x128xf32> to vector<1x128xf32>
    %c0_56 = arith.constant 0 : index
    %c0_57 = arith.constant 0 : index
    %c0_58 = arith.constant 0 : index
    %138 = vector.load %arg12[%c0_56, %c0_57, %c0_58] : memref<2x1x128xf32, #tpu.memory_space<vmem>>, vector<1x1x128xf32>
    %139 = vector.shape_cast %138 : vector<1x1x128xf32> to vector<1x128xf32>
    %cst_59 = arith.constant dense<0.000000e+00> : vector<16xf32>
    %140 = vector.multi_reduction <add>, %135, %cst_59 [1] : vector<16x128xf32> to vector<16xf32>
    %141 = vector.shape_cast %140 : vector<16xf32> to vector<16x1xf32>
    %cst_60 = arith.constant 1.280000e+02 : f32
    %142 = vector.broadcast %cst_60 : f32 to vector<16x1xf32>
    %143 = arith.divf %141, %142 : vector<16x1xf32>
    %144 = arith.mulf %135, %135 : vector<16x128xf32>
    %cst_61 = arith.constant dense<0.000000e+00> : vector<16xf32>
    %145 = vector.multi_reduction <add>, %144, %cst_61 [1] : vector<16x128xf32> to vector<16xf32>
    %146 = vector.shape_cast %145 : vector<16xf32> to vector<16x1xf32>
    %cst_62 = arith.constant 1.280000e+02 : f32
    %147 = vector.broadcast %cst_62 : f32 to vector<16x1xf32>
    %148 = arith.divf %146, %147 : vector<16x1xf32>
    %149 = arith.mulf %143, %143 : vector<16x1xf32>
    %150 = arith.subf %148, %149 : vector<16x1xf32>
    %cst_63 = arith.constant 0.000000e+00 : f32
    %151 = vector.broadcast %cst_63 : f32 to vector<16x1xf32>
    %152 = arith.maximumf %150, %151 : vector<16x1xf32>
    %cst_64 = arith.constant 9.99999996E-13 : f32
    %153 = vector.broadcast %cst_64 : f32 to vector<16x1xf32>
    %154 = arith.addf %152, %153 : vector<16x1xf32>
    %155 = math.rsqrt %154 : vector<16x1xf32>
    %156 = vector.broadcast %143 : vector<16x1xf32> to vector<16x128xf32>
    %157 = arith.subf %135, %156 : vector<16x128xf32>
    %158 = vector.broadcast %155 : vector<16x1xf32> to vector<16x128xf32>
    %159 = arith.mulf %157, %158 : vector<16x128xf32>
    %160 = vector.broadcast %137 : vector<1x128xf32> to vector<16x128xf32>
    %161 = arith.mulf %159, %160 : vector<16x128xf32>
    %162 = vector.broadcast %139 : vector<1x128xf32> to vector<16x128xf32>
    %163 = arith.addf %161, %162 : vector<16x128xf32>
    %164 = arith.truncf %163 : vector<16x128xf32> to vector<16x128xbf16>
    %c0_65 = arith.constant 0 : index
    %c0_66 = arith.constant 0 : index
    %c0_67 = arith.constant 0 : index
    %165 = vector.load %arg13[%c0_65, %c0_66, %c0_67] : memref<2x128x256xbf16, #tpu.memory_space<vmem>>, vector<1x128x256xbf16>
    %166 = vector.shape_cast %165 : vector<1x128x256xbf16> to vector<128x256xbf16>
    %cst_68 = arith.constant dense<0.000000e+00> : vector<16x256xf32>
    %167 = tpu.matmul %164, %166, %cst_68 {dimension_numbers = #tpu.dot_dimension_numbers<[1], [0], [0], [1], [0, 0, 1, 1], [], []>} : vector<16x128xbf16>, vector<128x256xbf16>, vector<16x256xf32> -> vector<16x256xf32>
    %c0_69 = arith.constant 0 : index
    %c0_70 = arith.constant 0 : index
    %c0_71 = arith.constant 0 : index
    %168 = vector.load %arg14[%c0_69, %c0_70, %c0_71] : memref<2x1x256xf32, #tpu.memory_space<vmem>>, vector<1x1x256xf32>
    %169 = vector.shape_cast %168 : vector<1x1x256xf32> to vector<1x256xf32>
    %170 = vector.broadcast %169 : vector<1x256xf32> to vector<16x256xf32>
    %171 = arith.addf %167, %170 : vector<16x256xf32>
    %cst_72 = arith.constant 5.000000e-01 : f32
    %172 = vector.broadcast %cst_72 : f32 to vector<16x256xf32>
    %173 = arith.mulf %171, %172 : vector<16x256xf32>
    %cst_73 = arith.constant 1.41421354 : f32
    %174 = vector.broadcast %cst_73 : f32 to vector<16x256xf32>
    %175 = arith.divf %171, %174 : vector<16x256xf32>
    %176 = math.erf %175 : vector<16x256xf32>
    %cst_74 = arith.constant 1.000000e+00 : f32
    %177 = vector.broadcast %cst_74 : f32 to vector<16x256xf32>
    %178 = arith.addf %177, %176 : vector<16x256xf32>
    %179 = arith.mulf %173, %178 : vector<16x256xf32>
    %180 = arith.truncf %179 : vector<16x256xf32> to vector<16x256xbf16>
    %c0_75 = arith.constant 0 : index
    %c0_76 = arith.constant 0 : index
    %c0_77 = arith.constant 0 : index
    %181 = vector.load %arg15[%c0_75, %c0_76, %c0_77] : memref<2x256x128xbf16, #tpu.memory_space<vmem>>, vector<1x256x128xbf16>
    %182 = vector.shape_cast %181 : vector<1x256x128xbf16> to vector<256x128xbf16>
    %cst_78 = arith.constant dense<0.000000e+00> : vector<16x128xf32>
    %183 = tpu.matmul %180, %182, %cst_78 {dimension_numbers = #tpu.dot_dimension_numbers<[1], [0], [0], [1], [0, 0, 1, 1], [], []>} : vector<16x256xbf16>, vector<256x128xbf16>, vector<16x128xf32> -> vector<16x128xf32>
    %c0_79 = arith.constant 0 : index
    %c0_80 = arith.constant 0 : index
    %c0_81 = arith.constant 0 : index
    %184 = vector.load %arg16[%c0_79, %c0_80, %c0_81] : memref<2x1x128xf32, #tpu.memory_space<vmem>>, vector<1x1x128xf32>
    %185 = vector.shape_cast %184 : vector<1x1x128xf32> to vector<1x128xf32>
    %186 = vector.broadcast %185 : vector<1x128xf32> to vector<16x128xf32>
    %187 = arith.addf %183, %186 : vector<16x128xf32>
    %188 = arith.addf %187, %163 : vector<16x128xf32>
    %c0_82 = arith.constant 0 : index
    %c0_83 = arith.constant 0 : index
    %c0_84 = arith.constant 0 : index
    %189 = vector.load %arg17[%c0_82, %c0_83, %c0_84] : memref<2x1x128xf32, #tpu.memory_space<vmem>>, vector<1x1x128xf32>
    %190 = vector.shape_cast %189 : vector<1x1x128xf32> to vector<1x128xf32>
    %c0_85 = arith.constant 0 : index
    %c0_86 = arith.constant 0 : index
    %c0_87 = arith.constant 0 : index
    %191 = vector.load %arg18[%c0_85, %c0_86, %c0_87] : memref<2x1x128xf32, #tpu.memory_space<vmem>>, vector<1x1x128xf32>
    %192 = vector.shape_cast %191 : vector<1x1x128xf32> to vector<1x128xf32>
    %cst_88 = arith.constant dense<0.000000e+00> : vector<16xf32>
    %193 = vector.multi_reduction <add>, %188, %cst_88 [1] : vector<16x128xf32> to vector<16xf32>
    %194 = vector.shape_cast %193 : vector<16xf32> to vector<16x1xf32>
    %cst_89 = arith.constant 1.280000e+02 : f32
    %195 = vector.broadcast %cst_89 : f32 to vector<16x1xf32>
    %196 = arith.divf %194, %195 : vector<16x1xf32>
    %197 = arith.mulf %188, %188 : vector<16x128xf32>
    %cst_90 = arith.constant dense<0.000000e+00> : vector<16xf32>
    %198 = vector.multi_reduction <add>, %197, %cst_90 [1] : vector<16x128xf32> to vector<16xf32>
    %199 = vector.shape_cast %198 : vector<16xf32> to vector<16x1xf32>
    %cst_91 = arith.constant 1.280000e+02 : f32
    %200 = vector.broadcast %cst_91 : f32 to vector<16x1xf32>
    %201 = arith.divf %199, %200 : vector<16x1xf32>
    %202 = arith.mulf %196, %196 : vector<16x1xf32>
    %203 = arith.subf %201, %202 : vector<16x1xf32>
    %cst_92 = arith.constant 0.000000e+00 : f32
    %204 = vector.broadcast %cst_92 : f32 to vector<16x1xf32>
    %205 = arith.maximumf %203, %204 : vector<16x1xf32>
    %cst_93 = arith.constant 9.99999996E-13 : f32
    %206 = vector.broadcast %cst_93 : f32 to vector<16x1xf32>
    %207 = arith.addf %205, %206 : vector<16x1xf32>
    %208 = math.rsqrt %207 : vector<16x1xf32>
    %209 = vector.broadcast %196 : vector<16x1xf32> to vector<16x128xf32>
    %210 = arith.subf %188, %209 : vector<16x128xf32>
    %211 = vector.broadcast %208 : vector<16x1xf32> to vector<16x128xf32>
    %212 = arith.mulf %210, %211 : vector<16x128xf32>
    %213 = vector.broadcast %190 : vector<1x128xf32> to vector<16x128xf32>
    %214 = arith.mulf %212, %213 : vector<16x128xf32>
    %215 = vector.broadcast %192 : vector<1x128xf32> to vector<16x128xf32>
    %216 = arith.addf %214, %215 : vector<16x128xf32>
    %217 = arith.truncf %216 : vector<16x128xf32> to vector<16x128xbf16>
    %c1 = arith.constant 1 : index
    %c0_94 = arith.constant 0 : index
    %c0_95 = arith.constant 0 : index
    %218 = vector.load %arg7[%c1, %c0_94, %c0_95] : memref<2x128x384xbf16, #tpu.memory_space<vmem>>, vector<1x128x384xbf16>
    %219 = vector.shape_cast %218 : vector<1x128x384xbf16> to vector<128x384xbf16>
    %cst_96 = arith.constant dense<0.000000e+00> : vector<16x384xf32>
    %220 = tpu.matmul %217, %219, %cst_96 {dimension_numbers = #tpu.dot_dimension_numbers<[1], [0], [0], [1], [0, 0, 1, 1], [], []>} : vector<16x128xbf16>, vector<128x384xbf16>, vector<16x384xf32> -> vector<16x384xf32>
    %c1_97 = arith.constant 1 : index
    %c0_98 = arith.constant 0 : index
    %c0_99 = arith.constant 0 : index
    %221 = vector.load %arg8[%c1_97, %c0_98, %c0_99] : memref<2x1x384xf32, #tpu.memory_space<vmem>>, vector<1x1x384xf32>
    %222 = vector.shape_cast %221 : vector<1x1x384xf32> to vector<1x384xf32>
    %223 = vector.broadcast %222 : vector<1x384xf32> to vector<16x384xf32>
    %224 = arith.addf %220, %223 : vector<16x384xf32>
    %225 = vector.extract_strided_slice %224 {offsets = [0, 0], sizes = [16, 128], strides = [1, 1]} : vector<16x384xf32> to vector<16x128xf32>
    %226 = arith.truncf %225 : vector<16x128xf32> to vector<16x128xbf16>
    %227 = vector.extract_strided_slice %224 {offsets = [0, 128], sizes = [16, 128], strides = [1, 1]} : vector<16x384xf32> to vector<16x128xf32>
    %228 = arith.truncf %227 : vector<16x128xf32> to vector<16x128xbf16>
    %229 = vector.extract_strided_slice %224 {offsets = [0, 256], sizes = [16, 128], strides = [1, 1]} : vector<16x384xf32> to vector<16x128xf32>
    %230 = arith.truncf %229 : vector<16x128xf32> to vector<16x128xbf16>
    %231 = vector.extract_strided_slice %226 {offsets = [0, 0], sizes = [16, 32], strides = [1, 1]} : vector<16x128xbf16> to vector<16x32xbf16>
    %232 = vector.extract_strided_slice %228 {offsets = [0, 0], sizes = [16, 32], strides = [1, 1]} : vector<16x128xbf16> to vector<16x32xbf16>
    %233 = vector.extract_strided_slice %230 {offsets = [0, 0], sizes = [16, 32], strides = [1, 1]} : vector<16x128xbf16> to vector<16x32xbf16>
    %cst_100 = arith.constant dense<0.000000e+00> : vector<16x16xf32>
    %234 = tpu.matmul %231, %232, %cst_100 {dimension_numbers = #tpu.dot_dimension_numbers<[1], [1], [0], [0], [0, 0, 1, 0], [], []>} : vector<16x32xbf16>, vector<16x32xbf16>, vector<16x16xf32> -> vector<16x16xf32>
    %cst_101 = arith.constant 0.176776692 : f32
    %235 = vector.broadcast %cst_101 : f32 to vector<16x16xf32>
    %236 = arith.mulf %234, %235 : vector<16x16xf32>
    %237 = arith.addf %236, %35 : vector<16x16xf32>
    %cst_102 = arith.constant dense<0xFF800000> : vector<16xf32>
    %238 = vector.multi_reduction <maximumf>, %237, %cst_102 [1] : vector<16x16xf32> to vector<16xf32>
    %239 = vector.shape_cast %238 : vector<16xf32> to vector<16x1xf32>
    %240 = vector.broadcast %239 : vector<16x1xf32> to vector<16x16xf32>
    %241 = arith.subf %237, %240 : vector<16x16xf32>
    %242 = math.exp %241 : vector<16x16xf32>
    %cst_103 = arith.constant dense<0.000000e+00> : vector<16xf32>
    %243 = vector.multi_reduction <add>, %242, %cst_103 [1] : vector<16x16xf32> to vector<16xf32>
    %244 = vector.shape_cast %243 : vector<16xf32> to vector<16x1xf32>
    %245 = tpu.reciprocal %244 {approx = true} : vector<16x1xf32> -> vector<16x1xf32>
    %246 = vector.broadcast %245 : vector<16x1xf32> to vector<16x16xf32>
    %247 = arith.mulf %242, %246 : vector<16x16xf32>
    %248 = arith.truncf %247 : vector<16x16xf32> to vector<16x16xbf16>
    %cst_104 = arith.constant dense<0.000000e+00> : vector<16x32xf32>
    %249 = tpu.matmul %248, %233, %cst_104 {dimension_numbers = #tpu.dot_dimension_numbers<[1], [0], [0], [1], [0, 0, 1, 1], [], []>} : vector<16x16xbf16>, vector<16x32xbf16>, vector<16x32xf32> -> vector<16x32xf32>
    %250 = vector.extract_strided_slice %226 {offsets = [0, 32], sizes = [16, 32], strides = [1, 1]} : vector<16x128xbf16> to vector<16x32xbf16>
    %251 = vector.extract_strided_slice %228 {offsets = [0, 32], sizes = [16, 32], strides = [1, 1]} : vector<16x128xbf16> to vector<16x32xbf16>
    %252 = vector.extract_strided_slice %230 {offsets = [0, 32], sizes = [16, 32], strides = [1, 1]} : vector<16x128xbf16> to vector<16x32xbf16>
    %cst_105 = arith.constant dense<0.000000e+00> : vector<16x16xf32>
    %253 = tpu.matmul %250, %251, %cst_105 {dimension_numbers = #tpu.dot_dimension_numbers<[1], [1], [0], [0], [0, 0, 1, 0], [], []>} : vector<16x32xbf16>, vector<16x32xbf16>, vector<16x16xf32> -> vector<16x16xf32>
    %cst_106 = arith.constant 0.176776692 : f32
    %254 = vector.broadcast %cst_106 : f32 to vector<16x16xf32>
    %255 = arith.mulf %253, %254 : vector<16x16xf32>
    %256 = arith.addf %255, %35 : vector<16x16xf32>
    %cst_107 = arith.constant dense<0xFF800000> : vector<16xf32>
    %257 = vector.multi_reduction <maximumf>, %256, %cst_107 [1] : vector<16x16xf32> to vector<16xf32>
    %258 = vector.shape_cast %257 : vector<16xf32> to vector<16x1xf32>
    %259 = vector.broadcast %258 : vector<16x1xf32> to vector<16x16xf32>
    %260 = arith.subf %256, %259 : vector<16x16xf32>
    %261 = math.exp %260 : vector<16x16xf32>
    %cst_108 = arith.constant dense<0.000000e+00> : vector<16xf32>
    %262 = vector.multi_reduction <add>, %261, %cst_108 [1] : vector<16x16xf32> to vector<16xf32>
    %263 = vector.shape_cast %262 : vector<16xf32> to vector<16x1xf32>
    %264 = tpu.reciprocal %263 {approx = true} : vector<16x1xf32> -> vector<16x1xf32>
    %265 = vector.broadcast %264 : vector<16x1xf32> to vector<16x16xf32>
    %266 = arith.mulf %261, %265 : vector<16x16xf32>
    %267 = arith.truncf %266 : vector<16x16xf32> to vector<16x16xbf16>
    %cst_109 = arith.constant dense<0.000000e+00> : vector<16x32xf32>
    %268 = tpu.matmul %267, %252, %cst_109 {dimension_numbers = #tpu.dot_dimension_numbers<[1], [0], [0], [1], [0, 0, 1, 1], [], []>} : vector<16x16xbf16>, vector<16x32xbf16>, vector<16x32xf32> -> vector<16x32xf32>
    %269 = vector.extract_strided_slice %226 {offsets = [0, 64], sizes = [16, 32], strides = [1, 1]} : vector<16x128xbf16> to vector<16x32xbf16>
    %270 = vector.extract_strided_slice %228 {offsets = [0, 64], sizes = [16, 32], strides = [1, 1]} : vector<16x128xbf16> to vector<16x32xbf16>
    %271 = vector.extract_strided_slice %230 {offsets = [0, 64], sizes = [16, 32], strides = [1, 1]} : vector<16x128xbf16> to vector<16x32xbf16>
    %cst_110 = arith.constant dense<0.000000e+00> : vector<16x16xf32>
    %272 = tpu.matmul %269, %270, %cst_110 {dimension_numbers = #tpu.dot_dimension_numbers<[1], [1], [0], [0], [0, 0, 1, 0], [], []>} : vector<16x32xbf16>, vector<16x32xbf16>, vector<16x16xf32> -> vector<16x16xf32>
    %cst_111 = arith.constant 0.176776692 : f32
    %273 = vector.broadcast %cst_111 : f32 to vector<16x16xf32>
    %274 = arith.mulf %272, %273 : vector<16x16xf32>
    %275 = arith.addf %274, %35 : vector<16x16xf32>
    %cst_112 = arith.constant dense<0xFF800000> : vector<16xf32>
    %276 = vector.multi_reduction <maximumf>, %275, %cst_112 [1] : vector<16x16xf32> to vector<16xf32>
    %277 = vector.shape_cast %276 : vector<16xf32> to vector<16x1xf32>
    %278 = vector.broadcast %277 : vector<16x1xf32> to vector<16x16xf32>
    %279 = arith.subf %275, %278 : vector<16x16xf32>
    %280 = math.exp %279 : vector<16x16xf32>
    %cst_113 = arith.constant dense<0.000000e+00> : vector<16xf32>
    %281 = vector.multi_reduction <add>, %280, %cst_113 [1] : vector<16x16xf32> to vector<16xf32>
    %282 = vector.shape_cast %281 : vector<16xf32> to vector<16x1xf32>
    %283 = tpu.reciprocal %282 {approx = true} : vector<16x1xf32> -> vector<16x1xf32>
    %284 = vector.broadcast %283 : vector<16x1xf32> to vector<16x16xf32>
    %285 = arith.mulf %280, %284 : vector<16x16xf32>
    %286 = arith.truncf %285 : vector<16x16xf32> to vector<16x16xbf16>
    %cst_114 = arith.constant dense<0.000000e+00> : vector<16x32xf32>
    %287 = tpu.matmul %286, %271, %cst_114 {dimension_numbers = #tpu.dot_dimension_numbers<[1], [0], [0], [1], [0, 0, 1, 1], [], []>} : vector<16x16xbf16>, vector<16x32xbf16>, vector<16x32xf32> -> vector<16x32xf32>
    %288 = vector.extract_strided_slice %226 {offsets = [0, 96], sizes = [16, 32], strides = [1, 1]} : vector<16x128xbf16> to vector<16x32xbf16>
    %289 = vector.extract_strided_slice %228 {offsets = [0, 96], sizes = [16, 32], strides = [1, 1]} : vector<16x128xbf16> to vector<16x32xbf16>
    %290 = vector.extract_strided_slice %230 {offsets = [0, 96], sizes = [16, 32], strides = [1, 1]} : vector<16x128xbf16> to vector<16x32xbf16>
    %cst_115 = arith.constant dense<0.000000e+00> : vector<16x16xf32>
    %291 = tpu.matmul %288, %289, %cst_115 {dimension_numbers = #tpu.dot_dimension_numbers<[1], [1], [0], [0], [0, 0, 1, 0], [], []>} : vector<16x32xbf16>, vector<16x32xbf16>, vector<16x16xf32> -> vector<16x16xf32>
    %cst_116 = arith.constant 0.176776692 : f32
    %292 = vector.broadcast %cst_116 : f32 to vector<16x16xf32>
    %293 = arith.mulf %291, %292 : vector<16x16xf32>
    %294 = arith.addf %293, %35 : vector<16x16xf32>
    %cst_117 = arith.constant dense<0xFF800000> : vector<16xf32>
    %295 = vector.multi_reduction <maximumf>, %294, %cst_117 [1] : vector<16x16xf32> to vector<16xf32>
    %296 = vector.shape_cast %295 : vector<16xf32> to vector<16x1xf32>
    %297 = vector.broadcast %296 : vector<16x1xf32> to vector<16x16xf32>
    %298 = arith.subf %294, %297 : vector<16x16xf32>
    %299 = math.exp %298 : vector<16x16xf32>
    %cst_118 = arith.constant dense<0.000000e+00> : vector<16xf32>
    %300 = vector.multi_reduction <add>, %299, %cst_118 [1] : vector<16x16xf32> to vector<16xf32>
    %301 = vector.shape_cast %300 : vector<16xf32> to vector<16x1xf32>
    %302 = tpu.reciprocal %301 {approx = true} : vector<16x1xf32> -> vector<16x1xf32>
    %303 = vector.broadcast %302 : vector<16x1xf32> to vector<16x16xf32>
    %304 = arith.mulf %299, %303 : vector<16x16xf32>
    %305 = arith.truncf %304 : vector<16x16xf32> to vector<16x16xbf16>
    %cst_119 = arith.constant dense<0.000000e+00> : vector<16x32xf32>
    %306 = tpu.matmul %305, %290, %cst_119 {dimension_numbers = #tpu.dot_dimension_numbers<[1], [0], [0], [1], [0, 0, 1, 1], [], []>} : vector<16x16xbf16>, vector<16x32xbf16>, vector<16x32xf32> -> vector<16x32xf32>
    %307 = tpu.concatenate %249, %268, %287, %306 in 1 : vector<16x32xf32>, vector<16x32xf32>, vector<16x32xf32>, vector<16x32xf32> -> vector<16x128xf32>
    %308 = arith.truncf %307 : vector<16x128xf32> to vector<16x128xbf16>
    %c1_120 = arith.constant 1 : index
    %c0_121 = arith.constant 0 : index
    %c0_122 = arith.constant 0 : index
    %309 = vector.load %arg9[%c1_120, %c0_121, %c0_122] : memref<2x128x128xbf16, #tpu.memory_space<vmem>>, vector<1x128x128xbf16>
    %310 = vector.shape_cast %309 : vector<1x128x128xbf16> to vector<128x128xbf16>
    %cst_123 = arith.constant dense<0.000000e+00> : vector<16x128xf32>
    %311 = tpu.matmul %308, %310, %cst_123 {dimension_numbers = #tpu.dot_dimension_numbers<[1], [0], [0], [1], [0, 0, 1, 1], [], []>} : vector<16x128xbf16>, vector<128x128xbf16>, vector<16x128xf32> -> vector<16x128xf32>
    %c1_124 = arith.constant 1 : index
    %c0_125 = arith.constant 0 : index
    %c0_126 = arith.constant 0 : index
    %312 = vector.load %arg10[%c1_124, %c0_125, %c0_126] : memref<2x1x128xf32, #tpu.memory_space<vmem>>, vector<1x1x128xf32>
    %313 = vector.shape_cast %312 : vector<1x1x128xf32> to vector<1x128xf32>
    %314 = vector.broadcast %313 : vector<1x128xf32> to vector<16x128xf32>
    %315 = arith.addf %311, %314 : vector<16x128xf32>
    %316 = arith.addf %315, %216 : vector<16x128xf32>
    %c1_127 = arith.constant 1 : index
    %c0_128 = arith.constant 0 : index
    %c0_129 = arith.constant 0 : index
    %317 = vector.load %arg11[%c1_127, %c0_128, %c0_129] : memref<2x1x128xf32, #tpu.memory_space<vmem>>, vector<1x1x128xf32>
    %318 = vector.shape_cast %317 : vector<1x1x128xf32> to vector<1x128xf32>
    %c1_130 = arith.constant 1 : index
    %c0_131 = arith.constant 0 : index
    %c0_132 = arith.constant 0 : index
    %319 = vector.load %arg12[%c1_130, %c0_131, %c0_132] : memref<2x1x128xf32, #tpu.memory_space<vmem>>, vector<1x1x128xf32>
    %320 = vector.shape_cast %319 : vector<1x1x128xf32> to vector<1x128xf32>
    %cst_133 = arith.constant dense<0.000000e+00> : vector<16xf32>
    %321 = vector.multi_reduction <add>, %316, %cst_133 [1] : vector<16x128xf32> to vector<16xf32>
    %322 = vector.shape_cast %321 : vector<16xf32> to vector<16x1xf32>
    %cst_134 = arith.constant 1.280000e+02 : f32
    %323 = vector.broadcast %cst_134 : f32 to vector<16x1xf32>
    %324 = arith.divf %322, %323 : vector<16x1xf32>
    %325 = arith.mulf %316, %316 : vector<16x128xf32>
    %cst_135 = arith.constant dense<0.000000e+00> : vector<16xf32>
    %326 = vector.multi_reduction <add>, %325, %cst_135 [1] : vector<16x128xf32> to vector<16xf32>
    %327 = vector.shape_cast %326 : vector<16xf32> to vector<16x1xf32>
    %cst_136 = arith.constant 1.280000e+02 : f32
    %328 = vector.broadcast %cst_136 : f32 to vector<16x1xf32>
    %329 = arith.divf %327, %328 : vector<16x1xf32>
    %330 = arith.mulf %324, %324 : vector<16x1xf32>
    %331 = arith.subf %329, %330 : vector<16x1xf32>
    %cst_137 = arith.constant 0.000000e+00 : f32
    %332 = vector.broadcast %cst_137 : f32 to vector<16x1xf32>
    %333 = arith.maximumf %331, %332 : vector<16x1xf32>
    %cst_138 = arith.constant 9.99999996E-13 : f32
    %334 = vector.broadcast %cst_138 : f32 to vector<16x1xf32>
    %335 = arith.addf %333, %334 : vector<16x1xf32>
    %336 = math.rsqrt %335 : vector<16x1xf32>
    %337 = vector.broadcast %324 : vector<16x1xf32> to vector<16x128xf32>
    %338 = arith.subf %316, %337 : vector<16x128xf32>
    %339 = vector.broadcast %336 : vector<16x1xf32> to vector<16x128xf32>
    %340 = arith.mulf %338, %339 : vector<16x128xf32>
    %341 = vector.broadcast %318 : vector<1x128xf32> to vector<16x128xf32>
    %342 = arith.mulf %340, %341 : vector<16x128xf32>
    %343 = vector.broadcast %320 : vector<1x128xf32> to vector<16x128xf32>
    %344 = arith.addf %342, %343 : vector<16x128xf32>
    %345 = arith.truncf %344 : vector<16x128xf32> to vector<16x128xbf16>
    %c1_139 = arith.constant 1 : index
    %c0_140 = arith.constant 0 : index
    %c0_141 = arith.constant 0 : index
    %346 = vector.load %arg13[%c1_139, %c0_140, %c0_141] : memref<2x128x256xbf16, #tpu.memory_space<vmem>>, vector<1x128x256xbf16>
    %347 = vector.shape_cast %346 : vector<1x128x256xbf16> to vector<128x256xbf16>
    %cst_142 = arith.constant dense<0.000000e+00> : vector<16x256xf32>
    %348 = tpu.matmul %345, %347, %cst_142 {dimension_numbers = #tpu.dot_dimension_numbers<[1], [0], [0], [1], [0, 0, 1, 1], [], []>} : vector<16x128xbf16>, vector<128x256xbf16>, vector<16x256xf32> -> vector<16x256xf32>
    %c1_143 = arith.constant 1 : index
    %c0_144 = arith.constant 0 : index
    %c0_145 = arith.constant 0 : index
    %349 = vector.load %arg14[%c1_143, %c0_144, %c0_145] : memref<2x1x256xf32, #tpu.memory_space<vmem>>, vector<1x1x256xf32>
    %350 = vector.shape_cast %349 : vector<1x1x256xf32> to vector<1x256xf32>
    %351 = vector.broadcast %350 : vector<1x256xf32> to vector<16x256xf32>
    %352 = arith.addf %348, %351 : vector<16x256xf32>
    %cst_146 = arith.constant 5.000000e-01 : f32
    %353 = vector.broadcast %cst_146 : f32 to vector<16x256xf32>
    %354 = arith.mulf %352, %353 : vector<16x256xf32>
    %cst_147 = arith.constant 1.41421354 : f32
    %355 = vector.broadcast %cst_147 : f32 to vector<16x256xf32>
    %356 = arith.divf %352, %355 : vector<16x256xf32>
    %357 = math.erf %356 : vector<16x256xf32>
    %cst_148 = arith.constant 1.000000e+00 : f32
    %358 = vector.broadcast %cst_148 : f32 to vector<16x256xf32>
    %359 = arith.addf %358, %357 : vector<16x256xf32>
    %360 = arith.mulf %354, %359 : vector<16x256xf32>
    %361 = arith.truncf %360 : vector<16x256xf32> to vector<16x256xbf16>
    %c1_149 = arith.constant 1 : index
    %c0_150 = arith.constant 0 : index
    %c0_151 = arith.constant 0 : index
    %362 = vector.load %arg15[%c1_149, %c0_150, %c0_151] : memref<2x256x128xbf16, #tpu.memory_space<vmem>>, vector<1x256x128xbf16>
    %363 = vector.shape_cast %362 : vector<1x256x128xbf16> to vector<256x128xbf16>
    %cst_152 = arith.constant dense<0.000000e+00> : vector<16x128xf32>
    %364 = tpu.matmul %361, %363, %cst_152 {dimension_numbers = #tpu.dot_dimension_numbers<[1], [0], [0], [1], [0, 0, 1, 1], [], []>} : vector<16x256xbf16>, vector<256x128xbf16>, vector<16x128xf32> -> vector<16x128xf32>
    %c1_153 = arith.constant 1 : index
    %c0_154 = arith.constant 0 : index
    %c0_155 = arith.constant 0 : index
    %365 = vector.load %arg16[%c1_153, %c0_154, %c0_155] : memref<2x1x128xf32, #tpu.memory_space<vmem>>, vector<1x1x128xf32>
    %366 = vector.shape_cast %365 : vector<1x1x128xf32> to vector<1x128xf32>
    %367 = vector.broadcast %366 : vector<1x128xf32> to vector<16x128xf32>
    %368 = arith.addf %364, %367 : vector<16x128xf32>
    %369 = arith.addf %368, %344 : vector<16x128xf32>
    %c1_156 = arith.constant 1 : index
    %c0_157 = arith.constant 0 : index
    %c0_158 = arith.constant 0 : index
    %370 = vector.load %arg17[%c1_156, %c0_157, %c0_158] : memref<2x1x128xf32, #tpu.memory_space<vmem>>, vector<1x1x128xf32>
    %371 = vector.shape_cast %370 : vector<1x1x128xf32> to vector<1x128xf32>
    %c1_159 = arith.constant 1 : index
    %c0_160 = arith.constant 0 : index
    %c0_161 = arith.constant 0 : index
    %372 = vector.load %arg18[%c1_159, %c0_160, %c0_161] : memref<2x1x128xf32, #tpu.memory_space<vmem>>, vector<1x1x128xf32>
    %373 = vector.shape_cast %372 : vector<1x1x128xf32> to vector<1x128xf32>
    %cst_162 = arith.constant dense<0.000000e+00> : vector<16xf32>
    %374 = vector.multi_reduction <add>, %369, %cst_162 [1] : vector<16x128xf32> to vector<16xf32>
    %375 = vector.shape_cast %374 : vector<16xf32> to vector<16x1xf32>
    %cst_163 = arith.constant 1.280000e+02 : f32
    %376 = vector.broadcast %cst_163 : f32 to vector<16x1xf32>
    %377 = arith.divf %375, %376 : vector<16x1xf32>
    %378 = arith.mulf %369, %369 : vector<16x128xf32>
    %cst_164 = arith.constant dense<0.000000e+00> : vector<16xf32>
    %379 = vector.multi_reduction <add>, %378, %cst_164 [1] : vector<16x128xf32> to vector<16xf32>
    %380 = vector.shape_cast %379 : vector<16xf32> to vector<16x1xf32>
    %cst_165 = arith.constant 1.280000e+02 : f32
    %381 = vector.broadcast %cst_165 : f32 to vector<16x1xf32>
    %382 = arith.divf %380, %381 : vector<16x1xf32>
    %383 = arith.mulf %377, %377 : vector<16x1xf32>
    %384 = arith.subf %382, %383 : vector<16x1xf32>
    %cst_166 = arith.constant 0.000000e+00 : f32
    %385 = vector.broadcast %cst_166 : f32 to vector<16x1xf32>
    %386 = arith.maximumf %384, %385 : vector<16x1xf32>
    %cst_167 = arith.constant 9.99999996E-13 : f32
    %387 = vector.broadcast %cst_167 : f32 to vector<16x1xf32>
    %388 = arith.addf %386, %387 : vector<16x1xf32>
    %389 = math.rsqrt %388 : vector<16x1xf32>
    %390 = vector.broadcast %377 : vector<16x1xf32> to vector<16x128xf32>
    %391 = arith.subf %369, %390 : vector<16x128xf32>
    %392 = vector.broadcast %389 : vector<16x1xf32> to vector<16x128xf32>
    %393 = arith.mulf %391, %392 : vector<16x128xf32>
    %394 = vector.broadcast %371 : vector<1x128xf32> to vector<16x128xf32>
    %395 = arith.mulf %393, %394 : vector<16x128xf32>
    %396 = vector.broadcast %373 : vector<1x128xf32> to vector<16x128xf32>
    %397 = arith.addf %395, %396 : vector<16x128xf32>
    %c0_168 = arith.constant 0 : index
    %c0_169 = arith.constant 0 : index
    %398 = vector.load %arg19[%c0_168, %c0_169] : memref<16x128xf32, #tpu.memory_space<vmem>>, vector<16x128xf32>
    tpu.vector_store %arg19[%c0_168, %c0_169], %397 {strides = array<i32>} : memref<16x128xf32, #tpu.memory_space<vmem>>, vector<16x128xf32>,
    return
  }
}

</mosaic_0001>

<bundles_post_ra>
// kernel: _lambda_.1
= control target key start
LH: loop header
LB: loop body
LE: loop exit
PB: predicated region body
PF: predicated region fallthrough
CT: control target
= control target key end

     0   :  { %s4432_s0 = inlined_call_operand.vmem [shape: f32[16,128], index: 0, kind: input, shape index: {}]   ;;  %s4433_s1 = inlined_call_operand.vmem [shape: f32[16,128], index: 1, kind: input, shape index: {}]   ;;  %s4434_s2 = inlined_call_operand.vmem [shape: f32[16,16], index: 2, kind: input, shape index: {}]   ;;  %s4435_s3 = inlined_call_operand.vmem [shape: bf16[128,128], index: 3, kind: input, shape index: {}]   ;;  %s4436_s4 = inlined_call_operand.vmem [shape: f32[1,128], index: 4, kind: input, shape index: {}]   ;;  %s4437_s5 = inlined_call_operand.vmem [shape: f32[1,128], index: 5, kind: input, shape index: {}]   ;;  %s4438_s6 = inlined_call_operand.vmem [shape: f32[1,128], index: 6, kind: input, shape index: {}]   ;;  %s4439_s7 = inlined_call_operand.hbm [shape: bf16[2,128,384], index: 7, kind: input, shape index: {}]   ;;  %s4440_s8 = inlined_call_operand.vmem [shape: f32[2,1,384], index: 8, kind: input, shape index: {}]   ;;  %s4441_s9 = inlined_call_operand.vmem [shape: bf16[2,128,128], index: 9, kind: input, shape index: {}]   ;;  %s4442_s10 = inlined_call_operand.vmem [shape: f32[2,1,128], index: 10, kind: input, shape index: {}]   ;;  %s4443_s11 = inlined_call_operand.vmem [shape: f32[2,1,128], index: 11, kind: input, shape index: {}, may-alias: {11,17}]   ;;  %s4444_s12 = inlined_call_operand.vmem [shape: f32[2,1,128], index: 12, kind: input, shape index: {}, may-alias: {12,18}]   ;;  %s4445_s13 = inlined_call_operand.hbm [shape: bf16[2,128,256], index: 13, kind: input, shape index: {}]   ;;  %s4446_s14 = inlined_call_operand.vmem [shape: f32[2,1,256], index: 14, kind: input, shape index: {}]   ;;  %s4447_s15 = inlined_call_operand.hbm [shape: bf16[2,256,128], index: 15, kind: input, shape index: {}]   ;;  %s4448_s16 = inlined_call_operand.vmem [shape: f32[2,1,128], index: 16, kind: input, shape index: {}]   ;;  %s4449_s17 = inlined_call_operand.vmem [shape: f32[2,1,128], index: 17, kind: input, shape index: {}, may-alias: {11,17}]   ;;  %s4450_s18 = inlined_call_operand.vmem [shape: f32[2,1,128], index: 18, kind: input, shape index: {}, may-alias: {12,18}]   ;;  %s4451_s19 = inlined_call_operand.vmem [shape: f32[16,128], index: 19, kind: output, shape index: {}]  }
   0x1   :  { %4456 = sst [smem:[#allocation9_spill]] %s4432_s0 }
   0x2   :  { %4457 = sst [smem:[#allocation10_spill]] %s4433_s1 }
   0x3   :  { %4458 = sst [smem:[#allocation11_spill]] %s4434_s2 }
   0x4   :  { %4459 = sst [smem:[#allocation12_spill]] %s4435_s3 }
   0x5   :  { %24 = vsyncpa [#allocation3], 0 }
   0x6   :  { %25 = vsyncpa [#allocation5], 0  ;;  %s67_s20 = sshll.u32 %s4445_s13, 4  ;;  %s3689_s21 = smov [#allocation4]   ;;  %s68_s20 = int_to_ptr.hbm [resolvable:$true] %s67_s20 }
   0x7   :  { %s69_s1 = sshll.u32 %s3689_s21, 4  ;;  %s44_s23 = sshll.u32 %s4439_s7, 4  ;;  %s70_s1 = int_to_ptr.vmem [resolvable:$true] %s69_s1  ;;  %s45_s23 = int_to_ptr.hbm [resolvable:$true] %s44_s23 }
   0x8   :  { %s3690_s24 = smov 128   ;;  %s3691_s25 = smov 8  }
   0x9   :  { %75 = dma.hbm_to_vmem [thread:$0]  %s68_s20, 4096, %s70_s1, [#allocation5], %s3690_s24, %s3690_s24, %s3691_s25  }
   0xa   :  { %s3692_s3 = smov [#allocation2]   ;;  %s3693_s27 = smov 192  }
   0xb   :  { %s46_s26 = sshll.u32 %s3692_s3, 4  ;;  %s3694_s28 = smov 12   ;;  %s47_s26 = int_to_ptr.vmem [resolvable:$true] %s46_s26 }
   0xc   :  { %52 = dma.hbm_to_vmem [thread:$0]  %s45_s23, 6144, %s47_s26, [#allocation3], %s3693_s27, %s3693_s27, %s3694_s28  }
   0xd   :  { %s82_s0 = sshll.u32 %s4447_s15, 4  ;;  %s3695_s30 = smov [#allocation6]   ;;  %s83_s0 = int_to_ptr.hbm [resolvable:$true] %s82_s0 }
   0xe   :  { %s84_s21 = sshll.u32 %s3695_s30, 4  ;;  %s3696_s22 = smov 64   ;;  %s85_s21 = int_to_ptr.vmem [resolvable:$true] %s84_s21 }
   0xf   :  { %s3697_s7 = smov 4  }
  0x10   :  { %90 = dma.hbm_to_vmem [thread:$0]  %s83_s0, 4096, %s85_s21, [#allocation5], %s3696_s22, %s3696_s22, %s3697_s7  }
  0x11   :  { %3685 = dma.done.wait [#allocation3], 6144  }
  0x12   :  { %3686 = vsyncadd [#allocation3], 4294961152 }
  0x13   :  { %3687 = dma.done.wait [#allocation5], 8192  }
  0x14   :  { %3688 = vsyncadd [#allocation5], 4294959104  ;;  %s4460_s2 = sld [smem:[#allocation12_spill]]  ;;  %v3492_v11 = vld [vmem:[%s4436_s4] ss:$0 sm:$0xff]  ;;  %v3698_v22 = vmov 128.0  }
  0x15   :  { %s4461_s23 = sld [smem:[#allocation9_spill]]  ;;  %3507 = vrcp.f32 %v3698_v22  ;;  %v2839_v24 = vld [vmem:[#allocation2 + $0xa8] sm:$0xf]  ;;  %v3343_v25 = vld [vmem:[#allocation2 + $0xb0] sm:$0xf0]  ;;  %vm493_vm7 = vcmask 261120  }
  0x16   :  { %s4462_s28 = sld [smem:[#allocation10_spill]]  ;;  %v3342_v26 = vld [vmem:[#allocation2 + $0xac] sm:$0xf]  ;;  %v2840_v27 = vor.u32 %v3343_v25, %v2839_v24  ;;  %v2841_v28 = vld [vmem:[#allocation2 + $0xb4] sm:$0xf0]  ;;  %s3700_s7 = smov 96  }
  0x17   :  { %v2847_v29 = vld [vmem:[#allocation2 + $0xb0] sm:$0xf]  ;;  %v3344_v30 = vld [vmem:[#allocation2 + $0xb8] sm:$0xf0]  ;;  %v2844_v32 = vor.u32 %v3342_v26, %v2841_v28  ;;  %v3339_v36 = vld [vmem:[#allocation2 + $0x94] sm:$0xf] }
  0x18   :  { %v2848_v33 = vor.u32 %v3344_v30, %v2847_v29  ;;  %435 = vmatpush.bf16.msra.mxu1 %v2840_v27  ;;  %v2827_v34 = vld [vmem:[#allocation2 + $0x90] sm:$0xf]  ;;  %v3340_v35 = vld [vmem:[#allocation2 + $0x98] sm:$0xf0]  ;;  %v2829_v38 = vld [vmem:[#allocation2 + $0x9c] sm:$0xf0] }
  0x19   :  { %449 = vmatpush.bf16.msra.mxu2 %v2844_v32  ;;  %v2828_v37 = vor.u32 %v3340_v35, %v2827_v34  ;;  %v2835_v39 = vld [vmem:[#allocation2 + $0x98] sm:$0xf]  ;;  %v3341_v40 = vld [vmem:[#allocation2 + $0xa0] sm:$0xf0]  ;;  %v2832_v42 = vor.u32 %v3339_v36, %v2829_v38  ;;  %v3336_v46 = vld [vmem:[#allocation2 + $0x7c] sm:$0xf] }
  0x1a   :  { %v3320_v0 = vld [vmem:[%s4460_s2 + $0x38] sm:$0xff]  ;;  %v3319_v1 = vld [vmem:[%s4460_s2 + $0x30] sm:$0xff]  ;;  %v3318_v2 = vld [vmem:[%s4460_s2 + $0x28] sm:$0xff]  ;;  %463 = vmatpush.bf16.msra.mxu3 %v2848_v33  ;;  %v2836_v43 = vor.u32 %v3341_v40, %v2835_v39  ;;  %vm518_vm8 = vcmask 130048   ;;  %vm804_vm9 = vcmask 523264   ;;  %vm807_vm10 = vcmask 785408  }
  0x1b   :  { %181 = vmatpush.bf16.msra.mxu0 %v3320_v0  ;;  %v3317_v3 = vld [vmem:[%s4460_s2 + $0x20] sm:$0xff]  ;;  %v3316_v4 = vld [vmem:[%s4460_s2 + $0x18] sm:$0xff]  ;;  %v3315_v5 = vld [vmem:[%s4460_s2 + $0x10] sm:$0xff]  ;;  %v3508_v23 = vpop.eup %3507 }
  0x1c   :  { %v3314_v6 = vld [vmem:[%s4460_s2 + $0x8] sm:$0xff]  ;;  %v3313_v7 = vld [vmem:[%s4460_s2] sm:$0xff]  ;;  %v206_v31 = vmul.f32 128.0, %v3508_v23  ;;  %436 = vmatpush.bf16.msra.mxu1 %v2828_v37  ;;  %v2815_v44 = vld [vmem:[#allocation2 + $0x78] sm:$0xf]  ;;  %vm210_vm0 = vweird.f32 %v3508_v23 }
  0x1d   :  { %v110_v8 = vld [vmem:[%s4461_s23] sm:$0xff]  ;;  %v111_v9 = vld [vmem:[%s4461_s23 + $0x8] sm:$0xff]  ;;  %450 = vmatpush.bf16.msra.mxu2 %v2832_v42  ;;  %v2805_v58 = vld [vmem:[#allocation2 + $0x6c] sm:$0xf0]  ;;  %s4463_s23 = sld [smem:[#allocation11_spill]] }
  0x1e   :  { %v112_v10 = vpack.c.bf16 %v111_v9, %v110_v8  ;;  %v195_v13 = vld [vmem:[%s4462_s28] sm:$0xff]  ;;  %v196_v18 = vld [vmem:[%s4462_s28 + $0x8] sm:$0xff]  ;;  %v207_v41 = vsub.f32 1.0, %v206_v31  ;;  %464 = vmatpush.bf16.msra.mxu3 %v2836_v43  ;;  %v3335_v60 = vld [vmem:[#allocation2 + $0x70] sm:$0xf0] }
  0x1f   :  { %182 = vmatpush.bf16.msra.mxu0 %v3319_v1  ;;  %v3337_v45 = vld [vmem:[#allocation2 + $0x80] sm:$0xf0]  ;;  %v2817_v48 = vld [vmem:[#allocation2 + $0x84] sm:$0xf0]  ;;  %v2823_v49 = vld [vmem:[#allocation2 + $0x80] sm:$0xf] }
  0x20   :  { %v2816_v47 = vor.u32 %v3337_v45, %v2815_v44  ;;  %v3338_v50 = vld [vmem:[#allocation2 + $0x88] sm:$0xf0]  ;;  %v208_v51 = vmul.f32 %v3508_v23, %v207_v41  ;;  %v2820_v52 = vor.u32 %v3336_v46, %v2817_v48  ;;  %v2803_v54 = vld [vmem:[#allocation2 + $0x60] sm:$0xf]  ;;  %v3333_v56 = vld [vmem:[#allocation2 + $0x64] sm:$0xf] }
  0x21   :  { %v2824_v53 = vor.u32 %v3338_v50, %v2823_v49  ;;  %v3334_v55 = vld [vmem:[#allocation2 + $0x68] sm:$0xf0]  ;;  %v2811_v59 = vld [vmem:[#allocation2 + $0x68] sm:$0xf]  ;;  %v2808_v62 = vor.u32 %v3333_v56, %v2805_v58  ;;  %v3331_v1 = vld [vmem:[#allocation2 + $0x50] sm:$0xf0] }
  0x22   :  { %437 = vmatpush.bf16.msra.mxu1 %v2816_v47  ;;  %451 = vmatpush.bf16.msra.mxu2 %v2820_v52  ;;  %v2804_v57 = vor.u32 %v3334_v55, %v2803_v54  ;;  %v209_v61 = vadd.f32 %v3508_v23, %v208_v51  ;;  %v2812_v63 = vor.u32 %v3335_v60, %v2811_v59  ;;  %v2791_v0 = vld [vmem:[#allocation2 + $0x48] sm:$0xf]  ;;  %v2767_v26 = vld [vmem:[#allocation2 + $0x18] sm:$0xf]  ;;  %v3325_v27 = vld [vmem:[#allocation2 + $0x20] sm:$0xf0] }
  0x23   :  { %183 = vmatpush.bf16.msra.mxu0 %v3318_v2  ;;  %465 = vmatpush.bf16.msra.mxu3 %v2824_v53  ;;  %v3330_v2 = vld [vmem:[#allocation2 + $0x4c] sm:$0xf]  ;;  %v3324_v28 = vld [vmem:[#allocation2 + $0x1c] sm:$0xf]  ;;  %v2768_v29 = vor.u32 %v3325_v27, %v2767_v26  ;;  %v2769_v30 = vld [vmem:[#allocation2 + $0x24] sm:$0xf0] }
  0x24   :  { %v2775_v31 = vld [vmem:[#allocation2 + $0x20] sm:$0xf]  ;;  %v3326_v32 = vld [vmem:[#allocation2 + $0x28] sm:$0xf0]  ;;  %v2772_v34 = vor.u32 %v3324_v28, %v2769_v30  ;;  %v3321_v38 = vld [vmem:[#allocation2 + $0x4] sm:$0xf] }
  0x25   :  { %v2776_v35 = vor.u32 %v3326_v32, %v2775_v31  ;;  %v2755_v36 = vld [vmem:[#allocation2] sm:$0xf]  ;;  %v3322_v37 = vld [vmem:[#allocation2 + $0x8] sm:$0xf0]  ;;  %v2757_v39 = vld [vmem:[#allocation2 + $0xc] sm:$0xf0] }
  0x26   :  { %438 = vmatpush.bf16.msra.mxu1 %v2804_v57  ;;  %452 = vmatpush.bf16.msra.mxu2 %v2808_v62  ;;  %v2763_v40 = vld [vmem:[#allocation2 + $0x8] sm:$0xf]  ;;  %v3323_v41 = vld [vmem:[#allocation2 + $0x10] sm:$0xf0]  ;;  %v2756_v43 = vor.u32 %v3322_v37, %v2755_v36  ;;  %v2760_v45 = vor.u32 %v3321_v38, %v2757_v39 }
  0x27   :  { %184 = vmatpush.bf16.msra.mxu0 %v3317_v3  ;;  %466 = vmatpush.bf16.msra.mxu3 %v2812_v63  ;;  %v2792_v3 = vor.u32 %v3331_v1, %v2791_v0  ;;  %v2764_v46 = vor.u32 %v3323_v41, %v2763_v40 }
  0x2a   :  { %439 = vmatpush.bf16.msra.mxu1 %v2792_v3 }
  0x2b   :  { %185 = vmatpush.bf16.msra.mxu0 %v3316_v4  ;;  %v2793_v4 = vld [vmem:[#allocation2 + $0x54] sm:$0xf0] }
  0x2c   :  { %v2796_v8 = vor.u32 %v3330_v2, %v2793_v4 }
  0x2e   :  { %453 = vmatpush.bf16.msra.mxu2 %v2796_v8 }
  0x2f   :  { %186 = vmatpush.bf16.msra.mxu0 %v3315_v5  ;;  %v2799_v5 = vld [vmem:[#allocation2 + $0x50] sm:$0xf] }
  0x33   :  { %187 = vmatpush.bf16.msra.mxu0 %v3314_v6  ;;  %v3332_v6 = vld [vmem:[#allocation2 + $0x58] sm:$0xf0] }
  0x34   :  { %v2800_v9 = vor.u32 %v3332_v6, %v2799_v5  ;;  %v3493_v5 = vld [vmem:[%s4437_s5] ss:$0 sm:$0xff] }
  0x36   :  { %467 = vmatpush.bf16.msra.mxu3 %v2800_v9 }
  0x37   :  { %188 = vmatpush.bf16.msra.mxu0 %v3313_v7  ;;  %v3862_v7 = vsel %vm210_vm0, %v3508_v23, %v209_v61 }
  0x3a   :  { %189 = vmatmul.bf16.vlgmr.msra.gmra.mxu0 %v112_v10 }
  0xb7   :  { %v190_v12 = vpop.f32.mrf.mxu0 }
  0xb8   :  { %v191_v14 = vadd.f32 %v3492_v11, %v190_v12  ;;  %v3328_v12 = vld [vmem:[#allocation2 + $0x38] sm:$0xf0] }
  0xba   :  { %v3849_v15 = vadd.f32 %v195_v13, %v191_v14  ;;  %v3327_v13 = vld [vmem:[#allocation2 + $0x34] sm:$0xf] }
  0xbc   :  { %201 = vadd.xlane.f32.xlu0 %v3849_v15  ;;  %v214_v16 = vmul.f32 %v3849_v15, %v3849_v15 }
  0xbe   :  { %216 = vadd.xlane.f32.xlu1 %v214_v16 }
  0xbf   :  { %v192_v17 = vpop.f32.mrf.mxu0 }
  0xc0   :  { %v193_v19 = vadd.f32 %v3492_v11, %v192_v17  ;;  %v2779_v11 = vld [vmem:[#allocation2 + $0x30] sm:$0xf]  ;;  %v2781_v17 = vld [vmem:[#allocation2 + $0x3c] sm:$0xf0] }
  0xc1   :  { %v2780_v16 = vor.u32 %v3328_v12, %v2779_v11  ;;  %v2784_v22 = vor.u32 %v3327_v13, %v2781_v17  ;;  %v3494_v12 = vld [vmem:[%s4438_s6] ss:$0 sm:$0xff]  ;;  %s3699_s6 = smov 32  }
  0xc2   :  { %v3857_v20 = vadd.f32 %v196_v18, %v193_v19  ;;  %v2787_v18 = vld [vmem:[#allocation2 + $0x38] sm:$0xf]  ;;  %v3329_v19 = vld [vmem:[#allocation2 + $0x40] sm:$0xf0] }
  0xc3   :  { %v2788_v23 = vor.u32 %v3329_v19, %v2787_v18  ;;  %440 = vmatpush.bf16.msra.mxu1 %v2780_v16  ;;  %454 = vmatpush.bf16.msra.mxu2 %v2784_v22 }
  0xc4   :  { %203 = vadd.xlane.f32.xlu0 %v3857_v20  ;;  %v215_v21 = vmul.f32 %v3857_v20, %v3857_v20 }
  0xc5   :  { %468 = vmatpush.bf16.msra.mxu3 %v2788_v23 }
  0xc6   :  { %218 = vadd.xlane.f32.xlu1 %v215_v21 }
  0xc7   :  { %441 = vmatpush.bf16.msra.mxu1 %v2768_v29  ;;  %455 = vmatpush.bf16.msra.mxu2 %v2772_v34 }
  0xc9   :  { %469 = vmatpush.bf16.msra.mxu3 %v2776_v35 }
  0xcb   :  { %442 = vmatpush.bf16.msra.mxu1 %v2756_v43  ;;  %456 = vmatpush.bf16.msra.mxu2 %v2760_v45 }
  0xcd   :  { %470 = vmatpush.bf16.msra.mxu3 %v2764_v46 }
 0x12f   :  { %v202_v10 = vpop.xlane.xlu0 %201 }
 0x130   :  { %v3865_v14 = vmul.f32 %v3862_v7, %v202_v10 }
 0x131   :  { %v217_v21 = vpop.xlane.xlu1 %216 }
 0x132   :  { %v222_v24 = vmul.f32 %v3865_v14, %v3865_v14  ;;  %v220_v25 = vmul.f32 %v217_v21, %v3862_v7  ;;  %v250_v2 = vsub.f32 %v3849_v15, %v3865_v14 }
 0x134   :  { %v224_v33 = vsub.f32 %v220_v25, %v222_v24 }
 0x136   :  { %v226_v42 = vmax.f32 %v224_v33, 0.0 }
 0x137   :  { %v204_v44 = vpop.xlane.xlu0 %203 }
 0x138   :  { %v228_v47 = vadd.f32 1e-12, %v226_v42  ;;  %v213_v48 = vmul.f32 %v3862_v7, %v204_v44 }
 0x139   :  { %v219_v49 = vpop.xlane.xlu1 %218 }
 0x13a   :  { %3509 = vrsqrt.f32 %v228_v47  ;;  %v223_v50 = vmul.f32 %v213_v48, %v213_v48  ;;  %v221_v51 = vmul.f32 %v219_v49, %v3862_v7  ;;  %vm236_vm2 = vweird.f32 %v228_v47 }
 0x13b   :  { %v251_v8 = vsub.f32 %v3857_v20, %v213_v48  ;;  %v299_v20 = vld [vmem:[%s4440_s8] sm:$0x7] }
 0x13c   :  { %v225_v52 = vsub.f32 %v221_v51, %v223_v50  ;;  %v301_v18 = vperm.slane %v299_v20, 0  ;;  %v302_v22 = vperm.slane %v299_v20, 1  ;;  %v303_v26 = vperm.slane %v299_v20, 2 }
 0x13e   :  { %v227_v53 = vmax.f32 %v225_v52, 0.0 }
 0x140   :  { %v3510_v54 = vpop.eup %3509  ;;  %v229_v56 = vadd.f32 1e-12, %v227_v53 }
 0x141   :  { %v231_v55 = vmul.f32 %v3510_v54, %v228_v47  ;;  %vm237_vm1 = vweird.f32 %v3510_v54 }
 0x142   :  { %3511 = vrsqrt.f32 %v229_v56  ;;  %vm238_vm3 = vmor %vm236_vm2, %vm237_vm1  ;;  %vm246_vm5 = vweird.f32 %v229_v56 }
 0x143   :  { %v232_v57 = vmul.f32 %v3510_v54, %v231_v55 }
 0x145   :  { %v233_v58 = vmul.f32 0.5, %v232_v57 }
 0x147   :  { %v234_v59 = vsub.f32 1.5, %v233_v58 }
 0x148   :  { %v3512_v60 = vpop.eup %3511 }
 0x149   :  { %v235_v61 = vmul.f32 %v3510_v54, %v234_v59  ;;  %v241_v62 = vmul.f32 %v3512_v60, %v229_v56  ;;  %vm247_vm4 = vweird.f32 %v3512_v60  ;;  %v264_v59 = vld [vmem:[%s4463_s23] sm:$0xff] }
 0x14a   :  { %vm248_vm6 = vmor %vm246_vm5, %vm247_vm4 }
 0x14b   :  { %v242_v63 = vmul.f32 %v3512_v60, %v241_v62  ;;  %v239_v1 = vsel %vm238_vm3, %v3510_v54, %v235_v61 }
 0x14c   :  { %v252_v4 = vmul.f32 %v250_v2, %v239_v1 }
 0x14d   :  { %v243_v0 = vmul.f32 0.5, %v242_v63 }
 0x14e   :  { %v257_v11 = vmul.f32 %v3493_v5, %v252_v4 }
 0x14f   :  { %v244_v3 = vsub.f32 1.5, %v243_v0 }
 0x150   :  { %v3881_v13 = vadd.f32 %v3494_v12, %v257_v11 }
 0x151   :  { %v245_v6 = vmul.f32 %v3512_v60, %v244_v3 }
 0x153   :  { %v249_v9 = vsel %vm248_vm6, %v3512_v60, %v245_v6 }
 0x154   :  { %v253_v10 = vmul.f32 %v251_v8, %v249_v9 }
 0x156   :  { %v258_v15 = vmul.f32 %v3493_v5, %v253_v10  ;;  %v265_v5 = vld [vmem:[%s4463_s23 + $0x8] sm:$0xff] }
 0x158   :  { %v3883_v14 = vadd.f32 %v3494_v12, %v258_v15 }
 0x15a   :  { %v266_v16 = vpack.c.bf16 %v3883_v14, %v3881_v13 }
 0x15c   :  { %443 = vmatmul.bf16.vlgmr.msra.gmra.mxu1 %v266_v16  ;;  %457 = vmatmul.bf16.vlgmr.msra.gmra.mxu2 %v266_v16 }
 0x15d   :  { %471 = vmatmul.bf16.vlgmr.msra.gmra.mxu3 %v266_v16 }
 0x1d9   :  { %v444_v17 = vpop.f32.mrf.mxu1 }
 0x1da   :  { %v445_v19 = vadd.f32 %v444_v17, %v301_v18 }
 0x1dc   :  { %v477_v25 = vpack.c.bf16 %v445_v19, %v445_v19 }
 0x1de   :  { %v485_v30 = vunpack.c.l.b16 %v477_v25 }
 0x1df   :  { %v458_v21 = vpop.f32.mrf.mxu2 }
 0x1e0   :  { %v472_v23 = vpop.f32.mrf.mxu3  ;;  %v459_v28 = vadd.f32 %v458_v21, %v302_v22 }
 0x1e1   :  { %v446_v24 = vpop.f32.mrf.mxu1  ;;  %v473_v31 = vadd.f32 %v472_v23, %v303_v26 }
 0x1e2   :  { %v447_v27 = vadd.f32 %v446_v24, %v301_v18  ;;  %v479_v34 = vpack.c.bf16 %v459_v28, %v459_v28 }
 0x1e3   :  { %v481_v39 = vpack.c.bf16 %v473_v31, %v473_v31 }
 0x1e4   :  { %v478_v29 = vpack.c.bf16 %v447_v27, %v447_v27  ;;  %v490_v42 = vunpack.c.l.b16 %v479_v34 }
 0x1e5   :  { %v544_v45 = vunpack.c.l.b16 %v481_v39 }
 0x1e6   :  { %v486_v32 = vunpack.c.l.b16 %v478_v29 }
 0x1e7   :  { %v460_v33 = vpop.f32.mrf.mxu2 }
 0x1e8   :  { %v487_v35 = vpack.c.b16 %v486_v32, %v485_v30  ;;  %v461_v36 = vadd.f32 %v460_v33, %v302_v22  ;;  %v474_v37 = vpop.f32.mrf.mxu3 }
 0x1e9   :  { %v475_v38 = vadd.f32 %v474_v37, %v303_v26 }
 0x1ea   :  { %v480_v40 = vpack.c.bf16 %v461_v36, %v461_v36  ;;  %707 = vrot.lane.b32.xlu1 %v487_v35, %s3699_s6 }
 0x1eb   :  { %v482_v41 = vpack.c.bf16 %v475_v38, %v475_v38 }
 0x1ec   :  { %v491_v43 = vunpack.c.l.b16 %v480_v40 }
 0x1ed   :  { %v545_v44 = vunpack.c.l.b16 %v482_v41 }
 0x1ee   :  { %v492_v46 = vpack.c.b16 %v491_v43, %v490_v42 }
 0x1ef   :  { %v3891_v47 = vpack.c.b16 %v545_v44, %v544_v45 }
 0x1f0   :  { %709 = vrot.lane.b32.xlu0 %v492_v46, %s3699_s6  ;;  %567 = vrot.lane.b32.xlu2 %v492_v46, %s3700_s7  ;;  %v498_v48 = vsel %vm493_vm7, %v492_v46, 0 }
 0x1f1   :  { %507 = vmatpush.bf16.xpose.msrb.mxu1 %v498_v48 }
 0x1f8   :  { %565 = vrot.lane.b32.xlu2 %v487_v35, %s3700_s7  ;;  %2849 = vmatmul.msk.bf16.vlgmr.msrb.gmra.mxu1 %vm493_vm7, %v487_v35 }
 0x1f9   :  { %558 = vmatpush.bf16.msra.mxu1 %v3891_v47 }
 0x200   :  { %638 = vrot.lane.b32.xlu2 %v492_v46, %s3696_s22 }
 0x208   :  { %636 = vrot.lane.b32.xlu2 %v487_v35, %s3696_s22 }
 0x24a   :  { %v568_v49 = vpop.permute.xlu2 %567 }
 0x24b   :  { %v573_v50 = vsel %vm493_vm7, %v568_v49, 0 }
 0x24c   :  { %582 = vmatpush.bf16.xpose.msrb.mxu2 %v573_v50 }
 0x252   :  { %v566_v51 = vpop.permute.xlu2 %565 }
 0x253   :  { %2851 = vmatmul.msk.bf16.vlgmr.msrb.gmra.mxu2 %vm493_vm7, %v566_v51 }
 0x25a   :  { %v639_v52 = vpop.permute.xlu2 %638 }
 0x25b   :  { %v644_v53 = vsel %vm493_vm7, %v639_v52, 0 }
 0x25c   :  { %653 = vmatpush.bf16.xpose.msrb.mxu0 %v644_v53  ;;  %v708_v57 = vpop.permute.xlu1 %707 }
 0x262   :  { %v710_v54 = vpop.permute.xlu0 %709  ;;  %v637_v55 = vpop.permute.xlu2 %636 }
 0x263   :  { %v715_v56 = vsel %vm493_vm7, %v710_v54, 0  ;;  %2853 = vmatmul.msk.bf16.vlgmr.msrb.gmra.mxu0 %vm493_vm7, %v637_v55 }
 0x264   :  { %724 = vmatpush.bf16.xpose.msra.mxu2 %v715_v56 }
 0x26b   :  { %2855 = vmatmul.msk.bf16.vlgmr.msra.gmra.mxu2 %vm493_vm7, %v708_v57 }
 0x275   :  { %v509_v58 = vpop.f32.mrf.mxu1 }
 0x276   :  { %v514_v60 = vmul.f32 0.17677669, %v509_v58 }
 0x278   :  { %v516_v61 = vadd.f32 %v514_v60, %v264_v59 }
 0x27a   :  { %v519_v62 = vsel %vm518_vm8, %v516_v61, -inf }
 0x27b   :  { %520 = vmax.xlane.f32.xlu1 %v519_v62 }
 0x27d   :  { %v511_v1 = vpop.f32.mrf.mxu1 }
 0x27e   :  { %v515_v3 = vmul.f32 0.17677669, %v511_v1 }
 0x280   :  { %v517_v9 = vadd.f32 %v515_v3, %v265_v5 }
 0x282   :  { %v522_v16 = vsel %vm518_vm8, %v517_v9, -inf }
 0x2d6   :  { %v584_v63 = vpop.f32.mrf.mxu2 }
 0x2d7   :  { %v589_v0 = vmul.f32 0.17677669, %v584_v63 }
 0x2d9   :  { %v591_v2 = vadd.f32 %v589_v0, %v264_v59 }
 0x2db   :  { %v593_v4 = vsel %vm518_vm8, %v591_v2, -inf }
 0x2dc   :  { %594 = vmax.xlane.f32.xlu2 %v593_v4 }
 0x2de   :  { %v586_v6 = vpop.f32.mrf.mxu2 }
 0x2df   :  { %v590_v8 = vmul.f32 0.17677669, %v586_v6 }
 0x2e0   :  { %v655_v10 = vpop.f32.mrf.mxu0 }
 0x2e1   :  { %v660_v11 = vmul.f32 0.17677669, %v655_v10  ;;  %v592_v12 = vadd.f32 %v590_v8, %v265_v5 }
 0x2e3   :  { %v596_v15 = vsel %vm518_vm8, %v592_v12, -inf  ;;  %v662_v20 = vadd.f32 %v660_v11, %v264_v59 }
 0x2e4   :  { %597 = vmax.xlane.f32.xlu0 %v596_v15  ;;  %523 = vmax.xlane.f32.xlu2 %v522_v16 }
 0x2e5   :  { %v664_v17 = vsel %vm518_vm8, %v662_v20, -inf }
 0x2e6   :  { %665 = vmax.xlane.f32.xlu1 %v664_v17 }
 0x2e8   :  { %v657_v18 = vpop.f32.mrf.mxu0 }
 0x2e9   :  { %v661_v19 = vmul.f32 0.17677669, %v657_v18 }
 0x2eb   :  { %v663_v21 = vadd.f32 %v661_v19, %v265_v5 }
 0x2ed   :  { %v667_v22 = vsel %vm518_vm8, %v663_v21, -inf }
 0x2ee   :  { %v726_v23 = vpop.f32.mrf.mxu2  ;;  %668 = vmax.xlane.f32.xlu0 %v667_v22  ;;  %v521_v24 = vpop.xlane.xlu1 %520 }
 0x2ef   :  { %v731_v25 = vmul.f32 0.17677669, %v726_v23  ;;  %v525_v26 = vsub.f32 %v516_v61, %v521_v24 }
 0x2f1   :  { %v527_v27 = vmul.f32 1.442695, %v525_v26  ;;  %v733_v28 = vadd.f32 %v731_v25, %v264_v59 }
 0x2f3   :  { %3513 = vpow2.f32 %v527_v27  ;;  %v735_v29 = vsel %vm518_vm8, %v733_v28, -inf }
 0x2f6   :  { %v728_v30 = vpop.f32.mrf.mxu2  ;;  %736 = vmax.xlane.f32.xlu0 %v735_v29 }
 0x2f7   :  { %v732_v31 = vmul.f32 0.17677669, %v728_v30 }
 0x2f9   :  { %v734_v32 = vadd.f32 %v732_v31, %v265_v5  ;;  %v3920_v33 = vpop.eup %3513 }
 0x2fa   :  { %v531_v35 = vsel %vm518_vm8, %v3920_v33, 0.0 }
 0x2fb   :  { %v738_v34 = vsel %vm518_vm8, %v734_v32, -inf }
 0x2fc   :  { %739 = vmax.xlane.f32.xlu2 %v738_v34 }
 0x2fe   :  { %532 = vadd.xlane.f32.xlu0 %v531_v35 }
 0x34f   :  { %v595_v36 = vpop.xlane.xlu2 %594 }
 0x350   :  { %v599_v45 = vsub.f32 %v591_v2, %v595_v36 }
 0x352   :  { %v601_v48 = vmul.f32 1.442695, %v599_v45 }
 0x357   :  { %v598_v37 = vpop.xlane.xlu0 %597  ;;  %v524_v38 = vpop.xlane.xlu2 %523 }
 0x358   :  { %v600_v39 = vsub.f32 %v592_v12, %v598_v37  ;;  %v526_v40 = vsub.f32 %v517_v9, %v524_v38 }
 0x359   :  { %v666_v41 = vpop.xlane.xlu1 %665 }
 0x35a   :  { %v603_v42 = vmul.f32 1.442695, %v600_v39  ;;  %v529_v43 = vmul.f32 1.442695, %v526_v40  ;;  %v670_v44 = vsub.f32 %v662_v20, %v666_v41 }
 0x35c   :  { %3515 = vpow2.f32 %v603_v42  ;;  %v672_v46 = vmul.f32 1.442695, %v670_v44  ;;  %v3352_v42 = vld [vmem:[%s4441_s9 + $0x38] sm:$0xff]  ;;  %v3351_v44 = vld [vmem:[%s4441_s9 + $0x30] sm:$0xff] }
 0x35d   :  { %3517 = vpow2.f32 %v529_v43  ;;  %879 = vmatpush.bf16.msra.mxu0 %v3352_v42  ;;  %v3361_v42 = vld [vmem:[#allocation4 + $0x44] sm:$0xf] }
 0x35e   :  { %3519 = vpow2.f32 %v672_v46  ;;  %v3350_v46 = vld [vmem:[%s4441_s9 + $0x28] sm:$0xff] }
 0x35f   :  { %3521 = vpow2.f32 %v601_v48 }
 0x361   :  { %v669_v49 = vpop.xlane.xlu0 %668  ;;  %880 = vmatpush.bf16.msra.mxu0 %v3351_v44  ;;  %v2925_v44 = vld [vmem:[#allocation4 + $0x48] sm:$0xf0] }
 0x362   :  { %v3516_v50 = vpop.eup %3515  ;;  %v671_v52 = vsub.f32 %v663_v21, %v669_v49 }
 0x363   :  { %v3518_v51 = vpop.eup %3517  ;;  %v608_v53 = vsel %vm518_vm8, %v3516_v50, 0.0 }
 0x364   :  { %v3926_v54 = vpop.eup %3519  ;;  %609 = vadd.xlane.f32.xlu1 %v608_v53  ;;  %v534_v55 = vsel %vm518_vm8, %v3518_v51, 0.0  ;;  %v674_v57 = vmul.f32 1.442695, %v671_v52 }
 0x365   :  { %535 = vadd.xlane.f32.xlu2 %v534_v55  ;;  %v676_v56 = vsel %vm518_vm8, %v3926_v54, 0.0  ;;  %v3522_v58 = vpop.eup %3521  ;;  %881 = vmatpush.bf16.msra.mxu0 %v3350_v46  ;;  %v2915_v46 = vld [vmem:[#allocation4 + $0x30] sm:$0xf] }
 0x366   :  { %677 = vadd.xlane.f32.xlu0 %v676_v56  ;;  %3523 = vpow2.f32 %v674_v57  ;;  %v605_v62 = vsel %vm518_vm8, %v3522_v58, 0.0  ;;  %v3349_v56 = vld [vmem:[%s4441_s9 + $0x20] sm:$0xff]  ;;  %v3348_v57 = vld [vmem:[%s4441_s9 + $0x18] sm:$0xff] }
 0x369   :  { %v737_v59 = vpop.xlane.xlu0 %736  ;;  %882 = vmatpush.bf16.msra.mxu0 %v3349_v56  ;;  %v3357_v56 = vld [vmem:[#allocation4 + $0x24] sm:$0xf] }
 0x36a   :  { %v741_v60 = vsub.f32 %v733_v28, %v737_v59  ;;  %v3346_v59 = vld [vmem:[%s4441_s9 + $0x8] sm:$0xff] }
 0x36c   :  { %v743_v61 = vmul.f32 1.442695, %v741_v60  ;;  %v3524_v1 = vpop.eup %3523  ;;  %v3345_v60 = vld [vmem:[%s4441_s9] sm:$0xff] }
 0x36d   :  { %606 = vadd.xlane.f32.xlu2 %v605_v62  ;;  %v679_v4 = vsel %vm518_vm8, %v3524_v1, 0.0  ;;  %883 = vmatpush.bf16.msra.mxu0 %v3348_v57 }
 0x36e   :  { %3525 = vpow2.f32 %v743_v61 }
 0x36f   :  { %v740_v63 = vpop.xlane.xlu2 %739 }
 0x370   :  { %v742_v0 = vsub.f32 %v734_v32, %v740_v63 }
 0x371   :  { %v533_v9 = vpop.xlane.xlu0 %532 }
 0x372   :  { %v745_v2 = vmul.f32 1.442695, %v742_v0 }
 0x374   :  { %v3526_v3 = vpop.eup %3525  ;;  %3527 = vpow2.f32 %v745_v2 }
 0x375   :  { %680 = vadd.xlane.f32.xlu2 %v679_v4  ;;  %v747_v5 = vsel %vm518_vm8, %v3526_v3, 0.0  ;;  %3529 = vrcp.f32 %v533_v9 }
 0x376   :  { %748 = vadd.xlane.f32.xlu0 %v747_v5 }
 0x37a   :  { %v3528_v6 = vpop.eup %3527 }
 0x37b   :  { %v750_v8 = vsel %vm518_vm8, %v3528_v6, 0.0  ;;  %v3530_v11 = vpop.eup %3529 }
 0x37c   :  { %v539_v15 = vmul.f32 %v3530_v11, %v3920_v33 }
 0x37d   :  { %751 = vadd.xlane.f32.xlu2 %v750_v8  ;;  %616 = vrot.lane.b32.xlu1 %v3891_v47, %s3700_s7 }
 0x38a   :  { %758 = vrot.lane.b32.xlu0 %v3891_v47, %s3699_s6 }
 0x395   :  { %687 = vrot.lane.b32.xlu2 %v3891_v47, %s3696_s22 }
 0x3d7   :  { %v610_v18 = vpop.xlane.xlu1 %609 }
 0x3d8   :  { %v536_v10 = vpop.xlane.xlu2 %535 }
 0x3d9   :  { %3531 = vrcp.f32 %v536_v10  ;;  %v678_v22 = vpop.xlane.xlu0 %677 }
 0x3df   :  { %v3532_v12 = vpop.eup %3531 }
 0x3e0   :  { %v540_v16 = vmul.f32 %v3532_v12, %v3518_v51  ;;  %v607_v20 = vpop.xlane.xlu2 %606 }
 0x3e1   :  { %3533 = vrcp.f32 %v607_v20 }
 0x3e2   :  { %v541_v17 = vpack.c.bf16 %v540_v16, %v539_v15  ;;  %3535 = vrcp.f32 %v610_v18  ;;  %v3495_v16 = vld [vmem:[%s4442_s10] ss:$0 sm:$0xff] }
 0x3e4   :  { %2850 = vmatmul.msk.bf16.vlgmr.msra.gmra.mxu1 %vm518_vm8, %v541_v17 }
 0x3e7   :  { %v3534_v21 = vpop.eup %3533 }
 0x3e8   :  { %v681_v19 = vpop.xlane.xlu2 %680  ;;  %v3536_v47 = vpop.eup %3535  ;;  %v613_v23 = vmul.f32 %v3534_v21, %v3522_v58  ;;  %v3347_v58 = vld [vmem:[%s4441_s9 + $0x10] sm:$0xff] }
 0x3e9   :  { %3537 = vrcp.f32 %v681_v19  ;;  %v614_v24 = vmul.f32 %v3536_v47, %v3516_v50  ;;  %v749_v29 = vpop.xlane.xlu0 %748  ;;  %884 = vmatpush.bf16.msra.mxu0 %v3347_v58 }
 0x3ea   :  { %3539 = vrcp.f32 %v678_v22 }
 0x3eb   :  { %v615_v27 = vpack.c.bf16 %v614_v24, %v613_v23  ;;  %v2947_v24 = vld [vmem:[#allocation4 + $0x70] sm:$0xf] }
 0x3ed   :  { %885 = vmatpush.bf16.msra.mxu0 %v3346_v59  ;;  %v2909_v59 = vld [vmem:[#allocation4 + $0x28] sm:$0xf0] }
 0x3ef   :  { %v617_v25 = vpop.permute.xlu1 %616  ;;  %v3538_v28 = vpop.eup %3537 }
 0x3f0   :  { %v752_v26 = vpop.xlane.xlu2 %751  ;;  %629 = vmatpush.bf16.msrb.mxu3 %v617_v25  ;;  %v3540_v30 = vpop.eup %3539  ;;  %v685_v31 = vmul.f32 %v3538_v28, %v3524_v1  ;;  %v3367_v25 = vld [vmem:[#allocation4 + $0x74] sm:$0xf] }
 0x3f1   :  { %3541 = vrcp.f32 %v752_v26  ;;  %v684_v32 = vmul.f32 %v3540_v30, %v3926_v54  ;;  %886 = vmatpush.bf16.msra.mxu0 %v3345_v60  ;;  %v3366_v30 = vld [vmem:[#allocation4 + $0x64] sm:$0xf0] }
 0x3f2   :  { %3543 = vrcp.f32 %v749_v29  ;;  %v2939_v29 = vld [vmem:[#allocation4 + $0x60] sm:$0xf] }
 0x3f3   :  { %2852 = vmatmul.msk.bf16.vlgmr.msrb.gmra.mxu3 %vm518_vm8, %v615_v27  ;;  %v686_v35 = vpack.c.bf16 %v685_v31, %v684_v32  ;;  %v2949_v27 = vld [vmem:[#allocation4 + $0x78] sm:$0xf0]  ;;  %v3365_v31 = vld [vmem:[#allocation4 + $0x64] sm:$0xf]  ;;  %v2940_v32 = vor.u32 %v3366_v30, %v2939_v29 }
 0x3f4   :  { %v2952_v28 = vor.u32 %v3367_v25, %v2949_v27 }
 0x3f6   :  { %1070 = vmatpush.bf16.msrb.mxu2 %v2952_v28 }
 0x3f7   :  { %v3542_v34 = vpop.eup %3541 }
 0x3f8   :  { %v688_v33 = vpop.permute.xlu2 %687  ;;  %v3544_v36 = vpop.eup %3543  ;;  %v756_v38 = vmul.f32 %v3542_v34, %v3528_v6  ;;  %v2931_v34 = vld [vmem:[#allocation4 + $0x50] sm:$0xf] }
 0x3f9   :  { %700 = vmatpush.bf16.msrb.mxu1 %v688_v33  ;;  %v755_v39 = vmul.f32 %v3544_v36, %v3526_v3  ;;  %v3363_v36 = vld [vmem:[#allocation4 + $0x54] sm:$0xf] }
 0x3fb   :  { %v757_v40 = vpack.c.bf16 %v756_v38, %v755_v39  ;;  %v2933_v38 = vld [vmem:[#allocation4 + $0x58] sm:$0xf0] }
 0x3fc   :  { %2854 = vmatmul.msk.bf16.vlgmr.msrb.gmra.mxu1 %vm518_vm8, %v686_v35  ;;  %v759_v37 = vpop.permute.xlu0 %758  ;;  %v3364_v35 = vld [vmem:[#allocation4 + $0x54] sm:$0xf0]  ;;  %v2936_v39 = vor.u32 %v3363_v36, %v2933_v38 }
 0x3fd   :  { %771 = vmatpush.bf16.msra.mxu3 %v759_v37  ;;  %v2932_v37 = vor.u32 %v3364_v35, %v2931_v34 }
 0x403   :  { %2856 = vmatmul.msk.bf16.vlgmr.msra.gmra.mxu3 %vm518_vm8, %v757_v40  ;;  %v2923_v40 = vld [vmem:[#allocation4 + $0x40] sm:$0xf] }
 0x461   :  { %v560_v41 = vpop.f32.mrf.mxu1 }
 0x469   :  { %v562_v43 = vpop.f32.mrf.mxu1 }
 0x476   :  { %v631_v45 = vpop.f32.mrf.mxu3 }
 0x479   :  { %v702_v48 = vpop.f32.mrf.mxu1 }
 0x47e   :  { %v633_v49 = vpop.f32.mrf.mxu3 }
 0x47f   :  { %v3462_v50 = vpack.i.bf16 %v633_v49, %v631_v45  ;;  %v2928_v45 = vor.u32 %v3361_v42, %v2925_v44  ;;  %v3359_v49 = vld [vmem:[#allocation4 + $0x34] sm:$0xf] }
 0x481   :  { %3463 = vrot.lane.b32.xlu1 %v3462_v50, %s3699_s6  ;;  %v704_v51 = vpop.f32.mrf.mxu1 }
 0x482   :  { %v3467_v53 = vpack.i.bf16 %v704_v51, %v702_v48  ;;  %v3360_v48 = vld [vmem:[#allocation4 + $0x34] sm:$0xf0]  ;;  %v2917_v51 = vld [vmem:[#allocation4 + $0x38] sm:$0xf0] }
 0x483   :  { %v2916_v50 = vor.u32 %v3360_v48, %v2915_v46 }
 0x486   :  { %v773_v52 = vpop.f32.mrf.mxu3 }
 0x489   :  { %3468 = vrot.lane.b32.xlu1 %v3467_v53, %s3696_s22 }
 0x48e   :  { %v775_v54 = vpop.f32.mrf.mxu3 }
 0x48f   :  { %v3472_v55 = vpack.i.bf16 %v775_v54, %v773_v52  ;;  %v2920_v52 = vor.u32 %v3359_v49, %v2917_v51  ;;  %v2907_v54 = vld [vmem:[#allocation4 + $0x20] sm:$0xf] }
 0x491   :  { %3473 = vrot.lane.b32.xlu0 %v3472_v55, %s3700_s7  ;;  %v3358_v55 = vld [vmem:[#allocation4 + $0x24] sm:$0xf0] }
 0x492   :  { %v2908_v58 = vor.u32 %v3358_v55, %v2907_v54  ;;  %v970_v54 = vld [vmem:[%s4446_s14] sm:$0x3] }
 0x4f3   :  { %v3464_v61 = vpop.permute.xlu1 %3463 }
 0x4f4   :  { %v3466_v63 = vunpack.i.h.bf16 %v3464_v61  ;;  %v3465_v0 = vunpack.i.l.bf16 %v3464_v61  ;;  %v2912_v61 = vor.u32 %v3357_v56, %v2909_v59  ;;  %v972_v56 = vperm.slane %v970_v54, 0 }
 0x4f6   :  { %v803_v4 = vsel %vm493_vm7, %v562_v43, %v3466_v63  ;;  %v802_v5 = vsel %vm493_vm7, %v560_v41, %v3465_v0  ;;  %v3362_v41 = vld [vmem:[#allocation4 + $0x44] sm:$0xf0]  ;;  %v2899_v0 = vld [vmem:[#allocation4 + $0x10] sm:$0xf] }
 0x4f7   :  { %v2924_v43 = vor.u32 %v3362_v41, %v2923_v40 }
 0x4fb   :  { %v3469_v62 = vpop.permute.xlu1 %3468 }
 0x4fc   :  { %v3471_v1 = vunpack.i.h.bf16 %v3469_v62  ;;  %v3470_v2 = vunpack.i.l.bf16 %v3469_v62 }
 0x4fe   :  { %v806_v9 = vsel %vm804_vm9, %v803_v4, %v3471_v1  ;;  %v805_v10 = vsel %vm804_vm9, %v802_v5, %v3470_v2  ;;  %v3356_v1 = vld [vmem:[#allocation4 + $0x14] sm:$0xf0]  ;;  %v3355_v2 = vld [vmem:[#allocation4 + $0x14] sm:$0xf]  ;;  %v2901_v5 = vld [vmem:[#allocation4 + $0x18] sm:$0xf0] }
 0x4ff   :  { %v2900_v4 = vor.u32 %v3356_v1, %v2899_v0 }
 0x503   :  { %v3474_v3 = vpop.permute.xlu0 %3473 }
 0x504   :  { %v3476_v6 = vunpack.i.h.bf16 %v3474_v3  ;;  %v3475_v8 = vunpack.i.l.bf16 %v3474_v3 }
 0x506   :  { %v808_v11 = vsel %vm807_vm10, %v805_v10, %v3475_v8  ;;  %v809_v12 = vsel %vm807_vm10, %v806_v9, %v3476_v6  ;;  %v2904_v6 = vor.u32 %v3355_v2, %v2901_v5  ;;  %v2891_v8 = vld [vmem:[#allocation4] sm:$0xf]  ;;  %v3354_v9 = vld [vmem:[#allocation4 + $0x4] sm:$0xf0]  ;;  %v3353_v10 = vld [vmem:[#allocation4 + $0x4] sm:$0xf] }
 0x507   :  { %v810_v15 = vpack.c.bf16 %v809_v12, %v808_v11  ;;  %v2892_v12 = vor.u32 %v3354_v9, %v2891_v8  ;;  %v3376_v2 = vld [vmem:[#allocation6 + $0x38] sm:$0xff] }
 0x508   :  { %1401 = vmatpush.bf16.msrb.mxu3 %v3376_v2 }
 0x509   :  { %887 = vmatmul.bf16.vlgmr.msra.gmra.mxu0 %v810_v15  ;;  %v2893_v15 = vld [vmem:[#allocation4 + $0x8] sm:$0xf0] }
 0x586   :  { %v888_v20 = vpop.f32.mrf.mxu0 }
 0x587   :  { %v889_v17 = vadd.f32 %v3495_v16, %v888_v20  ;;  %v2896_v20 = vor.u32 %v3353_v10, %v2893_v15 }
 0x589   :  { %v3984_v18 = vadd.f32 %v889_v17, %v3881_v13  ;;  %v3368_v13 = vld [vmem:[#allocation4 + $0x74] sm:$0xf0] }
 0x58a   :  { %v2948_v26 = vor.u32 %v3368_v13, %v2947_v24 }
 0x58b   :  { %897 = vadd.xlane.f32.xlu1 %v3984_v18  ;;  %v903_v19 = vmul.f32 %v3984_v18, %v3984_v18 }
 0x58c   :  { %1056 = vmatpush.bf16.msra.mxu1 %v2948_v26 }
 0x58d   :  { %905 = vadd.xlane.f32.xlu0 %v903_v19 }
 0x58e   :  { %v890_v21 = vpop.f32.mrf.mxu0 }
 0x58f   :  { %v891_v22 = vadd.f32 %v3495_v16, %v890_v21 }
 0x590   :  { %1057 = vmatpush.bf16.msra.mxu1 %v2940_v32 }
 0x591   :  { %v3990_v47 = vadd.f32 %v891_v22, %v3883_v14  ;;  %v2941_v14 = vld [vmem:[#allocation4 + $0x68] sm:$0xf0] }
 0x592   :  { %v2944_v33 = vor.u32 %v3365_v31, %v2941_v14 }
 0x593   :  { %899 = vadd.xlane.f32.xlu2 %v3990_v47  ;;  %v904_v23 = vmul.f32 %v3990_v47, %v3990_v47 }
 0x594   :  { %1071 = vmatpush.bf16.msrb.mxu2 %v2944_v33  ;;  %1058 = vmatpush.bf16.msra.mxu1 %v2932_v37 }
 0x595   :  { %907 = vadd.xlane.f32.xlu1 %v904_v23 }
 0x598   :  { %1072 = vmatpush.bf16.msrb.mxu2 %v2936_v39  ;;  %1059 = vmatpush.bf16.msra.mxu1 %v2924_v43  ;;  %v3496_v39 = vld [vmem:[%s4443_s11] ss:$0 sm:$0xff] }
 0x59c   :  { %1073 = vmatpush.bf16.msrb.mxu2 %v2928_v45  ;;  %1060 = vmatpush.bf16.msra.mxu1 %v2916_v50  ;;  %v3497_v45 = vld [vmem:[%s4444_s12] ss:$0 sm:$0xff]  ;;  %v3701_v50 = vmov 1.4142135  }
 0x5a0   :  { %1074 = vmatpush.bf16.msrb.mxu2 %v2920_v52  ;;  %1061 = vmatpush.bf16.msra.mxu1 %v2908_v58 }
 0x5a4   :  { %1075 = vmatpush.bf16.msrb.mxu2 %v2912_v61  ;;  %1062 = vmatpush.bf16.msra.mxu1 %v2900_v4  ;;  %v973_v61 = vperm.slane %v970_v54, 1 }
 0x5a8   :  { %1076 = vmatpush.bf16.msrb.mxu2 %v2904_v6  ;;  %1063 = vmatpush.bf16.msra.mxu1 %v2892_v12  ;;  %v3375_v12 = vld [vmem:[#allocation6 + $0x30] sm:$0xff] }
 0x5a9   :  { %1402 = vmatpush.bf16.msrb.mxu3 %v3375_v12 }
 0x5ac   :  { %1077 = vmatpush.bf16.msrb.mxu2 %v2896_v20 }
 0x5fe   :  { %v898_v53 = vpop.xlane.xlu1 %897 }
 0x5ff   :  { %v901_v57 = vmul.f32 %v898_v53, %v3862_v7 }
 0x600   :  { %v906_v60 = vpop.xlane.xlu0 %905 }
 0x601   :  { %v911_v62 = vmul.f32 %v901_v57, %v901_v57  ;;  %v909_v63 = vmul.f32 %v906_v60, %v3862_v7  ;;  %v939_v36 = vsub.f32 %v3984_v18, %v901_v57 }
 0x603   :  { %v913_v3 = vsub.f32 %v909_v63, %v911_v62 }
 0x605   :  { %v915_v11 = vmax.f32 %v913_v3, 0.0 }
 0x606   :  { %v900_v16 = vpop.xlane.xlu2 %899 }
 0x607   :  { %v917_v17 = vadd.f32 1e-12, %v915_v11  ;;  %v902_v19 = vmul.f32 %v900_v16, %v3862_v7 }
 0x608   :  { %v908_v21 = vpop.xlane.xlu1 %907 }
 0x609   :  { %3545 = vrsqrt.f32 %v917_v17  ;;  %v912_v22 = vmul.f32 %v902_v19, %v902_v19  ;;  %v910_v23 = vmul.f32 %v908_v21, %v3862_v7  ;;  %vm925_vm12 = vweird.f32 %v917_v17 }
 0x60a   :  { %v940_v41 = vsub.f32 %v3990_v47, %v902_v19 }
 0x60b   :  { %v914_v24 = vsub.f32 %v910_v23, %v912_v22 }
 0x60d   :  { %v916_v13 = vmax.f32 %v914_v24, 0.0 }
 0x60f   :  { %v3546_v25 = vpop.eup %3545  ;;  %v918_v27 = vadd.f32 1e-12, %v916_v13 }
 0x610   :  { %v920_v26 = vmul.f32 %v3546_v25, %v917_v17  ;;  %vm926_vm11 = vweird.f32 %v3546_v25  ;;  %v3384_v17 = vld [vmem:[#allocation6 + $0x78] sm:$0xff] }
 0x611   :  { %3547 = vrsqrt.f32 %v918_v27  ;;  %vm927_vm13 = vmor %vm925_vm12, %vm926_vm11  ;;  %vm935_vm15 = vweird.f32 %v918_v27  ;;  %1415 = vmatpush.bf16.msrb.mxu0 %v3384_v17  ;;  %v3380_v17 = vld [vmem:[#allocation6 + $0x58] sm:$0xff] }
 0x612   :  { %v921_v28 = vmul.f32 %v3546_v25, %v920_v26  ;;  %3549 = vrcp.f32 %v3701_v50  ;;  %v3374_v26 = vld [vmem:[#allocation6 + $0x28] sm:$0xff] }
 0x613   :  { %1403 = vmatpush.bf16.msrb.mxu3 %v3374_v26 }
 0x614   :  { %v922_v29 = vmul.f32 0.5, %v921_v28 }
 0x616   :  { %v923_v30 = vsub.f32 1.5, %v922_v29  ;;  %v3383_v29 = vld [vmem:[#allocation6 + $0x70] sm:$0xff] }
 0x617   :  { %v3548_v31 = vpop.eup %3547  ;;  %1416 = vmatpush.bf16.msrb.mxu0 %v3383_v29 }
 0x618   :  { %v924_v32 = vmul.f32 %v3546_v25, %v923_v30  ;;  %v930_v14 = vmul.f32 %v3548_v31, %v918_v27  ;;  %vm936_vm14 = vweird.f32 %v3548_v31  ;;  %v3550_v47 = vpop.eup %3549 }
 0x619   :  { %vm937_vm0 = vmor %vm935_vm15, %vm936_vm14  ;;  %v1089_v51 = vmul.f32 1.4142135, %v3550_v47  ;;  %vm1093_vm1 = vweird.f32 %v3550_v47 }
 0x61a   :  { %v931_v33 = vmul.f32 %v3548_v31, %v930_v14  ;;  %v928_v34 = vsel %vm927_vm13, %v3546_v25, %v924_v32 }
 0x61b   :  { %v941_v38 = vmul.f32 %v939_v36, %v928_v34  ;;  %v1090_v52 = vsub.f32 1.0, %v1089_v51 }
 0x61c   :  { %v932_v35 = vmul.f32 0.5, %v931_v33 }
 0x61d   :  { %v946_v44 = vmul.f32 %v3496_v39, %v941_v38  ;;  %v1091_v53 = vmul.f32 %v3550_v47, %v1090_v52 }
 0x61e   :  { %v933_v37 = vsub.f32 1.5, %v932_v35  ;;  %v3373_v35 = vld [vmem:[#allocation6 + $0x20] sm:$0xff] }
 0x61f   :  { %v4007_v46 = vadd.f32 %v3497_v45, %v946_v44  ;;  %v1092_v55 = vadd.f32 %v3550_v47, %v1091_v53  ;;  %1404 = vmatpush.bf16.msrb.mxu3 %v3373_v35 }
 0x620   :  { %v934_v40 = vmul.f32 %v3548_v31, %v933_v37 }
 0x621   :  { %v4016_v58 = vsel %vm1093_vm1, %v3550_v47, %v1092_v55  ;;  %v3372_v47 = vld [vmem:[#allocation6 + $0x18] sm:$0xff] }
 0x622   :  { %v938_v42 = vsel %vm937_vm0, %v3548_v31, %v934_v40 }
 0x623   :  { %v942_v43 = vmul.f32 %v940_v41, %v938_v42  ;;  %v3382_v42 = vld [vmem:[#allocation6 + $0x68] sm:$0xff]  ;;  %1405 = vmatpush.bf16.msrb.mxu3 %v3372_v47 }
 0x624   :  { %1417 = vmatpush.bf16.msrb.mxu0 %v3382_v42 }
 0x625   :  { %v947_v18 = vmul.f32 %v3496_v39, %v942_v43 }
 0x627   :  { %v4009_v48 = vadd.f32 %v3497_v45, %v947_v18 }
 0x629   :  { %v953_v49 = vpack.c.bf16 %v4009_v48, %v4007_v46 }
 0x62b   :  { %1064 = vmatmul.bf16.vlgmr.msra.gmra.mxu1 %v953_v49  ;;  %1078 = vmatmul.bf16.vlgmr.msrb.gmra.mxu2 %v953_v49 }
 0x6a8   :  { %v1065_v57 = vpop.f32.mrf.mxu1 }
 0x6a9   :  { %v4018_v59 = vadd.f32 %v1065_v57, %v972_v56 }
 0x6ab   :  { %v4022_v60 = vmul.f32 %v4016_v58, %v4018_v59 }
 0x6ad   :  { %v1099_v62 = vmul.f32 %v4022_v60, %v4022_v60 }
 0x6ae   :  { %v1079_v63 = vpop.f32.mrf.mxu2 }
 0x6af   :  { %v4026_v0 = vmin.f32 %v1099_v62, 16.0  ;;  %v4028_v1 = vadd.f32 %v1079_v63, %v973_v61 }
 0x6b0   :  { %v1067_v3 = vpop.f32.mrf.mxu1 }
 0x6b1   :  { %v1101_v4 = vmul.f32 2.1237322e-06, %v4026_v0  ;;  %v1112_v5 = vmul.f32 3.8918573e-05, %v4026_v0  ;;  %v4034_v6 = vmul.f32 %v4016_v58, %v4028_v1  ;;  %v4036_v8 = vadd.f32 %v1067_v3, %v972_v56 }
 0x6b3   :  { %v1102_v9 = vadd.f32 0.00028619796, %v1101_v4  ;;  %v1113_v10 = vadd.f32 0.001143296, %v1112_v5  ;;  %v1139_v11 = vmul.f32 %v4034_v6, %v4034_v6  ;;  %v4042_v15 = vmul.f32 %v4016_v58, %v4036_v8  ;;  %v3371_v5 = vld [vmem:[#allocation6 + $0x10] sm:$0xff] }
 0x6b4   :  { %1406 = vmatpush.bf16.msrb.mxu3 %v3371_v5 }
 0x6b5   :  { %v1114_v16 = vmul.f32 %v1113_v10, %v4026_v0  ;;  %v4045_v20 = vmin.f32 %v1139_v11, 16.0  ;;  %v1179_v19 = vmul.f32 %v4042_v15, %v4042_v15  ;;  %v1103_v22 = vmul.f32 %v1102_v9, %v4026_v0 }
 0x6b6   :  { %v1081_v21 = vpop.f32.mrf.mxu2 }
 0x6b7   :  { %v1115_v23 = vadd.f32 0.014752088, %v1114_v16  ;;  %v4050_v24 = vadd.f32 %v1081_v21, %v973_v61  ;;  %v1152_v13 = vmul.f32 3.8918573e-05, %v4045_v20  ;;  %v4053_v25 = vmin.f32 %v1179_v19, 16.0  ;;  %v3381_v61 = vld [vmem:[#allocation6 + $0x60] sm:$0xff] }
 0x6b8   :  { %v1141_v28 = vmul.f32 2.1237322e-06, %v4045_v20  ;;  %v1104_v33 = vadd.f32 0.0036580483, %v1103_v22  ;;  %1418 = vmatpush.bf16.msrb.mxu0 %v3381_v61 }
 0x6b9   :  { %v1116_v27 = vmul.f32 %v1115_v23, %v4026_v0  ;;  %v1153_v30 = vadd.f32 0.001143296, %v1152_v13  ;;  %v1181_v31 = vmul.f32 2.1237322e-06, %v4053_v25  ;;  %v1192_v32 = vmul.f32 3.8918573e-05, %v4053_v25 }
 0x6ba   :  { %v4061_v14 = vmul.f32 %v4016_v58, %v4050_v24  ;;  %v1142_v41 = vadd.f32 0.00028619796, %v1141_v28  ;;  %v1105_v49 = vmul.f32 %v1104_v33, %v4026_v0  ;;  %v3370_v23 = vld [vmem:[#allocation6 + $0x8] sm:$0xff] }
 0x6bb   :  { %v1117_v34 = vadd.f32 0.112945676, %v1116_v27  ;;  %v1154_v36 = vmul.f32 %v1153_v30, %v4045_v20  ;;  %v1182_v37 = vadd.f32 0.00028619796, %v1181_v31  ;;  %v1193_v38 = vadd.f32 0.001143296, %v1192_v32  ;;  %1407 = vmatpush.bf16.msrb.mxu3 %v3370_v23 }
 0x6bc   :  { %v1219_v39 = vmul.f32 %v4061_v14, %v4061_v14  ;;  %v1143_v56 = vmul.f32 %v1142_v41, %v4045_v20  ;;  %v1106_v2 = vadd.f32 0.05243302, %v1105_v49  ;;  %1419 = vmatpush.bf16.msrb.mxu0 %v3380_v17  ;;  %v3379_v32 = vld [vmem:[#allocation6 + $0x50] sm:$0xff] }
 0x6bd   :  { %v1118_v40 = vmul.f32 %v1117_v34, %v4026_v0  ;;  %v1155_v43 = vadd.f32 0.014752088, %v1154_v36  ;;  %v1183_v44 = vmul.f32 %v1182_v37, %v4053_v25  ;;  %v1194_v45 = vmul.f32 %v1193_v38, %v4053_v25  ;;  %v3369_v37 = vld [vmem:[#allocation6] sm:$0xff] }
 0x6be   :  { %v4069_v18 = vmin.f32 %v1219_v39, 16.0  ;;  %v1144_v16 = vadd.f32 0.0036580483, %v1143_v56  ;;  %v1107_v13 = vmul.f32 %v1106_v2, %v4026_v0 }
 0x6bf   :  { %v1119_v50 = vadd.f32 0.4994258, %v1118_v40  ;;  %v1156_v51 = vmul.f32 %v1155_v43, %v4045_v20  ;;  %v1184_v52 = vadd.f32 0.0036580483, %v1183_v44  ;;  %v1195_v53 = vadd.f32 0.014752088, %v1194_v45  ;;  %1408 = vmatpush.bf16.msrb.mxu3 %v3369_v37 }
 0x6c0   :  { %v1221_v54 = vmul.f32 2.1237322e-06, %v4069_v18  ;;  %v1232_v57 = vmul.f32 3.8918573e-05, %v4069_v18  ;;  %v1145_v29 = vmul.f32 %v1144_v16, %v4045_v20  ;;  %1420 = vmatpush.bf16.msrb.mxu0 %v3379_v32  ;;  %v1108_v38 = vadd.f32 0.18741608, %v1107_v13 }
 0x6c1   :  { %v1120_v55 = vmul.f32 %v1119_v50, %v4026_v0  ;;  %v1157_v62 = vadd.f32 0.112945676, %v1156_v51  ;;  %v1196_v63 = vmul.f32 %v1195_v53, %v4053_v25  ;;  %v1185_v10 = vmul.f32 %v1184_v52, %v4053_v25  ;;  %v3378_v43 = vld [vmem:[#allocation6 + $0x48] sm:$0xff] }
 0x6c2   :  { %v1233_v4 = vadd.f32 0.001143296, %v1232_v57  ;;  %v1222_v12 = vadd.f32 0.00028619796, %v1221_v54  ;;  %v1146_v41 = vadd.f32 0.05243302, %v1145_v29  ;;  %v1109_v50 = vmul.f32 %v1108_v38, %v4026_v0 }
 0x6c3   :  { %v4078_v3 = vadd.f32 1.0, %v1120_v55  ;;  %v1158_v9 = vmul.f32 %v1157_v62, %v4045_v20  ;;  %v1197_v11 = vadd.f32 0.112945676, %v1196_v63  ;;  %v1186_v27 = vadd.f32 0.05243302, %v1185_v10  ;;  %v3377_v55 = vld [vmem:[#allocation6 + $0x40] sm:$0xff] }
 0x6c4   :  { %v1234_v22 = vmul.f32 %v1233_v4, %v4069_v18  ;;  %v1223_v28 = vmul.f32 %v1222_v12, %v4069_v18  ;;  %1421 = vmatpush.bf16.msrb.mxu0 %v3378_v43  ;;  %v1147_v52 = vmul.f32 %v1146_v41, %v4045_v20  ;;  %v1110_v63 = vadd.f32 1.1283791, %v1109_v50 }
 0x6c5   :  { %3551 = vrcp.f32 %v4078_v3  ;;  %v1159_v19 = vadd.f32 0.4994258, %v1158_v9  ;;  %v1198_v21 = vmul.f32 %v1197_v11, %v4053_v25  ;;  %v1187_v42 = vmul.f32 %v1186_v27, %v4053_v25 }
 0x6c6   :  { %v1235_v31 = vadd.f32 0.014752088, %v1234_v22  ;;  %v1224_v40 = vadd.f32 0.0036580483, %v1223_v28  ;;  %v1133_v61 = vand.u32 2147483648, %v4078_v3  ;;  %vm1127_vm3 = vweird.f32 %v4078_v3 }
 0x6c7   :  { %v1160_v26 = vmul.f32 %v1159_v19, %v4045_v20  ;;  %v1199_v30 = vadd.f32 0.4994258, %v1198_v21  ;;  %v1188_v53 = vadd.f32 0.18741608, %v1187_v42  ;;  %v1131_v0 = vand.u32 2147483647, %v4078_v3 }
 0x6c8   :  { %v1236_v36 = vmul.f32 %v1235_v31, %v4069_v18  ;;  %v1225_v51 = vmul.f32 %v1224_v40, %v4069_v18  ;;  %1422 = vmatpush.bf16.msrb.mxu0 %v3377_v55  ;;  %v1148_v9 = vadd.f32 0.18741608, %v1147_v52  ;;  %v1134_v16 = vor.u32 1.1754944e-38, %v1133_v61 }
 0x6c9   :  { %v4089_v33 = vadd.f32 1.0, %v1160_v26  ;;  %v1200_v35 = vmul.f32 %v1199_v30, %v4053_v25  ;;  %v1189_v11 = vmul.f32 %v1188_v53, %v4053_v25  ;;  %vm1132_vm5 = vcmp.eq.f32.partialorder %v1131_v0, 8.507059e+37 }
 0x6ca   :  { %v1237_v49 = vadd.f32 0.112945676, %v1236_v36  ;;  %v1226_v2 = vadd.f32 0.05243302, %v1225_v51  ;;  %v1111_v13 = vmul.f32 %v1110_v63, %v4022_v60  ;;  %v1149_v26 = vmul.f32 %v1148_v9, %v4045_v20  ;;  %v3406_v60 = vld [vmem:[#allocation2 + $0x16c] sm:$0xf] }
 0x6cb   :  { %v3552_v34 = vpop.eup %3551  ;;  %3553 = vrcp.f32 %v4089_v33  ;;  %v4096_v45 = vadd.f32 1.0, %v1200_v35  ;;  %v1190_v27 = vadd.f32 1.1283791, %v1189_v11  ;;  %vm1167_vm12 = vweird.f32 %v4089_v33 }
 0x6cc   :  { %v1123_v39 = vmul.f32 %v3552_v34, %v4078_v3  ;;  %vm1128_vm2 = vweird.f32 %v3552_v34  ;;  %v1238_v54 = vmul.f32 %v1237_v49, %v4069_v18  ;;  %v1227_v22 = vmul.f32 %v1226_v2, %v4069_v18 }
 0x6cd   :  { %3555 = vrcp.f32 %v4096_v45  ;;  %vm1129_vm4 = vmor %vm1127_vm3, %vm1128_vm2  ;;  %v1211_v25 = vand.u32 2147483647, %v4096_v45  ;;  %v1213_v29 = vand.u32 2147483648, %v4096_v45  ;;  %v1171_v20 = vand.u32 2147483647, %v4089_v33 }
 0x6ce   :  { %v1124_v44 = vsub.f32 1.0, %v1123_v39  ;;  %v1239_v4 = vadd.f32 0.4994258, %v1238_v54  ;;  %v1228_v35 = vadd.f32 0.18741608, %v1227_v22  ;;  %vm1207_vm14 = vweird.f32 %v4096_v45 }
 0x6cf   :  { %v1150_v37 = vadd.f32 1.1283791, %v1149_v26  ;;  %v1191_v38 = vmul.f32 %v1190_v27, %v4042_v15  ;;  %v1214_v39 = vor.u32 1.1754944e-38, %v1213_v29  ;;  %vm1212_vm0 = vcmp.eq.f32.partialorder %v1211_v25, 8.507059e+37 }
 0x6d0   :  { %v1125_v47 = vmul.f32 %v3552_v34, %v1124_v44  ;;  %v1240_v17 = vmul.f32 %v1239_v4, %v4069_v18  ;;  %v1229_v50 = vmul.f32 %v1228_v35, %v4069_v18  ;;  %vm1172_vm1 = vcmp.eq.f32.partialorder %v1171_v20, 8.507059e+37  ;;  %v3407_v35 = vld [vmem:[#allocation2 + $0x170] sm:$0xf0] }
 0x6d1   :  { %v3554_v56 = vpop.eup %3553  ;;  %v1151_v52 = vmul.f32 %v1150_v37, %v4034_v6  ;;  %v1086_v55 = vmul.f32 0.5, %v4036_v8  ;;  %v3116_v37 = vld [vmem:[#allocation2 + $0x170] sm:$0xf] }
 0x6d2   :  { %v1126_v57 = vadd.f32 %v3552_v34, %v1125_v47  ;;  %v1163_v62 = vmul.f32 %v3554_v56, %v4089_v33  ;;  %v1241_v23 = vadd.f32 1.0, %v1240_v17  ;;  %vm1168_vm6 = vweird.f32 %v3554_v56 }
 0x6d3   :  { %v3556_v12 = vpop.eup %3555  ;;  %vm4117_vm13 = vmor %vm1167_vm12, %vm1168_vm6  ;;  %v1085_v17 = vmul.f32 0.5, %v4028_v1 }
 0x6d4   :  { %v1130_v5 = vsel %vm1129_vm4, %v3552_v34, %v1126_v57  ;;  %v1164_v10 = vsub.f32 1.0, %v1163_v62  ;;  %v1203_v3 = vmul.f32 %v3556_v12, %v4096_v45  ;;  %3557 = vrcp.f32 %v1241_v23 }
 0x6d5   :  { %v1135_v21 = vsel %vm1132_vm5, %v1134_v16, %v1130_v5  ;;  %vm1208_vm11 = vweird.f32 %v3556_v12  ;;  %v1173_v34 = vand.u32 2147483648, %v4089_v33  ;;  %v1084_v45 = vmul.f32 0.5, %v4018_v59 }
 0x6d6   :  { %v1165_v19 = vmul.f32 %v3554_v56, %v1164_v10  ;;  %v1204_v28 = vsub.f32 1.0, %v1203_v3  ;;  %v1136_v30 = vmul.f32 %v1135_v21, %v1111_v13  ;;  %vm1209_vm15 = vmor %vm1207_vm14, %vm1208_vm11  ;;  %v1251_v57 = vand.u32 2147483647, %v1241_v23 }
 0x6d7   :  { %v1174_v44 = vor.u32 1.1754944e-38, %v1173_v34  ;;  %v1253_v61 = vand.u32 2147483648, %v1241_v23  ;;  %vm1247_vm3 = vweird.f32 %v1241_v23 }
 0x6d8   :  { %v1166_v31 = vadd.f32 %v3554_v56, %v1165_v19  ;;  %v1205_v32 = vmul.f32 %v3556_v12, %v1204_v28  ;;  %v2953_v40 = vclamps-f32 %v1136_v30, 1.0  ;;  %vm1252_vm5 = vcmp.eq.f32.partialorder %v1251_v57, 8.507059e+37 }
 0x6d9   :  { %v1254_v5 = vor.u32 1.1754944e-38, %v1253_v61  ;;  %v1087_v19 = vmul.f32 0.5, %v4050_v24  ;;  %v3072_v61 = vld [vmem:[#allocation2 + $0x120] sm:$0xf] }
 0x6da   :  { %v1206_v36 = vadd.f32 %v3556_v12, %v1205_v32  ;;  %v1170_v41 = vsel %vm4117_vm13, %v3554_v56, %v1166_v31  ;;  %v3558_v43 = vpop.eup %3557  ;;  %v1259_v15 = vadd.f32 1.0, %v2953_v40  ;;  %v1230_v56 = vadd.f32 1.1283791, %v1229_v50  ;;  %v3405_v50 = vld [vmem:[#allocation2 + $0x160] sm:$0xf0] }
 0x6db   :  { %v1243_v47 = vmul.f32 %v3558_v43, %v1241_v23  ;;  %v1175_v51 = vsel %vm1172_vm1, %v1174_v44, %v1170_v41  ;;  %vm1248_vm2 = vweird.f32 %v3558_v43  ;;  %v3404_v41 = vld [vmem:[#allocation2 + $0x158] sm:$0xf0]  ;;  %v3098_v44 = vld [vmem:[#allocation2 + $0x15c] sm:$0xf0] }
 0x6dc   :  { %v1210_v42 = vsel %vm1209_vm15, %v3556_v12, %v1206_v36  ;;  %v1176_v0 = vmul.f32 %v1175_v51, %v1151_v52  ;;  %v1263_v18 = vmul.f32 %v1259_v15, %v1084_v45  ;;  %v1231_v59 = vmul.f32 %v1230_v56, %v4061_v14  ;;  %vm1249_vm4 = vmor %vm1247_vm3, %vm1248_vm2  ;;  %v3498_v14 = vld [vmem:[%s4448_s16] ss:$0 sm:$0xff]  ;;  %v3110_v36 = vld [vmem:[#allocation2 + $0x174] sm:$0xf0] }
 0x6dd   :  { %v1215_v49 = vsel %vm1212_vm0, %v1214_v39, %v1210_v42  ;;  %v1244_v54 = vsub.f32 1.0, %v1243_v47  ;;  %v3113_v39 = vor.u32 %v3406_v60, %v3110_v36  ;;  %v3403_v42 = vld [vmem:[#allocation2 + $0x154] sm:$0xf]  ;;  %v3084_v45 = vld [vmem:[#allocation2 + $0x138] sm:$0xf] }
 0x6de   :  { %v1216_v33 = vmul.f32 %v1215_v49, %v1191_v38  ;;  %v2954_v6 = vclamps-f32 %v1176_v0, 1.0  ;;  %v3408_v38 = vld [vmem:[#allocation2 + $0x178] sm:$0xf0]  ;;  %v3104_v49 = vld [vmem:[#allocation2 + $0x158] sm:$0xf] }
 0x6df   :  { %v1245_v63 = vmul.f32 %v3558_v43, %v1244_v54  ;;  %v3117_v40 = vor.u32 %v3408_v38, %v3116_v37  ;;  %1674 = vmatpush.bf16.msra.mxu2 %v3113_v39  ;;  %v3105_v47 = vor.u32 %v3405_v50, %v3104_v49  ;;  %v3401_v51 = vld [vmem:[#allocation2 + $0x140] sm:$0xf0]  ;;  %v3400_v15 = vld [vmem:[#allocation2 + $0x13c] sm:$0xf]  ;;  %v3092_v54 = vld [vmem:[#allocation2 + $0x140] sm:$0xf] }
 0x6e0   :  { %v2955_v53 = vclamps-f32 %v1216_v33, 1.0  ;;  %v1260_v12 = vadd.f32 1.0, %v2954_v6  ;;  %v3101_v33 = vor.u32 %v3403_v42, %v3098_v44  ;;  %v3085_v52 = vor.u32 %v3401_v51, %v3084_v45  ;;  %v3398_v0 = vld [vmem:[#allocation2 + $0x128] sm:$0xf0]  ;;  %v3060_v6 = vld [vmem:[#allocation2 + $0x108] sm:$0xf] }
 0x6e1   :  { %v1246_v4 = vadd.f32 %v3558_v43, %v1245_v63  ;;  %1688 = vmatpush.bf16.msra.mxu3 %v3117_v40  ;;  %v3073_v63 = vor.u32 %v3398_v0, %v3072_v61  ;;  %v3388_v60 = vld [vmem:[#allocation2 + $0xdc] sm:$0xf]  ;;  %v3038_v37 = vld [vmem:[#allocation2 + $0xe4] sm:$0xf0]  ;;  %v3044_v38 = vld [vmem:[#allocation2 + $0xe0] sm:$0xf] }
 0x6e2   :  { %v1261_v62 = vadd.f32 1.0, %v2955_v53  ;;  %v1264_v21 = vmul.f32 %v1260_v12, %v1085_v17  ;;  %v3086_v53 = vld [vmem:[#allocation2 + $0x144] sm:$0xf0]  ;;  %v3068_v12 = vld [vmem:[#allocation2 + $0x110] sm:$0xf]  ;;  %v3041_v40 = vor.u32 %v3388_v60, %v3038_v37 }
 0x6e3   :  { %v1250_v10 = vsel %vm1249_vm4, %v3558_v43, %v1246_v4  ;;  %1675 = vmatpush.bf16.msra.mxu2 %v3101_v33  ;;  %v3089_v56 = vor.u32 %v3400_v15, %v3086_v53  ;;  %v3399_v4 = vld [vmem:[#allocation2 + $0x130] sm:$0xf0]  ;;  %v3386_v42 = vld [vmem:[#allocation2 + $0xc8] sm:$0xf0]  ;;  %v3385_v33 = vld [vmem:[#allocation2 + $0xc4] sm:$0xf] }
 0x6e4   :  { %v1265_v2 = vmul.f32 %v1261_v62, %v1086_v55  ;;  %v1255_v8 = vsel %vm1252_vm5, %v1254_v5, %v1250_v10  ;;  %v3402_v55 = vld [vmem:[#allocation2 + $0x148] sm:$0xf0]  ;;  %v3397_v62 = vld [vmem:[#allocation2 + $0x124] sm:$0xf]  ;;  %v3032_v15 = vld [vmem:[#allocation2 + $0xc8] sm:$0xf] }
 0x6e5   :  { %v1256_v11 = vmul.f32 %v1255_v8, %v1231_v59  ;;  %1689 = vmatpush.bf16.msra.mxu3 %v3105_v47  ;;  %v3093_v57 = vor.u32 %v3402_v55, %v3092_v54  ;;  %v3394_v10 = vld [vmem:[#allocation2 + $0x10c] sm:$0xf]  ;;  %v3026_v47 = vld [vmem:[#allocation2 + $0xcc] sm:$0xf0] }
 0x6e6   :  { %v1267_v9 = vpack.c.bf16 %v1265_v2, %v1263_v18  ;;  %v3074_v18 = vld [vmem:[#allocation2 + $0x12c] sm:$0xf0]  ;;  %v3080_v2 = vld [vmem:[#allocation2 + $0x128] sm:$0xf]  ;;  %v3029_v51 = vor.u32 %v3385_v33, %v3026_v47 }
 0x6e7   :  { %v2956_v16 = vclamps-f32 %v1256_v11, 1.0  ;;  %1676 = vmatpush.bf16.msra.mxu2 %v3089_v56  ;;  %v3077_v59 = vor.u32 %v3397_v62, %v3074_v18  ;;  %v3081_v5 = vor.u32 %v3399_v4, %v3080_v2  ;;  %v3062_v11 = vld [vmem:[#allocation2 + $0x114] sm:$0xf0] }
 0x6e8   :  { %1409 = vmatmul.bf16.vlgmr.msrb.gmra.mxu3 %v1267_v9  ;;  %v3395_v9 = vld [vmem:[#allocation2 + $0x110] sm:$0xf0] }
 0x6e9   :  { %v1262_v3 = vadd.f32 1.0, %v2956_v16  ;;  %1690 = vmatpush.bf16.msra.mxu3 %v3093_v57  ;;  %v3061_v8 = vor.u32 %v3395_v9, %v3060_v6  ;;  %v3396_v16 = vld [vmem:[#allocation2 + $0x118] sm:$0xf0] }
 0x6eb   :  { %v1266_v22 = vmul.f32 %v1262_v3, %v1087_v19  ;;  %1677 = vmatpush.bf16.msra.mxu2 %v3077_v59  ;;  %v3065_v19 = vor.u32 %v3394_v10, %v3062_v11  ;;  %v3069_v3 = vor.u32 %v3396_v16, %v3068_v12  ;;  %v3499_v16 = vld [vmem:[%s4449_s17] ss:$0 sm:$0xff] }
 0x6ed   :  { %v1268_v23 = vpack.c.bf16 %v1266_v22, %v1264_v21  ;;  %1691 = vmatpush.bf16.msra.mxu3 %v3081_v5 }
 0x6ef   :  { %1423 = vmatmul.bf16.vlgmr.msrb.gmra.mxu0 %v1268_v23  ;;  %1678 = vmatpush.bf16.msra.mxu2 %v3065_v19  ;;  %v3048_v23 = vld [vmem:[#allocation2 + $0xf0] sm:$0xf] }
 0x6f1   :  { %1692 = vmatpush.bf16.msra.mxu3 %v3069_v3 }
 0x76b   :  { %v1410_v13 = vpop.f32.mrf.mxu3 }
 0x76c   :  { %v1411_v26 = vadd.f32 %v3498_v14, %v1410_v13  ;;  %v1424_v27 = vpop.f32.mrf.mxu0  ;;  %v3391_v13 = vld [vmem:[#allocation2 + $0xf4] sm:$0xf] }
 0x76e   :  { %v1425_v28 = vadd.f32 %v1424_v27, %v1411_v26 }
 0x770   :  { %v4137_v25 = vadd.f32 %v1425_v28, %v4007_v46  ;;  %v3108_v46 = vld [vmem:[#allocation2 + $0x168] sm:$0xf] }
 0x771   :  { %v3109_v20 = vor.u32 %v3407_v35, %v3108_v46  ;;  %v3036_v46 = vld [vmem:[#allocation2 + $0xd8] sm:$0xf]  ;;  %v3389_v35 = vld [vmem:[#allocation2 + $0xe0] sm:$0xf0] }
 0x772   :  { %1433 = vadd.xlane.f32.xlu2 %v4137_v25  ;;  %v1439_v24 = vmul.f32 %v4137_v25, %v4137_v25  ;;  %v3037_v36 = vor.u32 %v3389_v35, %v3036_v46 }
 0x773   :  { %v1412_v29 = vpop.f32.mrf.mxu3  ;;  %1660 = vmatpush.bf16.msrb.mxu1 %v3109_v20 }
 0x774   :  { %v1413_v1 = vadd.f32 %v3498_v14, %v1412_v29  ;;  %1441 = vadd.xlane.f32.xlu1 %v1439_v24  ;;  %v1426_v30 = vpop.f32.mrf.mxu0  ;;  %v3392_v14 = vld [vmem:[#allocation2 + $0xf8] sm:$0xf0]  ;;  %v3050_v29 = vld [vmem:[#allocation2 + $0xfc] sm:$0xf0]  ;;  %v3393_v24 = vld [vmem:[#allocation2 + $0x100] sm:$0xf0] }
 0x775   :  { %v3049_v28 = vor.u32 %v3392_v14, %v3048_v23  ;;  %v3500_v14 = vld [vmem:[%s4450_s18] ss:$0 sm:$0xff] }
 0x776   :  { %v1427_v31 = vadd.f32 %v1426_v30, %v1413_v1  ;;  %v3056_v1 = vld [vmem:[#allocation2 + $0xf8] sm:$0xf]  ;;  %v3053_v30 = vor.u32 %v3391_v13, %v3050_v29 }
 0x778   :  { %v4143_v32 = vadd.f32 %v1427_v31, %v4009_v48  ;;  %v3096_v48 = vld [vmem:[#allocation2 + $0x150] sm:$0xf]  ;;  %v3057_v31 = vor.u32 %v3393_v24, %v3056_v1  ;;  %1679 = vmatpush.bf16.msra.mxu2 %v3053_v30 }
 0x779   :  { %v3097_v43 = vor.u32 %v3404_v41, %v3096_v48  ;;  %v3390_v48 = vld [vmem:[#allocation2 + $0xe8] sm:$0xf0]  ;;  %v3024_v41 = vld [vmem:[#allocation2 + $0xc0] sm:$0xf] }
 0x77a   :  { %1435 = vadd.xlane.f32.xlu0 %v4143_v32  ;;  %v1440_v34 = vmul.f32 %v4143_v32, %v4143_v32  ;;  %1693 = vmatpush.bf16.msra.mxu3 %v3057_v31  ;;  %v3045_v49 = vor.u32 %v3390_v48, %v3044_v38  ;;  %v3025_v50 = vor.u32 %v3386_v42, %v3024_v41 }
 0x77b   :  { %1661 = vmatpush.bf16.msrb.mxu1 %v3097_v43 }
 0x77c   :  { %1443 = vadd.xlane.f32.xlu2 %v1440_v34  ;;  %1680 = vmatpush.bf16.msra.mxu2 %v3041_v40 }
 0x77e   :  { %1694 = vmatpush.bf16.msra.mxu3 %v3045_v49 }
 0x77f   :  { %1662 = vmatpush.bf16.msrb.mxu1 %v3085_v52  ;;  %v3387_v52 = vld [vmem:[#allocation2 + $0xd0] sm:$0xf0] }
 0x780   :  { %v3033_v55 = vor.u32 %v3387_v52, %v3032_v15  ;;  %1681 = vmatpush.bf16.msra.mxu2 %v3029_v51 }
 0x782   :  { %1695 = vmatpush.bf16.msra.mxu3 %v3033_v55 }
 0x783   :  { %1663 = vmatpush.bf16.msrb.mxu1 %v3073_v63 }
 0x787   :  { %1664 = vmatpush.bf16.msrb.mxu1 %v3061_v8 }
 0x78b   :  { %1665 = vmatpush.bf16.msrb.mxu1 %v3049_v28 }
 0x78f   :  { %1666 = vmatpush.bf16.msrb.mxu1 %v3037_v36 }
 0x793   :  { %1667 = vmatpush.bf16.msrb.mxu1 %v3025_v50 }
 0x7e5   :  { %v1434_v17 = vpop.xlane.xlu2 %1433 }
 0x7e6   :  { %v4149_v21 = vmul.f32 %v1434_v17, %v3862_v7 }
 0x7e7   :  { %v1442_v22 = vpop.xlane.xlu1 %1441 }
 0x7e8   :  { %v1447_v26 = vmul.f32 %v4149_v21, %v4149_v21  ;;  %v1445_v27 = vmul.f32 %v1442_v22, %v3862_v7  ;;  %v1475_v8 = vsub.f32 %v4137_v25, %v4149_v21 }
 0x7ea   :  { %v1449_v34 = vsub.f32 %v1445_v27, %v1447_v26 }
 0x7ec   :  { %v1451_v20 = vmax.f32 %v1449_v34, 0.0 }
 0x7ed   :  { %v1436_v39 = vpop.xlane.xlu0 %1435 }
 0x7ee   :  { %v1453_v43 = vadd.f32 1e-12, %v1451_v20  ;;  %v1438_v44 = vmul.f32 %v1436_v39, %v3862_v7 }
 0x7ef   :  { %v1444_v45 = vpop.xlane.xlu2 %1443 }
 0x7f0   :  { %3559 = vrsqrt.f32 %v1453_v43  ;;  %v1448_v53 = vmul.f32 %v1438_v44, %v1438_v44  ;;  %v1446_v54 = vmul.f32 %v1444_v45, %v3862_v7  ;;  %vm1461_vm11 = vweird.f32 %v1453_v43 }
 0x7f1   :  { %v1476_v19 = vsub.f32 %v4143_v32, %v1438_v44  ;;  %v3021_v32 = vld [vmem:[%s4440_s8 + $0x3] sm:$0x7] }
 0x7f2   :  { %v1450_v56 = vsub.f32 %v1446_v54, %v1448_v53  ;;  %v1526_v28 = vperm.slane %v3021_v32, 0  ;;  %v1527_v24 = vperm.slane %v3021_v32, 1  ;;  %v1528_v31 = vperm.slane %v3021_v32, 2 }
 0x7f4   :  { %v1452_v57 = vmax.f32 %v1450_v56, 0.0 }
 0x7f6   :  { %v3560_v61 = vpop.eup %3559  ;;  %v1454_v62 = vadd.f32 1e-12, %v1452_v57 }
 0x7f7   :  { %v1456_v0 = vmul.f32 %v3560_v61, %v1453_v43  ;;  %vm1462_vm6 = vweird.f32 %v3560_v61 }
 0x7f8   :  { %3561 = vrsqrt.f32 %v1454_v62  ;;  %vm1463_vm12 = vmor %vm1461_vm11, %vm1462_vm6  ;;  %vm1471_vm14 = vweird.f32 %v1454_v62 }
 0x7f9   :  { %v1457_v63 = vmul.f32 %v3560_v61, %v1456_v0 }
 0x7fb   :  { %v1458_v18 = vmul.f32 0.5, %v1457_v63 }
 0x7fd   :  { %v1459_v2 = vsub.f32 1.5, %v1458_v18 }
 0x7fe   :  { %v3562_v4 = vpop.eup %3561 }
 0x7ff   :  { %v1460_v59 = vmul.f32 %v3560_v61, %v1459_v2  ;;  %v1466_v5 = vmul.f32 %v3562_v4, %v1454_v62  ;;  %vm1472_vm13 = vweird.f32 %v3562_v4 }
 0x800   :  { %vm1473_vm15 = vmor %vm1471_vm14, %vm1472_vm13 }
 0x801   :  { %v1467_v6 = vmul.f32 %v3562_v4, %v1466_v5  ;;  %v1464_v9 = vsel %vm1463_vm12, %v3560_v61, %v1460_v59  ;;  %v3611_v59 = vld [vmem:[%s4463_s23] sm:$0xff] }
 0x802   :  { %v1477_v12 = vmul.f32 %v1475_v8, %v1464_v9 }
 0x803   :  { %v1468_v10 = vmul.f32 0.5, %v1467_v6 }
 0x804   :  { %v1482_v23 = vmul.f32 %v3499_v16, %v1477_v12 }
 0x805   :  { %v1469_v11 = vsub.f32 1.5, %v1468_v10 }
 0x806   :  { %v4165_v21 = vadd.f32 %v3500_v14, %v1482_v23 }
 0x807   :  { %v1470_v17 = vmul.f32 %v3562_v4, %v1469_v11 }
 0x809   :  { %v1474_v3 = vsel %vm1473_vm15, %v3562_v4, %v1470_v17 }
 0x80a   :  { %v1478_v22 = vmul.f32 %v1476_v19, %v1474_v3 }
 0x80c   :  { %v1483_v25 = vmul.f32 %v3499_v16, %v1478_v22  ;;  %v3612_v22 = vld [vmem:[%s4463_s23 + $0x8] sm:$0xff] }
 0x80e   :  { %v4167_v13 = vadd.f32 %v3500_v14, %v1483_v25 }
 0x810   :  { %v1489_v26 = vpack.c.bf16 %v4167_v13, %v4165_v21 }
 0x812   :  { %1668 = vmatmul.bf16.vlgmr.msrb.gmra.mxu1 %v1489_v26  ;;  %1682 = vmatmul.bf16.vlgmr.msra.gmra.mxu2 %v1489_v26 }
 0x813   :  { %1696 = vmatmul.bf16.vlgmr.msra.gmra.mxu3 %v1489_v26 }
 0x88f   :  { %v1669_v27 = vpop.f32.mrf.mxu1 }
 0x890   :  { %v1670_v29 = vadd.f32 %v1669_v27, %v1526_v28 }
 0x892   :  { %v1702_v46 = vpack.c.bf16 %v1670_v29, %v1670_v29 }
 0x894   :  { %v1710_v37 = vunpack.c.l.b16 %v1702_v46 }
 0x895   :  { %v1683_v1 = vpop.f32.mrf.mxu2 }
 0x896   :  { %v1697_v30 = vpop.f32.mrf.mxu3  ;;  %v1684_v60 = vadd.f32 %v1683_v1, %v1527_v24 }
 0x897   :  { %v1671_v34 = vpop.f32.mrf.mxu1  ;;  %v1698_v36 = vadd.f32 %v1697_v30, %v1528_v31 }
 0x898   :  { %v1672_v35 = vadd.f32 %v1671_v34, %v1526_v28  ;;  %v1704_v40 = vpack.c.bf16 %v1684_v60, %v1684_v60 }
 0x899   :  { %v1706_v43 = vpack.c.bf16 %v1698_v36, %v1698_v36 }
 0x89a   :  { %v1703_v20 = vpack.c.bf16 %v1672_v35, %v1672_v35  ;;  %v1715_v33 = vunpack.c.l.b16 %v1704_v40 }
 0x89b   :  { %v1767_v45 = vunpack.c.l.b16 %v1706_v43 }
 0x89c   :  { %v1711_v38 = vunpack.c.l.b16 %v1703_v20 }
 0x89d   :  { %v1685_v39 = vpop.f32.mrf.mxu2 }
 0x89e   :  { %v1712_v48 = vpack.c.b16 %v1711_v38, %v1710_v37  ;;  %v1686_v41 = vadd.f32 %v1685_v39, %v1527_v24  ;;  %v1699_v42 = vpop.f32.mrf.mxu3 }
 0x89f   :  { %v1700_v44 = vadd.f32 %v1699_v42, %v1528_v31 }
 0x8a0   :  { %v1705_v49 = vpack.c.bf16 %v1686_v41, %v1686_v41  ;;  %1788 = vrot.lane.b32.xlu1 %v1712_v48, %s3700_s7 }
 0x8a1   :  { %v1707_v50 = vpack.c.bf16 %v1700_v44, %v1700_v44 }
 0x8a2   :  { %v1716_v47 = vunpack.c.l.b16 %v1705_v49 }
 0x8a3   :  { %v1768_v51 = vunpack.c.l.b16 %v1707_v50 }
 0x8a4   :  { %v1717_v15 = vpack.c.b16 %v1716_v47, %v1715_v33 }
 0x8a5   :  { %v4175_v52 = vpack.c.b16 %v1768_v51, %v1767_v45 }
 0x8a6   :  { %1932 = vrot.lane.b32.xlu2 %v1717_v15, %s3699_s6  ;;  %1790 = vrot.lane.b32.xlu0 %v1717_v15, %s3700_s7  ;;  %v1722_v53 = vsel %vm493_vm7, %v1717_v15, 0 }
 0x8a7   :  { %1781 = vmatpush.bf16.msra.mxu1 %v4175_v52  ;;  %1731 = vmatpush.bf16.xpose.msra.mxu0 %v1722_v53 }
 0x8a8   :  { %1861 = vrot.lane.b32.xlu1 %v1717_v15, %s3696_s22 }
 0x8ae   :  { %1930 = vrot.lane.b32.xlu0 %v1712_v48, %s3699_s6  ;;  %3118 = vmatmul.msk.bf16.vlgmr.msra.gmra.mxu0 %vm493_vm7, %v1712_v48 }
 0x8b6   :  { %1859 = vrot.lane.b32.xlu0 %v1712_v48, %s3696_s22 }
 0x900   :  { %v1933_v55 = vpop.permute.xlu2 %1932 }
 0x901   :  { %v1938_v61 = vsel %vm493_vm7, %v1933_v55, 0 }
 0x912   :  { %v1789_v54 = vpop.permute.xlu1 %1788 }
 0x918   :  { %v1791_v56 = vpop.permute.xlu0 %1790 }
 0x919   :  { %v1796_v57 = vsel %vm493_vm7, %v1791_v56, 0 }
 0x91a   :  { %1805 = vmatpush.bf16.xpose.msrb.mxu2 %v1796_v57  ;;  %v1862_v0 = vpop.permute.xlu1 %1861 }
 0x91b   :  { %v1867_v62 = vsel %vm493_vm7, %v1862_v0, 0 }
 0x91c   :  { %1876 = vmatpush.bf16.xpose.msrb.mxu0 %v1867_v62 }
 0x920   :  { %v1931_v63 = vpop.permute.xlu0 %1930 }
 0x921   :  { %3120 = vmatmul.msk.bf16.vlgmr.msrb.gmra.mxu2 %vm493_vm7, %v1789_v54 }
 0x922   :  { %1947 = vmatpush.bf16.xpose.msra.mxu2 %v1938_v61 }
 0x928   :  { %v1860_v18 = vpop.permute.xlu0 %1859 }
 0x929   :  { %3122 = vmatmul.msk.bf16.vlgmr.msrb.gmra.mxu0 %vm493_vm7, %v1860_v18 }
 0x92b   :  { %v1733_v2 = vpop.f32.mrf.mxu0 }
 0x92c   :  { %v1738_v4 = vmul.f32 0.17677669, %v1733_v2 }
 0x92e   :  { %v1740_v5 = vadd.f32 %v3611_v59, %v1738_v4 }
 0x930   :  { %v1742_v6 = vsel %vm518_vm8, %v1740_v5, -inf }
 0x931   :  { %3124 = vmatmul.msk.bf16.vlgmr.msra.gmra.mxu2 %vm493_vm7, %v1931_v63  ;;  %1743 = vmax.xlane.f32.xlu0 %v1742_v6 }
 0x933   :  { %v1735_v9 = vpop.f32.mrf.mxu0 }
 0x934   :  { %v1739_v16 = vmul.f32 0.17677669, %v1735_v9 }
 0x936   :  { %v1741_v23 = vadd.f32 %v3612_v22, %v1739_v16 }
 0x938   :  { %v1745_v28 = vsel %vm518_vm8, %v1741_v23, -inf }
 0x9a4   :  { %v1807_v10 = vpop.f32.mrf.mxu2  ;;  %v1744_v29 = vpop.xlane.xlu0 %1743 }
 0x9a5   :  { %v1812_v8 = vmul.f32 0.17677669, %v1807_v10  ;;  %v1748_v31 = vsub.f32 %v1740_v5, %v1744_v29 }
 0x9a6   :  { %v1878_v11 = vpop.f32.mrf.mxu0 }
 0x9a7   :  { %v1814_v12 = vadd.f32 %v3611_v59, %v1812_v8  ;;  %v1883_v26 = vmul.f32 0.17677669, %v1878_v11  ;;  %v1750_v60 = vmul.f32 1.442695, %v1748_v31 }
 0x9a9   :  { %v1816_v17 = vsel %vm518_vm8, %v1814_v12, -inf  ;;  %v1885_v24 = vadd.f32 %v3611_v59, %v1883_v26  ;;  %3563 = vpow2.f32 %v1750_v60 }
 0x9aa   :  { %1817 = vmax.xlane.f32.xlu2 %v1816_v17 }
 0x9ab   :  { %v1887_v35 = vsel %vm518_vm8, %v1885_v24, -inf }
 0x9ac   :  { %v1809_v19 = vpop.f32.mrf.mxu2 }
 0x9ad   :  { %v1813_v3 = vmul.f32 0.17677669, %v1809_v19 }
 0x9ae   :  { %v1880_v14 = vpop.f32.mrf.mxu0 }
 0x9af   :  { %v1815_v25 = vadd.f32 %v3612_v22, %v1813_v3  ;;  %v1884_v32 = vmul.f32 0.17677669, %v1880_v14  ;;  %v3564_v37 = vpop.eup %3563 }
 0x9b0   :  { %v1754_v38 = vsel %vm518_vm8, %v3564_v37, 0.0 }
 0x9b1   :  { %v1819_v27 = vsel %vm518_vm8, %v1815_v25, -inf  ;;  %v1886_v1 = vadd.f32 %v3612_v22, %v1884_v32 }
 0x9b2   :  { %1820 = vmax.xlane.f32.xlu1 %v1819_v27  ;;  %1746 = vmax.xlane.f32.xlu2 %v1745_v28 }
 0x9b3   :  { %v1890_v46 = vsel %vm518_vm8, %v1886_v1, -inf }
 0x9b4   :  { %v1949_v30 = vpop.f32.mrf.mxu2 }
 0x9b5   :  { %v1954_v34 = vmul.f32 0.17677669, %v1949_v30 }
 0x9b7   :  { %v1956_v20 = vadd.f32 %v3611_v59, %v1954_v34 }
 0x9b9   :  { %v1958_v36 = vsel %vm518_vm8, %v1956_v20, -inf }
 0x9ba   :  { %1891 = vmax.xlane.f32.xlu1 %v1890_v46  ;;  %1888 = vmax.xlane.f32.xlu2 %v1887_v35 }
 0x9bc   :  { %v1951_v47 = vpop.f32.mrf.mxu2 }
 0x9bd   :  { %v1955_v55 = vmul.f32 0.17677669, %v1951_v47 }
 0x9bf   :  { %v1957_v62 = vadd.f32 %v3612_v22, %v1955_v55  ;;  %v3414_v55 = vld [vmem:[%s4441_s9 + $0x68] sm:$0xff] }
 0x9c1   :  { %v1961_v4 = vsel %vm518_vm8, %v1957_v62, -inf }
 0x9c2   :  { %1959 = vmax.xlane.f32.xlu1 %v1958_v36 }
 0x9ca   :  { %1755 = vadd.xlane.f32.xlu1 %v1754_v38 }
 0xa1d   :  { %v1818_v39 = vpop.xlane.xlu2 %1817 }
 0xa1e   :  { %v1822_v53 = vsub.f32 %v1814_v12, %v1818_v39 }
 0xa20   :  { %v1824_v57 = vmul.f32 1.442695, %v1822_v53  ;;  %v3415_v53 = vld [vmem:[%s4441_s9 + $0x70] sm:$0xff] }
 0xa25   :  { %v1821_v40 = vpop.xlane.xlu1 %1820  ;;  %v1747_v48 = vpop.xlane.xlu2 %1746 }
 0xa26   :  { %v1823_v41 = vsub.f32 %v1815_v25, %v1821_v40  ;;  %v1749_v42 = vsub.f32 %v1741_v23, %v1747_v48 }
 0xa28   :  { %v1826_v43 = vmul.f32 1.442695, %v1823_v41  ;;  %v1752_v44 = vmul.f32 1.442695, %v1749_v42 }
 0xa2a   :  { %3565 = vpow2.f32 %v1826_v43 }
 0xa2b   :  { %3567 = vpow2.f32 %v1752_v44 }
 0xa2d   :  { %v1892_v49 = vpop.xlane.xlu1 %1891  ;;  %v1889_v50 = vpop.xlane.xlu2 %1888 }
 0xa2e   :  { %v1893_v33 = vsub.f32 %v1885_v24, %v1889_v50  ;;  %v1894_v2 = vsub.f32 %v1886_v1, %v1892_v49 }
 0xa30   :  { %v3566_v45 = vpop.eup %3565  ;;  %v1895_v51 = vmul.f32 1.442695, %v1893_v33  ;;  %v1897_v5 = vmul.f32 1.442695, %v1894_v2  ;;  %v3413_v2 = vld [vmem:[%s4441_s9 + $0x60] sm:$0xff] }
 0xa31   :  { %v3568_v15 = vpop.eup %3567  ;;  %v1831_v54 = vsel %vm518_vm8, %v3566_v45, 0.0 }
 0xa32   :  { %1832 = vadd.xlane.f32.xlu2 %v1831_v54  ;;  %v1757_v56 = vsel %vm518_vm8, %v3568_v15, 0.0  ;;  %3569 = vpow2.f32 %v1895_v51 }
 0xa33   :  { %1758 = vadd.xlane.f32.xlu0 %v1757_v56  ;;  %3571 = vpow2.f32 %v1824_v57 }
 0xa35   :  { %v1960_v61 = vpop.xlane.xlu1 %1959 }
 0xa36   :  { %v1964_v0 = vsub.f32 %v1956_v20, %v1960_v61 }
 0xa38   :  { %v1966_v63 = vmul.f32 1.442695, %v1964_v0  ;;  %v4207_v18 = vpop.eup %3569 }
 0xa39   :  { %v1899_v59 = vsel %vm518_vm8, %v4207_v18, 0.0  ;;  %v3572_v6 = vpop.eup %3571 }
 0xa3a   :  { %3573 = vpow2.f32 %v1966_v63  ;;  %1900 = vadd.xlane.f32.xlu1 %v1899_v59  ;;  %v1828_v8 = vsel %vm518_vm8, %v3572_v6, 0.0  ;;  %v3411_v59 = vld [vmem:[%s4441_s9 + $0x50] sm:$0xff] }
 0xa3b   :  { %1962 = vmax.xlane.f32.xlu0 %v1961_v4  ;;  %3575 = vpow2.f32 %v1897_v5  ;;  %v3412_v4 = vld [vmem:[%s4441_s9 + $0x58] sm:$0xff]  ;;  %v3410_v5 = vld [vmem:[%s4441_s9 + $0x48] sm:$0xff] }
 0xa3d   :  { %v1756_v16 = vpop.xlane.xlu1 %1755 }
 0xa3e   :  { %3577 = vrcp.f32 %v1756_v16 }
 0xa40   :  { %v3574_v9 = vpop.eup %3573 }
 0xa41   :  { %v1970_v10 = vsel %vm518_vm8, %v3574_v9, 0.0  ;;  %v3576_v11 = vpop.eup %3575 }
 0xa42   :  { %1971 = vadd.xlane.f32.xlu1 %v1970_v10  ;;  %v1902_v12 = vsel %vm518_vm8, %v3576_v11, 0.0 }
 0xa43   :  { %1829 = vadd.xlane.f32.xlu0 %v1828_v8 }
 0xa44   :  { %v3578_v3 = vpop.eup %3577 }
 0xa45   :  { %v1762_v14 = vmul.f32 %v3578_v3, %v3564_v37 }
 0xa4a   :  { %1839 = vrot.lane.b32.xlu2 %v4175_v52, %s3700_s7 }
 0xa4b   :  { %1903 = vadd.xlane.f32.xlu0 %v1902_v12 }
 0xa5b   :  { %1981 = vrot.lane.b32.xlu1 %v4175_v52, %s3699_s6 }
 0xaa5   :  { %v1833_v17 = vpop.xlane.xlu2 %1832 }
 0xaa6   :  { %v1759_v19 = vpop.xlane.xlu0 %1758 }
 0xaa7   :  { %3579 = vrcp.f32 %v1759_v19 }
 0xaad   :  { %v3580_v22 = vpop.eup %3579  ;;  %v1840_v23 = vpop.permute.xlu2 %1839 }
 0xaae   :  { %v1763_v25 = vmul.f32 %v3580_v22, %v3568_v15  ;;  %v1963_v26 = vpop.xlane.xlu0 %1962  ;;  %1852 = vmatpush.bf16.msrb.mxu3 %v1840_v23  ;;  %v1901_v31 = vpop.xlane.xlu1 %1900  ;;  %v3416_v15 = vld [vmem:[%s4441_s9 + $0x78] sm:$0xff] }
 0xaaf   :  { %v1965_v32 = vsub.f32 %v1957_v62, %v1963_v26  ;;  %2102 = vmatpush.bf16.msra.mxu0 %v3416_v15 }
 0xab0   :  { %v1764_v27 = vpack.c.bf16 %v1763_v25, %v1762_v14 }
 0xab1   :  { %v1968_v28 = vmul.f32 1.442695, %v1965_v32 }
 0xab2   :  { %3119 = vmatmul.msk.bf16.vlgmr.msra.gmra.mxu1 %vm518_vm8, %v1764_v27 }
 0xab3   :  { %3581 = vpow2.f32 %v1968_v28  ;;  %2103 = vmatpush.bf16.msra.mxu0 %v3415_v53  ;;  %v3501_v28 = vld [vmem:[%s4442_s10 + $0x1] ss:$0 sm:$0xff]  ;;  %v3214_v53 = vld [vmem:[#allocation4 + $0xc8] sm:$0xf0] }
 0xab4   :  { %3583 = vrcp.f32 %v1833_v17 }
 0xab6   :  { %v1830_v29 = vpop.xlane.xlu0 %1829  ;;  %v1972_v20 = vpop.xlane.xlu1 %1971 }
 0xab7   :  { %3585 = vrcp.f32 %v1830_v29  ;;  %2104 = vmatpush.bf16.msra.mxu0 %v3414_v55  ;;  %v3204_v55 = vld [vmem:[#allocation4 + $0xb0] sm:$0xf] }
 0xab8   :  { %3587 = vrcp.f32 %v1972_v20  ;;  %v3431_v20 = vld [vmem:[#allocation4 + $0xf4] sm:$0xf] }
 0xab9   :  { %v3582_v1 = vpop.eup %3581 }
 0xaba   :  { %v1973_v24 = vsel %vm518_vm8, %v3582_v1, 0.0  ;;  %v3584_v30 = vpop.eup %3583 }
 0xabb   :  { %1974 = vadd.xlane.f32.xlu0 %v1973_v24  ;;  %v1837_v46 = vmul.f32 %v3584_v30, %v3566_v45  ;;  %2105 = vmatpush.bf16.msra.mxu0 %v3413_v2  ;;  %v3422_v2 = vld [vmem:[#allocation4 + $0xa4] sm:$0xf0] }
 0xabd   :  { %v3586_v34 = vpop.eup %3585 }
 0xabe   :  { %v1836_v35 = vmul.f32 %v3586_v34, %v3572_v6  ;;  %v1904_v37 = vpop.xlane.xlu0 %1903  ;;  %v3588_v39 = vpop.eup %3587  ;;  %v3409_v6 = vld [vmem:[%s4441_s9 + $0x40] sm:$0xff] }
 0xabf   :  { %v1978_v48 = vmul.f32 %v3588_v39, %v3574_v9  ;;  %2106 = vmatpush.bf16.msra.mxu0 %v3412_v4  ;;  %v3228_v39 = vld [vmem:[#allocation4 + $0xe0] sm:$0xf]  ;;  %v3421_v4 = vld [vmem:[#allocation4 + $0xa4] sm:$0xf] }
 0xac0   :  { %v1838_v60 = vpack.c.bf16 %v1837_v46, %v1836_v35 }
 0xac2   :  { %3121 = vmatmul.msk.bf16.vlgmr.msrb.gmra.mxu3 %vm518_vm8, %v1838_v60  ;;  %v3236_v60 = vld [vmem:[#allocation4 + $0xf0] sm:$0xf] }
 0xac3   :  { %2107 = vmatpush.bf16.msra.mxu0 %v3411_v59 }
 0xac7   :  { %2108 = vmatpush.bf16.msra.mxu0 %v3410_v5 }
 0xacb   :  { %2109 = vmatpush.bf16.msra.mxu0 %v3409_v6  ;;  %v3198_v6 = vld [vmem:[#allocation4 + $0xa8] sm:$0xf0] }
 0xacd   :  { %v1982_v36 = vpop.permute.xlu1 %1981 }
 0xace   :  { %1994 = vmatpush.bf16.msra.mxu3 %v1982_v36 }
 0xacf   :  { %1910 = vrot.lane.b32.xlu0 %v4175_v52, %s3696_s22 }
 0xb2e   :  { %v1975_v38 = vpop.xlane.xlu0 %1974 }
 0xb2f   :  { %3589 = vrcp.f32 %v1975_v38  ;;  %v1783_v47 = vpop.f32.mrf.mxu1 }
 0xb30   :  { %3591 = vrcp.f32 %v1904_v37  ;;  %v3238_v37 = vld [vmem:[#allocation4 + $0xf8] sm:$0xf0] }
 0xb31   :  { %3593 = vrcp.f32 %v1901_v31  ;;  %v3241_v38 = vor.u32 %v3431_v20, %v3238_v37 }
 0xb33   :  { %2297 = vmatpush.bf16.msrb.mxu2 %v3241_v38 }
 0xb35   :  { %v3590_v40 = vpop.eup %3589 }
 0xb36   :  { %v1979_v41 = vmul.f32 %v3590_v40, %v3582_v1  ;;  %v3592_v43 = vpop.eup %3591  ;;  %v3430_v40 = vld [vmem:[#allocation4 + $0xe4] sm:$0xf0] }
 0xb37   :  { %v3594_v44 = vpop.eup %3593  ;;  %v1908_v49 = vmul.f32 %v3592_v43, %v3576_v11  ;;  %v1785_v45 = vpop.f32.mrf.mxu1  ;;  %v3220_v43 = vld [vmem:[#allocation4 + $0xd0] sm:$0xf] }
 0xb38   :  { %v1980_v42 = vpack.c.bf16 %v1979_v41, %v1978_v48  ;;  %v1907_v50 = vmul.f32 %v3594_v44, %v4207_v18  ;;  %v3429_v48 = vld [vmem:[#allocation4 + $0xe4] sm:$0xf]  ;;  %v3229_v41 = vor.u32 %v3430_v40, %v3228_v39  ;;  %v3428_v44 = vld [vmem:[#allocation4 + $0xd4] sm:$0xf0] }
 0xb3a   :  { %3125 = vmatmul.msk.bf16.vlgmr.msra.gmra.mxu3 %vm518_vm8, %v1980_v42  ;;  %v1909_v33 = vpack.c.bf16 %v1908_v49, %v1907_v50  ;;  %v3427_v49 = vld [vmem:[#allocation4 + $0xd4] sm:$0xf]  ;;  %v3221_v50 = vor.u32 %v3428_v44, %v3220_v43 }
 0xb41   :  { %v1911_v52 = vpop.permute.xlu0 %1910 }
 0xb42   :  { %1923 = vmatpush.bf16.msrb.mxu1 %v1911_v52  ;;  %v3222_v52 = vld [vmem:[#allocation4 + $0xd8] sm:$0xf0] }
 0xb45   :  { %3123 = vmatmul.msk.bf16.vlgmr.msrb.gmra.mxu1 %vm518_vm8, %v1909_v33  ;;  %v1854_v51 = vpop.f32.mrf.mxu3  ;;  %v3225_v33 = vor.u32 %v3427_v49, %v3222_v52 }
 0xb4d   :  { %v1856_v56 = vpop.f32.mrf.mxu3 }
 0xb4e   :  { %v3482_v62 = vpack.i.bf16 %v1856_v56, %v1854_v51  ;;  %v3425_v51 = vld [vmem:[#allocation4 + $0xc4] sm:$0xf]  ;;  %v3424_v56 = vld [vmem:[#allocation4 + $0xb4] sm:$0xf0] }
 0xbbd   :  { %v1996_v0 = vpop.f32.mrf.mxu3 }
 0xbc2   :  { %v1925_v54 = vpop.f32.mrf.mxu1 }
 0xbc5   :  { %v1998_v63 = vpop.f32.mrf.mxu3 }
 0xbc6   :  { %v3487_v18 = vpack.i.bf16 %v1998_v63, %v1996_v0  ;;  %v3206_v0 = vld [vmem:[#allocation4 + $0xb8] sm:$0xf0] }
 0xbca   :  { %v1927_v57 = vpop.f32.mrf.mxu1 }
 0xbcb   :  { %v3477_v61 = vpack.i.bf16 %v1927_v57, %v1925_v54  ;;  %v3217_v54 = vor.u32 %v3425_v51, %v3214_v53  ;;  %v3423_v57 = vld [vmem:[#allocation4 + $0xb4] sm:$0xf] }
 0xbcd   :  { %3478 = vrot.lane.b32.xlu2 %v3477_v61, %s3696_s22  ;;  %v3205_v61 = vor.u32 %v3424_v56, %v3204_v55  ;;  %v3503_v55 = vld [vmem:[%s4444_s12 + $0x1] ss:$0 sm:$0xff] }
 0xbd5   :  { %3483 = vrot.lane.b32.xlu2 %v3482_v62, %s3699_s6  ;;  %v3209_v62 = vor.u32 %v3423_v57, %v3206_v0 }
 0xbdd   :  { %3488 = vrot.lane.b32.xlu2 %v3487_v18, %s3700_s7  ;;  %v3196_v18 = vld [vmem:[#allocation4 + $0xa0] sm:$0xf] }
 0xbde   :  { %v3197_v5 = vor.u32 %v3422_v2, %v3196_v18 }
 0xc27   :  { %v3479_v9 = vpop.permute.xlu2 %3478 }
 0xc28   :  { %v3481_v17 = vunpack.i.h.bf16 %v3479_v9  ;;  %v3480_v19 = vunpack.i.l.bf16 %v3479_v9 }
 0xc2f   :  { %v3484_v10 = vpop.permute.xlu2 %3483 }
 0xc30   :  { %v3486_v8 = vunpack.i.h.bf16 %v3484_v10  ;;  %v3485_v11 = vunpack.i.l.bf16 %v3484_v10  ;;  %v3201_v10 = vor.u32 %v3421_v4, %v3198_v6 }
 0xc32   :  { %v2026_v12 = vsel %vm493_vm7, %v1785_v45, %v3486_v8  ;;  %v2025_v16 = vsel %vm493_vm7, %v1783_v47, %v3485_v11  ;;  %v3212_v47 = vld [vmem:[#allocation4 + $0xc0] sm:$0xf]  ;;  %v3426_v45 = vld [vmem:[#allocation4 + $0xc4] sm:$0xf0] }
 0xc33   :  { %v2027_v14 = vsel %vm804_vm9, %v2025_v16, %v3480_v19  ;;  %v2028_v25 = vsel %vm804_vm9, %v2026_v12, %v3481_v17  ;;  %v3213_v15 = vor.u32 %v3426_v45, %v3212_v47  ;;  %v3188_v12 = vld [vmem:[#allocation4 + $0x90] sm:$0xf]  ;;  %v3420_v16 = vld [vmem:[#allocation4 + $0x94] sm:$0xf0]  ;;  %v3419_v17 = vld [vmem:[#allocation4 + $0x94] sm:$0xf] }
 0xc34   :  { %v3502_v47 = vld [vmem:[%s4443_s11 + $0x1] ss:$0 sm:$0xff] }
 0xc37   :  { %v3489_v3 = vpop.permute.xlu2 %3488 }
 0xc38   :  { %v3491_v22 = vunpack.i.h.bf16 %v3489_v3  ;;  %v3490_v23 = vunpack.i.l.bf16 %v3489_v3  ;;  %v3189_v3 = vor.u32 %v3420_v16, %v3188_v12 }
 0xc3a   :  { %v2029_v26 = vsel %vm807_vm10, %v2027_v14, %v3490_v23  ;;  %v2030_v32 = vsel %vm807_vm10, %v2028_v25, %v3491_v22  ;;  %v3190_v22 = vld [vmem:[#allocation4 + $0x98] sm:$0xf0]  ;;  %v3180_v14 = vld [vmem:[#allocation4 + $0x80] sm:$0xf]  ;;  %v3418_v25 = vld [vmem:[#allocation4 + $0x84] sm:$0xf0] }
 0xc3b   :  { %v2031_v27 = vpack.c.bf16 %v2030_v32, %v2029_v26  ;;  %v3193_v23 = vor.u32 %v3419_v17, %v3190_v22  ;;  %v3417_v26 = vld [vmem:[#allocation4 + $0x84] sm:$0xf]  ;;  %v3439_v22 = vld [vmem:[#allocation6 + $0xb0] sm:$0xff] }
 0xc3d   :  { %2110 = vmatmul.bf16.vlgmr.msra.gmra.mxu0 %v2031_v27  ;;  %v3181_v27 = vor.u32 %v3418_v25, %v3180_v14 }
 0xcba   :  { %v2111_v29 = vpop.f32.mrf.mxu0 }
 0xcbb   :  { %v2112_v1 = vadd.f32 %v3501_v28, %v2111_v29 }
 0xcbd   :  { %v4264_v24 = vadd.f32 %v2112_v1, %v4165_v21  ;;  %v3432_v21 = vld [vmem:[#allocation4 + $0xf4] sm:$0xf0] }
 0xcbe   :  { %v3237_v36 = vor.u32 %v3432_v21, %v3236_v60 }
 0xcbf   :  { %2122 = vadd.xlane.f32.xlu0 %v4264_v24  ;;  %v2128_v30 = vmul.f32 %v4264_v24, %v4264_v24 }
 0xcc0   :  { %2283 = vmatpush.bf16.msra.mxu1 %v3237_v36 }
 0xcc1   :  { %2130 = vadd.xlane.f32.xlu2 %v2128_v30 }
 0xcc2   :  { %v2113_v31 = vpop.f32.mrf.mxu0 }
 0xcc3   :  { %v2114_v34 = vadd.f32 %v3501_v28, %v2113_v31  ;;  %v3182_v28 = vld [vmem:[#allocation4 + $0x88] sm:$0xf0] }
 0xcc4   :  { %2284 = vmatpush.bf16.msra.mxu1 %v3229_v41  ;;  %v3185_v1 = vor.u32 %v3417_v26, %v3182_v28  ;;  %v3448_v26 = vld [vmem:[#allocation6 + $0xf8] sm:$0xff] }
 0xcc5   :  { %v4270_v46 = vadd.f32 %v2114_v34, %v4167_v13  ;;  %v3230_v13 = vld [vmem:[#allocation4 + $0xe8] sm:$0xf0]  ;;  %2637 = vmatpush.bf16.msrb.mxu0 %v3448_v26 }
 0xcc6   :  { %v3233_v42 = vor.u32 %v3429_v48, %v3230_v13 }
 0xcc7   :  { %2124 = vadd.xlane.f32.xlu1 %v4270_v46  ;;  %v2129_v35 = vmul.f32 %v4270_v46, %v4270_v46 }
 0xcc8   :  { %2298 = vmatpush.bf16.msrb.mxu2 %v3233_v42  ;;  %2285 = vmatpush.bf16.msra.mxu1 %v3221_v50 }
 0xcc9   :  { %2132 = vadd.xlane.f32.xlu0 %v2129_v35 }
 0xccc   :  { %2299 = vmatpush.bf16.msrb.mxu2 %v3225_v33  ;;  %2286 = vmatpush.bf16.msra.mxu1 %v3213_v15 }
 0xcd0   :  { %2300 = vmatpush.bf16.msrb.mxu2 %v3217_v54  ;;  %2287 = vmatpush.bf16.msra.mxu1 %v3205_v61 }
 0xcd4   :  { %2301 = vmatpush.bf16.msrb.mxu2 %v3209_v62  ;;  %2288 = vmatpush.bf16.msra.mxu1 %v3197_v5 }
 0xcd8   :  { %2302 = vmatpush.bf16.msrb.mxu2 %v3201_v10  ;;  %2289 = vmatpush.bf16.msra.mxu1 %v3189_v3 }
 0xcdc   :  { %2303 = vmatpush.bf16.msrb.mxu2 %v3193_v23  ;;  %2290 = vmatpush.bf16.msra.mxu1 %v3181_v27 }
 0xce0   :  { %2304 = vmatpush.bf16.msrb.mxu2 %v3185_v1 }
 0xd32   :  { %v2123_v63 = vpop.xlane.xlu0 %2122 }
 0xd33   :  { %v2126_v59 = vmul.f32 %v2123_v63, %v3862_v7 }
 0xd34   :  { %v2131_v9 = vpop.xlane.xlu2 %2130 }
 0xd35   :  { %v2136_v8 = vmul.f32 %v2126_v59, %v2126_v59  ;;  %v2134_v11 = vmul.f32 %v2131_v9, %v3862_v7  ;;  %v2164_v50 = vsub.f32 %v4264_v24, %v2126_v59  ;;  %v3440_v9 = vld [vmem:[#allocation6 + $0xb8] sm:$0xff] }
 0xd36   :  { %2623 = vmatpush.bf16.msrb.mxu3 %v3440_v9 }
 0xd37   :  { %v2138_v19 = vsub.f32 %v2134_v11, %v2136_v8 }
 0xd39   :  { %v2140_v32 = vmax.f32 %v2138_v19, 0.0 }
 0xd3a   :  { %v2125_v29 = vpop.xlane.xlu1 %2124  ;;  %2624 = vmatpush.bf16.msrb.mxu3 %v3439_v22 }
 0xd3b   :  { %v2142_v30 = vadd.f32 1e-12, %v2140_v32  ;;  %v2127_v31 = vmul.f32 %v2125_v29, %v3862_v7 }
 0xd3c   :  { %v2133_v34 = vpop.xlane.xlu0 %2132 }
 0xd3d   :  { %3595 = vrsqrt.f32 %v2142_v30  ;;  %v2137_v35 = vmul.f32 %v2127_v31, %v2127_v31  ;;  %v2135_v60 = vmul.f32 %v2133_v34, %v3862_v7  ;;  %vm2150_vm8 = vweird.f32 %v2142_v30  ;;  %v3438_v34 = vld [vmem:[#allocation6 + $0xa8] sm:$0xff] }
 0xd3e   :  { %v2165_v51 = vsub.f32 %v4270_v46, %v2127_v31  ;;  %v3177_v46 = vld [vmem:[%s4446_s14 + $0x2] sm:$0x3]  ;;  %2625 = vmatpush.bf16.msrb.mxu3 %v3438_v34 }
 0xd3f   :  { %v2139_v21 = vsub.f32 %v2135_v60, %v2137_v35  ;;  %v2199_v0 = vperm.slane %v3177_v46, 0  ;;  %v2200_v2 = vperm.slane %v3177_v46, 1 }
 0xd41   :  { %v2141_v20 = vmax.f32 %v2139_v21, 0.0  ;;  %v3447_v21 = vld [vmem:[#allocation6 + $0xf0] sm:$0xff] }
 0xd42   :  { %2638 = vmatpush.bf16.msrb.mxu0 %v3447_v21 }
 0xd43   :  { %v3596_v36 = vpop.eup %3595  ;;  %v2143_v38 = vadd.f32 1e-12, %v2141_v20 }
 0xd44   :  { %v2145_v37 = vmul.f32 %v3596_v36, %v2142_v30  ;;  %vm2151_vm7 = vweird.f32 %v3596_v36 }
 0xd45   :  { %3597 = vrsqrt.f32 %v2143_v38  ;;  %vm2152_vm9 = vmor %vm2150_vm8, %vm2151_vm7  ;;  %vm2160_vm0 = vweird.f32 %v2143_v38 }
 0xd46   :  { %v2146_v39 = vmul.f32 %v3596_v36, %v2145_v37 }
 0xd48   :  { %v2147_v40 = vmul.f32 0.5, %v2146_v39 }
 0xd4a   :  { %v2148_v48 = vsub.f32 1.5, %v2147_v40 }
 0xd4b   :  { %v3598_v41 = vpop.eup %3597 }
 0xd4c   :  { %v2149_v13 = vmul.f32 %v3596_v36, %v2148_v48  ;;  %v2155_v42 = vmul.f32 %v3598_v41, %v2143_v38  ;;  %vm2161_vm10 = vweird.f32 %v3598_v41  ;;  %v3437_v48 = vld [vmem:[#allocation6 + $0xa0] sm:$0xff] }
 0xd4d   :  { %vm2162_vm1 = vmor %vm2160_vm0, %vm2161_vm10  ;;  %2626 = vmatpush.bf16.msrb.mxu3 %v3437_v48 }
 0xd4e   :  { %v2156_v43 = vmul.f32 %v3598_v41, %v2155_v42  ;;  %v2153_v44 = vsel %vm2152_vm9, %v3596_v36, %v2149_v13 }
 0xd4f   :  { %v2166_v33 = vmul.f32 %v2164_v50, %v2153_v44  ;;  %v3446_v50 = vld [vmem:[#allocation6 + $0xe8] sm:$0xff] }
 0xd50   :  { %v2157_v49 = vmul.f32 0.5, %v2156_v43  ;;  %2639 = vmatpush.bf16.msrb.mxu0 %v3446_v50  ;;  %v3442_v50 = vld [vmem:[#allocation6 + $0xc8] sm:$0xff] }
 0xd51   :  { %v2171_v54 = vmul.f32 %v3502_v47, %v2166_v33 }
 0xd52   :  { %v2158_v52 = vsub.f32 1.5, %v2157_v49 }
 0xd53   :  { %v4287_v56 = vadd.f32 %v3503_v55, %v2171_v54 }
 0xd54   :  { %v2159_v45 = vmul.f32 %v3598_v41, %v2158_v52 }
 0xd56   :  { %v2163_v15 = vsel %vm2162_vm1, %v3598_v41, %v2159_v45 }
 0xd57   :  { %v2167_v53 = vmul.f32 %v2165_v51, %v2163_v15  ;;  %v3436_v15 = vld [vmem:[#allocation6 + $0x98] sm:$0xff] }
 0xd58   :  { %2627 = vmatpush.bf16.msrb.mxu3 %v3436_v15 }
 0xd59   :  { %v2172_v24 = vmul.f32 %v3502_v47, %v2167_v53 }
 0xd5b   :  { %v4289_v57 = vadd.f32 %v3503_v55, %v2172_v24 }
 0xd5d   :  { %v2178_v61 = vpack.c.bf16 %v4289_v57, %v4287_v56 }
 0xd5f   :  { %2291 = vmatmul.bf16.vlgmr.msra.gmra.mxu1 %v2178_v61  ;;  %2305 = vmatmul.bf16.vlgmr.msrb.gmra.mxu2 %v2178_v61 }
 0xddc   :  { %v2292_v62 = vpop.f32.mrf.mxu1 }
 0xddd   :  { %v4296_v63 = vadd.f32 %v2292_v62, %v2199_v0  ;;  %v3445_v62 = vld [vmem:[#allocation6 + $0xe0] sm:$0xff] }
 0xdde   :  { %2640 = vmatpush.bf16.msrb.mxu0 %v3445_v62 }
 0xddf   :  { %v4300_v18 = vmul.f32 %v4296_v63, %v4016_v58 }
 0xde1   :  { %v2319_v4 = vmul.f32 %v4300_v18, %v4300_v18 }
 0xde2   :  { %v2306_v59 = vpop.f32.mrf.mxu2 }
 0xde3   :  { %v4304_v5 = vmin.f32 %v2319_v4, 16.0  ;;  %v4306_v6 = vadd.f32 %v2306_v59, %v2200_v2 }
 0xde4   :  { %v2294_v10 = vpop.f32.mrf.mxu1 }
 0xde5   :  { %v2321_v8 = vmul.f32 2.1237322e-06, %v4304_v5  ;;  %v2332_v11 = vmul.f32 3.8918573e-05, %v4304_v5  ;;  %v4312_v12 = vmul.f32 %v4306_v6, %v4016_v58  ;;  %v4314_v16 = vadd.f32 %v2294_v10, %v2199_v0 }
 0xde7   :  { %v2322_v17 = vadd.f32 0.00028619796, %v2321_v8  ;;  %v2333_v19 = vadd.f32 0.001143296, %v2332_v11  ;;  %v2359_v3 = vmul.f32 %v4312_v12, %v4312_v12  ;;  %v4320_v23 = vmul.f32 %v4314_v16, %v4016_v58  ;;  %v3435_v8 = vld [vmem:[#allocation6 + $0x90] sm:$0xff] }
 0xde8   :  { %2628 = vmatpush.bf16.msrb.mxu3 %v3435_v8 }
 0xde9   :  { %v2334_v14 = vmul.f32 %v2333_v19, %v4304_v5  ;;  %v4323_v25 = vmin.f32 %v2359_v3, 16.0  ;;  %v2399_v32 = vmul.f32 %v4320_v23, %v4320_v23  ;;  %v2323_v28 = vmul.f32 %v2322_v17, %v4304_v5 }
 0xdea   :  { %v2308_v27 = vpop.f32.mrf.mxu2 }
 0xdeb   :  { %v2335_v29 = vadd.f32 0.014752088, %v2334_v14  ;;  %v4328_v1 = vadd.f32 %v2308_v27, %v2200_v2  ;;  %v2372_v30 = vmul.f32 3.8918573e-05, %v4323_v25  ;;  %v4331_v31 = vmin.f32 %v2399_v32, 16.0  ;;  %v3444_v14 = vld [vmem:[#allocation6 + $0xd8] sm:$0xff] }
 0xdec   :  { %v2361_v60 = vmul.f32 2.1237322e-06, %v4323_v25  ;;  %v2324_v39 = vadd.f32 0.0036580483, %v2323_v28  ;;  %2641 = vmatpush.bf16.msrb.mxu0 %v3444_v14  ;;  %v3434_v28 = vld [vmem:[#allocation6 + $0x88] sm:$0xff] }
 0xded   :  { %v2336_v35 = vmul.f32 %v2335_v29, %v4304_v5  ;;  %v2373_v20 = vadd.f32 0.001143296, %v2372_v30  ;;  %v2401_v36 = vmul.f32 2.1237322e-06, %v4331_v31  ;;  %v2412_v37 = vmul.f32 3.8918573e-05, %v4331_v31  ;;  %2629 = vmatpush.bf16.msrb.mxu3 %v3434_v28 }
 0xdee   :  { %v4339_v38 = vmul.f32 %v4328_v1, %v4016_v58  ;;  %v2362_v49 = vadd.f32 0.00028619796, %v2361_v60  ;;  %v2325_v45 = vmul.f32 %v2324_v39, %v4304_v5 }
 0xdef   :  { %v2337_v40 = vadd.f32 0.112945676, %v2336_v35  ;;  %v2374_v41 = vmul.f32 %v2373_v20, %v4323_v25  ;;  %v2402_v13 = vadd.f32 0.00028619796, %v2401_v36  ;;  %v2413_v42 = vadd.f32 0.001143296, %v2412_v37 }
 0xdf0   :  { %v2439_v43 = vmul.f32 %v4339_v38, %v4339_v38  ;;  %v2363_v46 = vmul.f32 %v2362_v49, %v4323_v25  ;;  %v2326_v59 = vadd.f32 0.05243302, %v2325_v45  ;;  %v3443_v36 = vld [vmem:[#allocation6 + $0xd0] sm:$0xff] }
 0xdf1   :  { %v2338_v44 = vmul.f32 %v2337_v40, %v4304_v5  ;;  %v2375_v52 = vadd.f32 0.014752088, %v2374_v41  ;;  %v2403_v58 = vmul.f32 %v2402_v13, %v4331_v31  ;;  %v2414_v33 = vmul.f32 %v2413_v42, %v4331_v31  ;;  %2642 = vmatpush.bf16.msrb.mxu0 %v3443_v36  ;;  %v3433_v41 = vld [vmem:[#allocation6 + $0x80] sm:$0xff] }
 0xdf2   :  { %v4347_v47 = vmin.f32 %v2439_v43, 16.0  ;;  %v2364_v22 = vadd.f32 0.0036580483, %v2363_v46  ;;  %v2327_v29 = vmul.f32 %v2326_v59, %v4304_v5  ;;  %2630 = vmatpush.bf16.msrb.mxu3 %v3433_v41 }
 0xdf3   :  { %v2339_v51 = vadd.f32 0.4994258, %v2338_v44  ;;  %v2376_v53 = vmul.f32 %v2375_v52, %v4323_v25  ;;  %v2404_v54 = vadd.f32 0.0036580483, %v2403_v58  ;;  %v2415_v55 = vadd.f32 0.014752088, %v2414_v33 }
 0xdf4   :  { %v2441_v24 = vmul.f32 2.1237322e-06, %v4347_v47  ;;  %v2452_v0 = vmul.f32 3.8918573e-05, %v4347_v47  ;;  %v2365_v60 = vmul.f32 %v2364_v22, %v4323_v25  ;;  %v2328_v13 = vadd.f32 0.18741608, %v2327_v29 }
 0xdf5   :  { %v2340_v61 = vmul.f32 %v2339_v51, %v4304_v5  ;;  %v2377_v2 = vadd.f32 0.112945676, %v2376_v53  ;;  %v2416_v4 = vmul.f32 %v2415_v55, %v4331_v31  ;;  %v2405_v17 = vmul.f32 %v2404_v54, %v4331_v31  ;;  %2643 = vmatpush.bf16.msrb.mxu0 %v3442_v50 }
 0xdf6   :  { %v2453_v10 = vadd.f32 0.001143296, %v2452_v0  ;;  %v2442_v3 = vadd.f32 0.00028619796, %v2441_v24  ;;  %v2366_v44 = vadd.f32 0.05243302, %v2365_v60  ;;  %v2329_v45 = vmul.f32 %v2328_v13, %v4304_v5 }
 0xdf7   :  { %v4356_v9 = vadd.f32 1.0, %v2340_v61  ;;  %v2378_v11 = vmul.f32 %v2377_v2, %v4323_v25  ;;  %v2417_v19 = vadd.f32 0.112945676, %v2416_v4  ;;  %v2406_v34 = vadd.f32 0.05243302, %v2405_v17  ;;  %v3441_v24 = vld [vmem:[#allocation6 + $0xc0] sm:$0xff] }
 0xdf8   :  { %v2454_v27 = vmul.f32 %v2453_v10, %v4347_v47  ;;  %v2443_v35 = vmul.f32 %v2442_v3, %v4347_v47  ;;  %v2367_v53 = vmul.f32 %v2366_v44, %v4323_v25  ;;  %v2330_v2 = vadd.f32 1.1283791, %v2329_v45 }
 0xdf9   :  { %3599 = vrcp.f32 %v4356_v9  ;;  %v2379_v26 = vadd.f32 0.4994258, %v2378_v11  ;;  %v2418_v32 = vmul.f32 %v2417_v19, %v4331_v31  ;;  %v2407_v49 = vmul.f32 %v2406_v34, %v4331_v31  ;;  %2644 = vmatpush.bf16.msrb.mxu0 %v3441_v24 }
 0xdfa   :  { %v2455_v20 = vadd.f32 0.014752088, %v2454_v27  ;;  %v2444_v43 = vadd.f32 0.0036580483, %v2443_v35  ;;  %v2353_v0 = vand.u32 2147483648, %v4356_v9  ;;  %vm2347_vm3 = vweird.f32 %v4356_v9 }
 0xdfb   :  { %v2380_v30 = vmul.f32 %v2379_v26, %v4323_v25  ;;  %v2419_v21 = vadd.f32 0.4994258, %v2418_v32  ;;  %v2408_v54 = vadd.f32 0.18741608, %v2407_v49  ;;  %v2351_v5 = vand.u32 2147483647, %v4356_v9 }
 0xdfc   :  { %v2456_v48 = vmul.f32 %v2455_v20, %v4347_v47  ;;  %v2445_v15 = vmul.f32 %v2444_v43, %v4347_v47  ;;  %v2368_v8 = vadd.f32 0.18741608, %v2367_v53  ;;  %v2354_v3 = vor.u32 1.1754944e-38, %v2353_v0 }
 0xdfd   :  { %v4367_v37 = vadd.f32 1.0, %v2380_v30  ;;  %v2420_v40 = vmul.f32 %v2419_v21, %v4331_v31  ;;  %v2409_v17 = vmul.f32 %v2408_v54, %v4331_v31  ;;  %vm2352_vm5 = vcmp.eq.f32.partialorder %v2351_v5, 8.507059e+37 }
 0xdfe   :  { %v2457_v33 = vadd.f32 0.112945676, %v2456_v48  ;;  %v2446_v4 = vadd.f32 0.05243302, %v2445_v15  ;;  %v2331_v28 = vmul.f32 %v2330_v2, %v4300_v18  ;;  %v2369_v29 = vmul.f32 %v2368_v8, %v4323_v25 }
 0xdff   :  { %v3600_v39 = vpop.eup %3599  ;;  %3601 = vrcp.f32 %v4367_v37  ;;  %v4374_v58 = vadd.f32 1.0, %v2420_v40  ;;  %v2410_v30 = vadd.f32 1.1283791, %v2409_v17  ;;  %vm2387_vm12 = vweird.f32 %v4367_v37 }
 0xe00   :  { %v2343_v42 = vmul.f32 %v3600_v39, %v4356_v9  ;;  %vm2348_vm2 = vweird.f32 %v3600_v39  ;;  %v2458_v55 = vmul.f32 %v2457_v33, %v4347_v47  ;;  %v2447_v32 = vmul.f32 %v2446_v4, %v4347_v47 }
 0xe01   :  { %3603 = vrcp.f32 %v4374_v58  ;;  %vm2349_vm4 = vmor %vm2347_vm3, %vm2348_vm2  ;;  %v2431_v31 = vand.u32 2147483647, %v4374_v58  ;;  %v2433_v35 = vand.u32 2147483648, %v4374_v58  ;;  %v2393_v36 = vand.u32 2147483648, %v4367_v37 }
 0xe02   :  { %v2344_v52 = vsub.f32 1.0, %v2343_v42  ;;  %v2459_v59 = vadd.f32 0.4994258, %v2458_v55  ;;  %v2391_v25 = vand.u32 2147483647, %v4367_v37  ;;  %vm2427_vm14 = vweird.f32 %v4374_v58 }
 0xe03   :  { %v2370_v48 = vadd.f32 1.1283791, %v2369_v29  ;;  %v2411_v41 = vmul.f32 %v2410_v30, %v4320_v23  ;;  %v2434_v13 = vor.u32 1.1754944e-38, %v2433_v35  ;;  %vm2432_vm7 = vcmp.eq.f32.partialorder %v2431_v31, 8.507059e+37 }
 0xe04   :  { %v2345_v51 = vmul.f32 %v3600_v39, %v2344_v52  ;;  %v2460_v22 = vmul.f32 %v2459_v59, %v4347_v47  ;;  %v2394_v50 = vor.u32 1.1754944e-38, %v2393_v36  ;;  %vm2392_vm8 = vcmp.eq.f32.partialorder %v2391_v25, 8.507059e+37 }
 0xe05   :  { %v3602_v61 = vpop.eup %3601  ;;  %v2371_v15 = vmul.f32 %v2370_v48, %v4312_v12  ;;  %v2313_v55 = vmul.f32 0.5, %v4314_v16 }
 0xe06   :  { %v2346_v46 = vadd.f32 %v3600_v39, %v2345_v51  ;;  %v2383_v62 = vmul.f32 %v3602_v61, %v4367_v37  ;;  %v2461_v27 = vadd.f32 1.0, %v2460_v22  ;;  %vm2388_vm6 = vweird.f32 %v3602_v61 }
 0xe07   :  { %v3604_v19 = vpop.eup %3603  ;;  %vm4395_vm13 = vmor %vm2387_vm12, %vm2388_vm6  ;;  %v2314_v22 = vmul.f32 0.5, %v4328_v1 }
 0xe08   :  { %v2350_v10 = vsel %vm2349_vm4, %v3600_v39, %v2346_v46  ;;  %v2384_v11 = vsub.f32 1.0, %v2383_v62  ;;  %v2423_v9 = vmul.f32 %v3604_v19, %v4374_v58  ;;  %3605 = vrcp.f32 %v2461_v27 }
 0xe09   :  { %v2355_v26 = vsel %vm2352_vm5, %v2354_v3, %v2350_v10  ;;  %vm2428_vm11 = vweird.f32 %v3604_v19  ;;  %v2448_v39 = vadd.f32 0.18741608, %v2447_v32  ;;  %v2311_v58 = vmul.f32 0.5, %v4296_v63 }
 0xe0a   :  { %v2385_v14 = vmul.f32 %v3602_v61, %v2384_v11  ;;  %v2424_v34 = vsub.f32 1.0, %v2423_v9  ;;  %v2356_v60 = vmul.f32 %v2355_v26, %v2331_v28  ;;  %vm2429_vm15 = vmor %vm2427_vm14, %vm2428_vm11  ;;  %v2473_v46 = vand.u32 2147483648, %v2461_v27 }
 0xe0b   :  { %v2449_v33 = vmul.f32 %v2448_v39, %v4347_v47  ;;  %vm2467_vm10 = vweird.f32 %v2461_v27  ;;  %v2312_v3 = vmul.f32 0.5, %v4306_v6 }
 0xe0c   :  { %v2386_v21 = vadd.f32 %v3602_v61, %v2385_v14  ;;  %v2425_v20 = vmul.f32 %v3604_v19, %v2424_v34  ;;  %v3242_v42 = vclamps-f32 %v2356_v60, 1.0  ;;  %v2474_v59 = vor.u32 1.1754944e-38, %v2473_v46 }
 0xe0d   :  { %v2450_v24 = vadd.f32 1.1283791, %v2449_v33 }
 0xe0e   :  { %v2426_v40 = vadd.f32 %v3604_v19, %v2425_v20  ;;  %v2390_v43 = vsel %vm4395_vm13, %v3602_v61, %v2386_v21  ;;  %v3606_v49 = vpop.eup %3605  ;;  %v2479_v23 = vadd.f32 1.0, %v3242_v42  ;;  %v2471_v61 = vand.u32 2147483647, %v2461_v27 }
 0xe0f   :  { %v2463_v45 = vmul.f32 %v3606_v49, %v2461_v27  ;;  %v2395_v51 = vsel %vm2392_vm8, %v2394_v50, %v2390_v43  ;;  %vm2468_vm9 = vweird.f32 %v3606_v49  ;;  %v2451_v63 = vmul.f32 %v2450_v24, %v4339_v38  ;;  %v3504_v38 = vld [vmem:[%s4448_s16 + $0x1] ss:$0 sm:$0xff] }
 0xe10   :  { %v2430_v44 = vsel %vm2429_vm15, %v3604_v19, %v2426_v40  ;;  %v2396_v0 = vmul.f32 %v2395_v51, %v2371_v15  ;;  %v2483_v47 = vmul.f32 %v2479_v23, %v2311_v58  ;;  %vm2469_vm0 = vmor %vm2467_vm10, %vm2468_vm9  ;;  %vm2472_vm1 = vcmp.eq.f32.partialorder %v2471_v61, 8.507059e+37  ;;  %v3506_v24 = vld [vmem:[%s4450_s18 + $0x1] ss:$0 sm:$0xff] }
 0xe11   :  { %v2435_v52 = vsel %vm2432_vm7, %v2434_v13, %v2430_v44  ;;  %v2464_v54 = vsub.f32 1.0, %v2463_v45 }
 0xe12   :  { %v2436_v37 = vmul.f32 %v2435_v52, %v2411_v41  ;;  %v3243_v12 = vclamps-f32 %v2396_v0, 1.0 }
 0xe13   :  { %v2465_v62 = vmul.f32 %v3606_v49, %v2464_v54  ;;  %v3505_v54 = vld [vmem:[%s4449_s17 + $0x1] ss:$0 sm:$0xff] }
 0xe14   :  { %v3244_v53 = vclamps-f32 %v2436_v37, 1.0  ;;  %v2480_v17 = vadd.f32 1.0, %v3243_v12 }
 0xe15   :  { %v2466_v4 = vadd.f32 %v3606_v49, %v2465_v62 }
 0xe16   :  { %v2481_v5 = vadd.f32 1.0, %v3244_v53  ;;  %v2484_v9 = vmul.f32 %v2480_v17, %v2312_v3 }
 0xe17   :  { %v2470_v8 = vsel %vm2469_vm0, %v3606_v49, %v2466_v4 }
 0xe18   :  { %v2485_v2 = vmul.f32 %v2481_v5, %v2313_v55  ;;  %v2475_v16 = vsel %vm2472_vm1, %v2474_v59, %v2470_v8 }
 0xe19   :  { %v2476_v11 = vmul.f32 %v2475_v16, %v2451_v63 }
 0xe1a   :  { %v2487_v10 = vpack.c.bf16 %v2485_v2, %v2483_v47 }
 0xe1b   :  { %v3245_v19 = vclamps-f32 %v2476_v11, 1.0 }
 0xe1c   :  { %2631 = vmatmul.bf16.vlgmr.msrb.gmra.mxu3 %v2487_v10 }
 0xe1d   :  { %v2482_v14 = vadd.f32 1.0, %v3245_v19 }
 0xe1f   :  { %v2486_v26 = vmul.f32 %v2482_v14, %v2314_v22 }
 0xe21   :  { %v2488_v32 = vpack.c.bf16 %v2486_v26, %v2484_v9 }
 0xe23   :  { %2645 = vmatmul.bf16.vlgmr.msrb.gmra.mxu0 %v2488_v32 }
 0xe9f   :  { %v2632_v27 = vpop.f32.mrf.mxu3 }
 0xea0   :  { %v2633_v28 = vadd.f32 %v3504_v38, %v2632_v27  ;;  %v2646_v29 = vpop.f32.mrf.mxu0 }
 0xea2   :  { %v2647_v30 = vadd.f32 %v2646_v29, %v2633_v28 }
 0xea4   :  { %v2651_v34 = vadd.f32 %v2647_v30, %v4287_v56 }
 0xea6   :  { %2657 = vadd.xlane.f32.xlu1 %v2651_v34  ;;  %v2663_v35 = vmul.f32 %v2651_v34, %v2651_v34 }
 0xea7   :  { %v2634_v31 = vpop.f32.mrf.mxu3 }
 0xea8   :  { %v2635_v6 = vadd.f32 %v3504_v38, %v2634_v31  ;;  %2665 = vadd.xlane.f32.xlu0 %v2663_v35  ;;  %v2648_v1 = vpop.f32.mrf.mxu0 }
 0xeaa   :  { %v2649_v60 = vadd.f32 %v2648_v1, %v2635_v6 }
 0xeac   :  { %v2652_v21 = vadd.f32 %v2649_v60, %v4289_v57 }
 0xeae   :  { %2659 = vadd.xlane.f32.xlu2 %v2652_v21  ;;  %v2664_v20 = vmul.f32 %v2652_v21, %v2652_v21 }
 0xeb0   :  { %2667 = vadd.xlane.f32.xlu1 %v2664_v20 }
 0xf19   :  { %v2658_v36 = vpop.xlane.xlu1 %2657 }
 0xf1a   :  { %v2661_v39 = vmul.f32 %v2658_v36, %v3862_v7 }
 0xf1b   :  { %v2666_v18 = vpop.xlane.xlu0 %2665 }
 0xf1c   :  { %v2671_v25 = vmul.f32 %v2661_v39, %v2661_v39  ;;  %v2669_v40 = vmul.f32 %v2666_v18, %v3862_v7  ;;  %v2699_v53 = vsub.f32 %v2651_v34, %v2661_v39 }
 0xf1e   :  { %v2673_v56 = vsub.f32 %v2669_v40, %v2671_v25 }
 0xf20   :  { %v2675_v48 = vmax.f32 %v2673_v56, 0.0 }
 0xf21   :  { %v2660_v41 = vpop.xlane.xlu2 %2659 }
 0xf22   :  { %v2677_v13 = vadd.f32 1e-12, %v2675_v48  ;;  %v2662_v42 = vmul.f32 %v2660_v41, %v3862_v7 }
 0xf23   :  { %v2668_v43 = vpop.xlane.xlu1 %2667 }
 0xf24   :  { %3607 = vrsqrt.f32 %v2677_v13  ;;  %v2672_v44 = vmul.f32 %v2662_v42, %v2662_v42  ;;  %v2670_v57 = vmul.f32 %v2668_v43, %v3862_v7  ;;  %vm2685_vm3 = vweird.f32 %v2677_v13 }
 0xf25   :  { %v2700_v4 = vsub.f32 %v2652_v21, %v2662_v42 }
 0xf26   :  { %v2674_v49 = vsub.f32 %v2670_v57, %v2672_v44 }
 0xf28   :  { %v2676_v50 = vmax.f32 %v2674_v49, 0.0 }
 0xf2a   :  { %v3608_v52 = vpop.eup %3607  ;;  %v2678_v37 = vadd.f32 1e-12, %v2676_v50 }
 0xf2b   :  { %v2680_v33 = vmul.f32 %v3608_v52, %v2677_v13  ;;  %vm2686_vm2 = vweird.f32 %v3608_v52 }
 0xf2c   :  { %3609 = vrsqrt.f32 %v2678_v37  ;;  %vm2687_vm4 = vmor %vm2685_vm3, %vm2686_vm2  ;;  %vm2695_vm6 = vweird.f32 %v2678_v37 }
 0xf2d   :  { %v2681_v45 = vmul.f32 %v3608_v52, %v2680_v33 }
 0xf2f   :  { %v2682_v58 = vmul.f32 0.5, %v2681_v45 }
 0xf31   :  { %v2683_v51 = vsub.f32 1.5, %v2682_v58 }
 0xf32   :  { %v3610_v23 = vpop.eup %3609 }
 0xf33   :  { %v2684_v15 = vmul.f32 %v3608_v52, %v2683_v51  ;;  %v2690_v7 = vmul.f32 %v3610_v23, %v2678_v37  ;;  %vm2696_vm5 = vweird.f32 %v3610_v23 }
 0xf34   :  { %vm2697_vm11 = vmor %vm2695_vm6, %vm2696_vm5 }
 0xf35   :  { %v2688_v55 = vsel %vm2687_vm4, %v3608_v52, %v2684_v15  ;;  %v2691_v46 = vmul.f32 %v3610_v23, %v2690_v7 }
 0xf36   :  { %v2701_v61 = vmul.f32 %v2699_v53, %v2688_v55 }
 0xf37   :  { %v2692_v5 = vmul.f32 0.5, %v2691_v46 }
 0xf38   :  { %v2706_v0 = vmul.f32 %v3505_v54, %v2701_v61 }
 0xf39   :  { %v2693_v47 = vsub.f32 1.5, %v2692_v5 }
 0xf3a   :  { %v2711_v62 = vadd.f32 %v3506_v24, %v2706_v0 }
 0xf3b   :  { %v2694_v2 = vmul.f32 %v3610_v23, %v2693_v47 }
 0xf3c   :  { %2713 = vst [vmem:[%s4451_s19] sm:$0xff] %v2711_v62 }
 0xf3d   :  { %v2698_v63 = vsel %vm2697_vm11, %v3610_v23, %v2694_v2 }
 0xf3e   :  { %v2702_v59 = vmul.f32 %v2700_v4, %v2698_v63 }
 0xf40   :  { %v2707_v12 = vmul.f32 %v3505_v54, %v2702_v59 }
 0xf42   :  { %v2712_v10 = vadd.f32 %v3506_v24, %v2707_v12 }
 0xf44   :  { %2714 = vst [vmem:[%s4451_s19 + $0x8] sm:$0xff] %v2712_v10 }
 0xf45   :  { %2719 = vsyncpa [#allocation3], 1 }
 0xf46   :  { %2720 = vsyncpa [#allocation5], 1 }

</bundles_post_ra>
